<compile_context>
chip_gen: v5e
topology: v5e:2x2
jax: 0.10.0
libtpu: 0.0.40
codegen_flags: <defaults>
</compile_context>

<pallas_src>
import math
import numpy as np
import jax
import jax.numpy as jnp
from jax.experimental import pallas as pl
from jax.experimental.pallas import tpu as pltpu


# ----------------------------------------------------------------------------
# Deterministic constant builders (numpy, mirror the torch helpers)
# ----------------------------------------------------------------------------
def create_distance_tensor(size):
    rows, cols = size
    i = np.arange(rows, dtype=np.float64)[:, None] + 0.5 - rows / 2.0
    j = np.arange(cols, dtype=np.float64)[None, :] + 0.5 - cols / 2.0
    return np.sqrt(i * i + j * j).astype(np.float32)


def positionalencoding2d(d_model, height, width):
    if d_model % 4 != 0:
        raise ValueError("d_model must be divisible by 4")
    pe = np.zeros((d_model, height, width), dtype=np.float32)
    dm = d_model // 2
    div_term = np.exp(np.arange(0.0, dm, 2) * -(math.log(10000.0) / dm))
    pos_w = np.arange(0.0, width)[:, None]
    pos_h = np.arange(0.0, height)[:, None]
    pe[0:dm:2, :, :] = np.repeat(np.sin(pos_w * div_term).T[:, None, :], height, axis=1)
    pe[1:dm:2, :, :] = np.repeat(np.cos(pos_w * div_term).T[:, None, :], height, axis=1)
    pe[dm::2, :, :] = np.repeat(np.sin(pos_h * div_term).T[:, :, None], width, axis=2)
    pe[dm + 1::2, :, :] = np.repeat(np.cos(pos_h * div_term).T[:, :, None], width, axis=2)
    return pe


# ----------------------------------------------------------------------------
# Stage A: fused 1x1 pointwise conv + KxK depthwise conv + split + q*k gate
# ----------------------------------------------------------------------------
def _pw_dw_qkv_kernel(xf_ref, pww_ref, pwb_ref, dww_ref, dwb_ref,
                      qk_ref, v_ref, yp_ref):
    i = pl.program_id(1)
    nH = pl.num_programs(1)
    _, th, W, dim = qk_ref.shape
    C3 = dww_ref.shape[2]
    KH, KW = dww_ref.shape[0], dww_ref.shape[1]
    p = KH // 2
    r0 = i * th

    pww = pww_ref[...]                          # (Cin, 3C)
    pwb = pwb_ref[...]                          # (1, 3C)

    # Zero the padded scratch; this provides the depthwise conv's zero padding
    # (torch zero-pads the depthwise-conv input, i.e. the pointwise output).
    yp_ref[...] = jnp.zeros_like(yp_ref)

    def fill(src_row, n_rows, dst_row):
        # 1x1 pointwise conv (MXU matmul) for n_rows image rows, written into
        # the padded scratch rows [dst_row, dst_row+n_rows), cols [p, p+W).
        start = src_row * W
        if W % 8 == 0:
            start = pl.multiple_of(start, 8)
        xr = xf_ref[0, pl.ds(start, n_rows * W), :]                       # (n*W, Cin)
        yr = jnp.dot(xr, pww, preferred_element_type=jnp.float32) + pwb   # (n*W, 3C)
        for r in range(n_rows):                 # static, cheap aligned slices
            yp_ref[dst_row + r, p:p + W, :] = yr[r * W:(r + 1) * W, :]

    fill(r0, th, p)                             # this tile's rows (always valid)

    @pl.when(i > 0)                             # top halo rows, recomputed per tile
    def _():
        fill(r0 - p, p, 0)

    @pl.when(i < nH - 1)                        # bottom halo rows
    def _():
        fill(r0 + th, p, th + p)

    # KxK depthwise conv over the padded scratch, then split + q*k gate.
    # NOTE: the kw slice is a sub-8 sublane offset (shifted copy per tap);
    # acceptable at these tap counts, kept for lowering robustness.
    dww = dww_ref[...]
    dwb = dwb_ref[...]
    yp = yp_ref[...]
    acc = jnp.zeros((th, W, C3), jnp.float32)
    for kh in range(KH):
        for kw in range(KW):
            acc = acc + yp[kh:kh + th, kw:kw + W, :] * dww[kh, kw, :]
    acc = acc + dwb[0]
    q = acc[..., 0:dim]
    k = acc[..., dim:2 * dim]
    v = acc[..., 2 * dim:3 * dim]
    qk_ref[0] = (q * k).astype(qk_ref.dtype)
    v_ref[0] = v.astype(v_ref.dtype)


def pw_dw_qkv(x, pw_w, pw_b, dw_w, dw_b, dim, th):
    """x (B,H,W,Cin) -> (q*k, v), each (B,H,W,dim), fully fused in one kernel."""
    B, H, W, Cin = x.shape
    KH, KW, C3 = dw_w.shape
    p = KH // 2
    assert H % th == 0 and th >= p, (H, th, p)
    nH = H // th
    xf = x.reshape(B, H * W, Cin)   # free metadata reshape (contiguous), no HBM pass
    qk, v = pl.pallas_call(
        _pw_dw_qkv_kernel,
        out_shape=(jax.ShapeDtypeStruct((B, H, W, dim), x.dtype),
                   jax.ShapeDtypeStruct((B, H, W, dim), x.dtype)),
        grid_spec=pltpu.PrefetchScalarGridSpec(
            num_scalar_prefetch=0,
            grid=(B, nH),
            in_specs=[
                # full (flattened) image per batch, resident across the row-tile axis
                pl.BlockSpec((1, H * W, Cin), lambda b, i: (b, 0, 0)),
                pl.BlockSpec((Cin, C3), lambda b, i: (0, 0)),
                pl.BlockSpec((1, C3), lambda b, i: (0, 0)),
                pl.BlockSpec((KH, KW, C3), lambda b, i: (0, 0, 0)),
                pl.BlockSpec((1, C3), lambda b, i: (0, 0)),
            ],
            out_specs=(
                pl.BlockSpec((1, th, W, dim), lambda b, i: (b, i, 0, 0)),
                pl.BlockSpec((1, th, W, dim), lambda b, i: (b, i, 0, 0)),
            ),
            scratch_shapes=[pltpu.VMEM((th + 2 * p, W + 2 * p, C3), jnp.float32)],
        ),
        compiler_params=pltpu.CompilerParams(
            dimension_semantics=("parallel", "parallel"),
            vmem_limit_bytes=32 * 1024 * 1024,
        ),
    )(xf, pw_w, pw_b.reshape(1, C3), dw_w, dw_b.reshape(1, C3))
    return qk, v


# ----------------------------------------------------------------------------
# Stage B: fused long depthwise conv + qk*bias skip + v gate + 1x1 out_proj
# ----------------------------------------------------------------------------
def _long_gate_proj_kernel(qk_ref, v_ref, filt_ref, hyb_ref, opw_ref, opb_ref,
                           o_ref, qkp_ref):
    i = pl.program_id(1)
    nH = pl.num_programs(1)
    _, th, W, C = o_ref.shape
    KS = filt_ref.shape[0]
    lp = KS // 2
    r0 = i * th

    # Build the zero-padded qk window for this row tile in VMEM (no HBM pad).
    qkp_ref[...] = jnp.zeros_like(qkp_ref)
    qkp_ref[lp:lp + th, lp:lp + W, :] = qk_ref[0, pl.ds(r0, th), :, :]

    @pl.when(i > 0)
    def _():
        qkp_ref[0:lp, lp:lp + W, :] = qk_ref[0, pl.ds(r0 - lp, lp), :, :]

    @pl.when(i < nH - 1)
    def _():
        qkp_ref[th + lp:th + 2 * lp, lp:lp + W, :] = qk_ref[0, pl.ds(r0 + th, lp), :, :]

    # Long depthwise conv (direct taps) + Hyena u*bias skip, then v-gate.
    # TODO(synk): for production long_kernel_size (e.g. 111) this direct KSxKS
    # tap loop should be replaced by an FFT-based conv (the torch fftconv2d
    # path, which is not defined in the provided source); direct taps are only
    # viable for small KS.
    filt = filt_ref[...]
    qkp = qkp_ref[...]
    acc = jnp.zeros((th, W, C), jnp.float32)
    for kh in range(KS):
        for kw in range(KS):
            acc = acc + qkp[kh:kh + th, kw:kw + W, :] * filt[kh, kw, :]
    y = acc + qkp[lp:lp + th, lp:lp + W, :] * hyb_ref[0]
    g = v_ref[0] * y                                             # (th, W, C)

    # Fused 1x1 out_proj: per-row (W, C) @ (C, C) MXU matmuls + bias.
    opw = opw_ref[...]
    opb = opb_ref[...]
    for r in range(th):
        o_ref[0, r] = (jnp.dot(g[r], opw, preferred_element_type=jnp.float32)
                       + opb[0]).astype(o_ref.dtype)


def long_gate_proj(qk, v, filt, hy_bias, op_w, op_b, th):
    """out = (v * (depthwise_same_conv(qk, filt) + qk*bias)) @ op_w + op_b."""
    B, H, W, C = qk.shape
    KS = filt.shape[0]
    lp = KS // 2
    assert H % th == 0 and th >= lp, (H, th, lp)
    nH = H // th
    out = pl.pallas_call(
        _long_gate_proj_kernel,
        out_shape=jax.ShapeDtypeStruct((B, H, W, C), qk.dtype),
        grid_spec=pltpu.PrefetchScalarGridSpec(
            num_scalar_prefetch=0,
            grid=(B, nH),
            in_specs=[
                # full qk image per batch, resident across the row-tile axis
                pl.BlockSpec((1, H, W, C), lambda b, i: (b, 0, 0, 0)),
                pl.BlockSpec((1, th, W, C), lambda b, i: (b, i, 0, 0)),
                pl.BlockSpec((KS, KS, C), lambda b, i: (0, 0, 0)),
                pl.BlockSpec((1, C), lambda b, i: (0, 0)),
                pl.BlockSpec((C, C), lambda b, i: (0, 0)),
                pl.BlockSpec((1, C), lambda b, i: (0, 0)),
            ],
            out_specs=pl.BlockSpec((1, th, W, C), lambda b, i: (b, i, 0, 0)),
            scratch_shapes=[pltpu.VMEM((th + 2 * lp, W + 2 * lp, C), jnp.float32)],
        ),
        compiler_params=pltpu.CompilerParams(
            dimension_semantics=("parallel", "parallel"),
            vmem_limit_bytes=32 * 1024 * 1024,
        ),
    )(qk, v, filt, hy_bias.reshape(1, C), op_w, op_b.reshape(1, C))
    return out


# ----------------------------------------------------------------------------
# Parameter init + implicit filter (plain-JAX glue)
# ----------------------------------------------------------------------------
def init_params(key, dim, kernel_size, long_kernel_size, filter_emb_dim, filter_order):
    keys = jax.random.split(key, 12)
    s = 0.3
    f32 = jnp.float32
    p = {}
    # pointwise_conv: Conv2d(dim, 3*dim, 1)  -> (Cin, Cout) matrix
    p["pw_w"] = jax.random.normal(keys[0], (dim, 3 * dim), f32) * s
    p["pw_b"] = jax.random.normal(keys[1], (3 * dim,), f32) * s
    # depthwise_conv: Conv2d(3*dim, 3*dim, k, groups=3*dim) -> (K, K, 3C)
    p["dw_w"] = jax.random.normal(keys[2], (kernel_size, kernel_size, 3 * dim), f32) * s
    p["dw_b"] = jax.random.normal(keys[3], (3 * dim,), f32) * s
    # Hyena2DConv (implicit filter)
    p["z"] = jnp.asarray(positionalencoding2d(filter_emb_dim, long_kernel_size, long_kernel_size))
    p["if_w1"] = jax.random.normal(keys[4], (filter_order, filter_emb_dim), f32) * s
    p["if_b1"] = jax.random.normal(keys[5], (filter_order,), f32) * s
    p["if_f1"] = jnp.ones((filter_order,), f32)  # Sin2D(w=1)
    p["if_w2"] = jax.random.normal(keys[6], (filter_order, filter_order), f32) * s
    p["if_b2"] = jax.random.normal(keys[7], (filter_order,), f32) * s
    p["if_f2"] = jnp.ones((filter_order,), f32)  # Sin2D(w=1)
    p["if_w3"] = jax.random.normal(keys[8], (dim, filter_order), f32) * s  # no bias
    p["dist"] = jnp.asarray(create_distance_tensor((long_kernel_size, long_kernel_size)))
    fast_decay_pct, slow_decay_pct, target = 0.3, 1.5, 0.01
    max_decay = math.log(target) / fast_decay_pct
    min_decay = math.log(target) / slow_decay_pct
    p["deltas"] = (jnp.linspace(min_decay, max_decay, dim) / long_kernel_size).astype(f32)
    p["shift"] = jnp.zeros((dim,), f32)
    p["hy_bias"] = jax.random.normal(keys[9], (dim,), f32)  # torch.randn(dim)
    # out_proj: Conv2d(dim, dim, 1)
    p["op_w"] = jax.random.normal(keys[10], (dim, dim), f32) * s
    p["op_b"] = jax.random.normal(keys[11], (dim,), f32) * s
    return p


def implicit_filter(p, ks):
    """implicit_filter(z) * (decay + shift) -> (ks, ks, dim). Tiny; plain JAX glue."""
    z = p["z"]                                   # (femb, ks, ks)
    femb = z.shape[0]
    zf = z.reshape(femb, ks * ks).T              # (ks*ks, femb)
    h = zf @ p["if_w1"].T + p["if_b1"]
    h = jnp.sin(p["if_f1"] * h)
    h = h @ p["if_w2"].T + p["if_b2"]
    h = jnp.sin(p["if_f2"] * h)
    kf = h @ p["if_w3"].T                        # (ks*ks, dim)
    kf = kf.reshape(ks, ks, -1)
    decay = jnp.exp(-p["dist"][:, :, None] * jnp.abs(p["deltas"])[None, None, :])
    return kf * (decay + p["shift"][None, None, :])


# ----------------------------------------------------------------------------
# HyenaPixelOperator forward (Pallas) and plain-JAX reference
# ----------------------------------------------------------------------------
def _pick_row_tile(H, halo, target=8):
    best = H
    for t in range(1, H + 1):
        if H % t == 0 and t >= halo and abs(t - target) < abs(best - target):
            best = t
    return best


def hyena_pixel_operator(x, p, dim, kernel_size, long_kernel_size):
    # x: (B, H, W, dim) NHWC
    B, H, W, _ = x.shape
    th_a = _pick_row_tile(H, kernel_size // 2)
    th_b = _pick_row_tile(H, long_kernel_size // 2)
    # Stage A: pointwise 1x1 -> depthwise KxK -> split -> q*k   (one kernel)
    qk, v = pw_dw_qkv(x, p["pw_w"], p["pw_b"], p["dw_w"], p["dw_b"], dim, th_a)
    # implicit filter generation (tiny, plain JAX)
    kf = implicit_filter(p, long_kernel_size)
    # Stage B: long conv + bias skip + v gate + out_proj        (one kernel)
    # NOTE: for v6e/v7x, casting the matmul operands to bf16 (keeping f32
    # accumulation) would further cut DMA bytes; left in f32 here for exact
    # parity with the reference at toy channel counts.
    out = long_gate_proj(qk, v, kf, p["hy_bias"], p["op_w"], p["op_b"], th_b)
    return out                                                    # NHWC, same as torch output


def reference(x, p, dim, kernel_size, long_kernel_size):
    y = jnp.einsum("bhwc,cd->bhwd", x, p["pw_w"]) + p["pw_b"]
    C3 = 3 * dim
    dw_k = p["dw_w"].reshape(kernel_size, kernel_size, 1, C3)
    y = jax.lax.conv_general_dilated(
        y, dw_k, (1, 1), "SAME",
        dimension_numbers=("NHWC", "HWIO", "NHWC"), feature_group_count=C3,
    ) + p["dw_b"]
    q, k, v = y[..., :dim], y[..., dim:2 * dim], y[..., 2 * dim:]
    qk = q * k
    kf = implicit_filter(p, long_kernel_size)
    lk = kf.reshape(long_kernel_size, long_kernel_size, 1, dim)
    conv = jax.lax.conv_general_dilated(
        qk, lk, (1, 1), "SAME",
        dimension_numbers=("NHWC", "HWIO", "NHWC"), feature_group_count=dim,
    )
    out = v * (conv + qk * p["hy_bias"])
    out = jnp.einsum("bhwc,cd->bhwd", out, p["op_w"]) + p["op_b"]
    return out


if __name__ == "__main__":
    # Small config consistent with the module defaults (scaled down).
    dim = 8
    kernel_size = 5
    long_kernel_size = 7
    filter_emb_dim = 8            # must be divisible by 4 for the 2d PE
    filter_order = 2 * filter_emb_dim
    B, H, W = 2, 16, 16

    key = jax.random.PRNGKey(0)
    kx, kp = jax.random.split(key)
    x = jax.random.normal(kx, (B, H, W, dim), jnp.float32)   # NHWC input
    params = init_params(kp, dim, kernel_size, long_kernel_size, filter_emb_dim, filter_order)

    out = hyena_pixel_operator(x, params, dim, kernel_size, long_kernel_size)
    out = jax.block_until_ready(out)
    assert out.shape == (B, H, W, dim)

    ref = jax.block_until_ready(reference(x, params, dim, kernel_size, long_kernel_size))
    rel_err = float(np.max(np.abs(np.asarray(out) - np.asarray(ref)))
                    / (np.max(np.abs(np.asarray(ref))) + 1e-6))
    assert rel_err < 5e-2, f"mismatch vs reference, rel_err={rel_err}"

    print("KERNEL_OK")
</pallas_src>

<mosaic_0001>
module attributes {stable_mosaic.version = 11 : i64} {
  func.func @_pw_dw_qkv_kernel(%arg0: i32, %arg1: i32, %arg2: memref<1x256x8xf32, #tpu.memory_space<vmem>>, %arg3: memref<8x24xf32, #tpu.memory_space<vmem>>, %arg4: memref<1x24xf32, #tpu.memory_space<vmem>>, %arg5: memref<5x5x24xf32, #tpu.memory_space<vmem>>, %arg6: memref<1x24xf32, #tpu.memory_space<vmem>>, %arg7: memref<1x8x16x8xf32, #tpu.memory_space<vmem>>, %arg8: memref<1x8x16x8xf32, #tpu.memory_space<vmem>>, %arg9: memref<12x20x24xf32, #tpu.memory_space<vmem>>) attributes {dimension_semantics = [#tpu.dimension_semantics<parallel>, #tpu.dimension_semantics<parallel>], iteration_bounds = array<i64: 2, 2>, scalar_prefetch = 0 : i64, scratch_operands = 1 : i64, tpu.core_type = #tpu.core_type<tc>, window_params = [{transform_indices = @transform_0, window_bounds = array<i64: 1, 256, 8>}, {pipeline_mode = #tpu.pipeline_mode<synchronous>, transform_indices = @transform_1, window_bounds = array<i64: 8, 24>}, {pipeline_mode = #tpu.pipeline_mode<synchronous>, transform_indices = @transform_2, window_bounds = array<i64: 1, 24>}, {pipeline_mode = #tpu.pipeline_mode<synchronous>, transform_indices = @transform_3, window_bounds = array<i64: 5, 5, 24>}, {pipeline_mode = #tpu.pipeline_mode<synchronous>, transform_indices = @transform_4, window_bounds = array<i64: 1, 24>}, {transform_indices = @transform_5, window_bounds = array<i64: 1, 8, 16, 8>}, {transform_indices = @transform_6, window_bounds = array<i64: 1, 8, 16, 8>}]} {
    %c8_i32 = arith.constant 8 : i32
    %0 = arith.muli %arg1, %c8_i32 : i32
    %c0 = arith.constant 0 : index
    %c0_0 = arith.constant 0 : index
    %1 = vector.load %arg3[%c0, %c0_0] : memref<8x24xf32, #tpu.memory_space<vmem>>, vector<8x24xf32>
    %c0_1 = arith.constant 0 : index
    %c0_2 = arith.constant 0 : index
    %2 = vector.load %arg4[%c0_1, %c0_2] : memref<1x24xf32, #tpu.memory_space<vmem>>, vector<1x24xf32>
    %cst = arith.constant 0.000000e+00 : f32
    %3 = vector.broadcast %cst : f32 to vector<12x20x24xf32>
    %c0_3 = arith.constant 0 : index
    %c0_4 = arith.constant 0 : index
    %c0_5 = arith.constant 0 : index
    %4 = vector.load %arg9[%c0_3, %c0_4, %c0_5] : memref<12x20x24xf32, #tpu.memory_space<vmem>>, vector<12x20x24xf32>
    tpu.vector_store %arg9[%c0_3, %c0_4, %c0_5], %3 {strides = array<i32>} : memref<12x20x24xf32, #tpu.memory_space<vmem>>, vector<12x20x24xf32>,
    %c16_i32 = arith.constant 16 : i32
    %5 = arith.muli %0, %c16_i32 : i32
    %6 = tpu.assume_multiple %5, 8 : i32
    %c0_6 = arith.constant 0 : index
    %7 = arith.index_cast %6 : i32 to index
    %c0_7 = arith.constant 0 : index
    %8 = vector.load %arg2[%c0_6, %7, %c0_7] : memref<1x256x8xf32, #tpu.memory_space<vmem>>, vector<1x128x8xf32>
    %9 = vector.shape_cast %8 : vector<1x128x8xf32> to vector<128x8xf32>
    %cst_8 = arith.constant dense<0.000000e+00> : vector<128x24xf32>
    %10 = tpu.matmul %9, %1, %cst_8 {dimension_numbers = #tpu.dot_dimension_numbers<[1], [0], [0], [1], [0, 0, 1, 1], [], []>} : vector<128x8xf32>, vector<8x24xf32>, vector<128x24xf32> -> vector<128x24xf32>
    %11 = vector.broadcast %2 : vector<1x24xf32> to vector<128x24xf32>
    %12 = arith.addf %10, %11 : vector<128x24xf32>
    %13 = vector.extract_strided_slice %12 {offsets = [0, 0], sizes = [16, 24], strides = [1, 1]} : vector<128x24xf32> to vector<16x24xf32>
    %c2 = arith.constant 2 : index
    %c2_9 = arith.constant 2 : index
    %c0_10 = arith.constant 0 : index
    %14 = vector.load %arg9[%c2, %c2_9, %c0_10] : memref<12x20x24xf32, #tpu.memory_space<vmem>>, vector<1x16x24xf32>
    %15 = vector.shape_cast %14 : vector<1x16x24xf32> to vector<16x24xf32>
    %16 = vector.shape_cast %13 : vector<16x24xf32> to vector<1x16x24xf32>
    tpu.vector_store %arg9[%c2, %c2_9, %c0_10], %16 {strides = array<i32>} : memref<12x20x24xf32, #tpu.memory_space<vmem>>, vector<1x16x24xf32>,
    %17 = vector.extract_strided_slice %12 {offsets = [16, 0], sizes = [16, 24], strides = [1, 1]} : vector<128x24xf32> to vector<16x24xf32>
    %c3 = arith.constant 3 : index
    %c2_11 = arith.constant 2 : index
    %c0_12 = arith.constant 0 : index
    %18 = vector.load %arg9[%c3, %c2_11, %c0_12] : memref<12x20x24xf32, #tpu.memory_space<vmem>>, vector<1x16x24xf32>
    %19 = vector.shape_cast %18 : vector<1x16x24xf32> to vector<16x24xf32>
    %20 = vector.shape_cast %17 : vector<16x24xf32> to vector<1x16x24xf32>
    tpu.vector_store %arg9[%c3, %c2_11, %c0_12], %20 {strides = array<i32>} : memref<12x20x24xf32, #tpu.memory_space<vmem>>, vector<1x16x24xf32>,
    %21 = vector.extract_strided_slice %12 {offsets = [32, 0], sizes = [16, 24], strides = [1, 1]} : vector<128x24xf32> to vector<16x24xf32>
    %c4 = arith.constant 4 : index
    %c2_13 = arith.constant 2 : index
    %c0_14 = arith.constant 0 : index
    %22 = vector.load %arg9[%c4, %c2_13, %c0_14] : memref<12x20x24xf32, #tpu.memory_space<vmem>>, vector<1x16x24xf32>
    %23 = vector.shape_cast %22 : vector<1x16x24xf32> to vector<16x24xf32>
    %24 = vector.shape_cast %21 : vector<16x24xf32> to vector<1x16x24xf32>
    tpu.vector_store %arg9[%c4, %c2_13, %c0_14], %24 {strides = array<i32>} : memref<12x20x24xf32, #tpu.memory_space<vmem>>, vector<1x16x24xf32>,
    %25 = vector.extract_strided_slice %12 {offsets = [48, 0], sizes = [16, 24], strides = [1, 1]} : vector<128x24xf32> to vector<16x24xf32>
    %c5 = arith.constant 5 : index
    %c2_15 = arith.constant 2 : index
    %c0_16 = arith.constant 0 : index
    %26 = vector.load %arg9[%c5, %c2_15, %c0_16] : memref<12x20x24xf32, #tpu.memory_space<vmem>>, vector<1x16x24xf32>
    %27 = vector.shape_cast %26 : vector<1x16x24xf32> to vector<16x24xf32>
    %28 = vector.shape_cast %25 : vector<16x24xf32> to vector<1x16x24xf32>
    tpu.vector_store %arg9[%c5, %c2_15, %c0_16], %28 {strides = array<i32>} : memref<12x20x24xf32, #tpu.memory_space<vmem>>, vector<1x16x24xf32>,
    %29 = vector.extract_strided_slice %12 {offsets = [64, 0], sizes = [16, 24], strides = [1, 1]} : vector<128x24xf32> to vector<16x24xf32>
    %c6 = arith.constant 6 : index
    %c2_17 = arith.constant 2 : index
    %c0_18 = arith.constant 0 : index
    %30 = vector.load %arg9[%c6, %c2_17, %c0_18] : memref<12x20x24xf32, #tpu.memory_space<vmem>>, vector<1x16x24xf32>
    %31 = vector.shape_cast %30 : vector<1x16x24xf32> to vector<16x24xf32>
    %32 = vector.shape_cast %29 : vector<16x24xf32> to vector<1x16x24xf32>
    tpu.vector_store %arg9[%c6, %c2_17, %c0_18], %32 {strides = array<i32>} : memref<12x20x24xf32, #tpu.memory_space<vmem>>, vector<1x16x24xf32>,
    %33 = vector.extract_strided_slice %12 {offsets = [80, 0], sizes = [16, 24], strides = [1, 1]} : vector<128x24xf32> to vector<16x24xf32>
    %c7 = arith.constant 7 : index
    %c2_19 = arith.constant 2 : index
    %c0_20 = arith.constant 0 : index
    %34 = vector.load %arg9[%c7, %c2_19, %c0_20] : memref<12x20x24xf32, #tpu.memory_space<vmem>>, vector<1x16x24xf32>
    %35 = vector.shape_cast %34 : vector<1x16x24xf32> to vector<16x24xf32>
    %36 = vector.shape_cast %33 : vector<16x24xf32> to vector<1x16x24xf32>
    tpu.vector_store %arg9[%c7, %c2_19, %c0_20], %36 {strides = array<i32>} : memref<12x20x24xf32, #tpu.memory_space<vmem>>, vector<1x16x24xf32>,
    %37 = vector.extract_strided_slice %12 {offsets = [96, 0], sizes = [16, 24], strides = [1, 1]} : vector<128x24xf32> to vector<16x24xf32>
    %c8 = arith.constant 8 : index
    %c2_21 = arith.constant 2 : index
    %c0_22 = arith.constant 0 : index
    %38 = vector.load %arg9[%c8, %c2_21, %c0_22] : memref<12x20x24xf32, #tpu.memory_space<vmem>>, vector<1x16x24xf32>
    %39 = vector.shape_cast %38 : vector<1x16x24xf32> to vector<16x24xf32>
    %40 = vector.shape_cast %37 : vector<16x24xf32> to vector<1x16x24xf32>
    tpu.vector_store %arg9[%c8, %c2_21, %c0_22], %40 {strides = array<i32>} : memref<12x20x24xf32, #tpu.memory_space<vmem>>, vector<1x16x24xf32>,
    %41 = vector.extract_strided_slice %12 {offsets = [112, 0], sizes = [16, 24], strides = [1, 1]} : vector<128x24xf32> to vector<16x24xf32>
    %c9 = arith.constant 9 : index
    %c2_23 = arith.constant 2 : index
    %c0_24 = arith.constant 0 : index
    %42 = vector.load %arg9[%c9, %c2_23, %c0_24] : memref<12x20x24xf32, #tpu.memory_space<vmem>>, vector<1x16x24xf32>
    %43 = vector.shape_cast %42 : vector<1x16x24xf32> to vector<16x24xf32>
    %44 = vector.shape_cast %41 : vector<16x24xf32> to vector<1x16x24xf32>
    tpu.vector_store %arg9[%c9, %c2_23, %c0_24], %44 {strides = array<i32>} : memref<12x20x24xf32, #tpu.memory_space<vmem>>, vector<1x16x24xf32>,
    %c0_i32 = arith.constant 0 : i32
    %45 = arith.cmpi sgt, %arg1, %c0_i32 : i32
    %46 = arith.extui %45 : i1 to i32
    %c0_i32_25 = arith.constant 0 : i32
    %47 = arith.cmpi ne, %46, %c0_i32_25 : i32
    scf.if %47 {
      %c2_i32 = arith.constant 2 : i32
      %244 = arith.subi %0, %c2_i32 : i32
      %c16_i32_44 = arith.constant 16 : i32
      %245 = arith.muli %244, %c16_i32_44 : i32
      %246 = tpu.assume_multiple %245, 8 : i32
      %c0_45 = arith.constant 0 : index
      %247 = arith.index_cast %246 : i32 to index
      %c0_46 = arith.constant 0 : index
      %248 = vector.load %arg2[%c0_45, %247, %c0_46] : memref<1x256x8xf32, #tpu.memory_space<vmem>>, vector<1x32x8xf32>
      %249 = vector.shape_cast %248 : vector<1x32x8xf32> to vector<32x8xf32>
      %cst_47 = arith.constant dense<0.000000e+00> : vector<32x24xf32>
      %250 = tpu.matmul %249, %1, %cst_47 {dimension_numbers = #tpu.dot_dimension_numbers<[1], [0], [0], [1], [0, 0, 1, 1], [], []>} : vector<32x8xf32>, vector<8x24xf32>, vector<32x24xf32> -> vector<32x24xf32>
      %251 = vector.broadcast %2 : vector<1x24xf32> to vector<32x24xf32>
      %252 = arith.addf %250, %251 : vector<32x24xf32>
      %253 = vector.extract_strided_slice %252 {offsets = [0, 0], sizes = [16, 24], strides = [1, 1]} : vector<32x24xf32> to vector<16x24xf32>
      %c0_48 = arith.constant 0 : index
      %c2_49 = arith.constant 2 : index
      %c0_50 = arith.constant 0 : index
      %254 = vector.load %arg9[%c0_48, %c2_49, %c0_50] : memref<12x20x24xf32, #tpu.memory_space<vmem>>, vector<1x16x24xf32>
      %255 = vector.shape_cast %254 : vector<1x16x24xf32> to vector<16x24xf32>
      %256 = vector.shape_cast %253 : vector<16x24xf32> to vector<1x16x24xf32>
      tpu.vector_store %arg9[%c0_48, %c2_49, %c0_50], %256 {strides = array<i32>} : memref<12x20x24xf32, #tpu.memory_space<vmem>>, vector<1x16x24xf32>,
      %257 = vector.extract_strided_slice %252 {offsets = [16, 0], sizes = [16, 24], strides = [1, 1]} : vector<32x24xf32> to vector<16x24xf32>
      %c1 = arith.constant 1 : index
      %c2_51 = arith.constant 2 : index
      %c0_52 = arith.constant 0 : index
      %258 = vector.load %arg9[%c1, %c2_51, %c0_52] : memref<12x20x24xf32, #tpu.memory_space<vmem>>, vector<1x16x24xf32>
      %259 = vector.shape_cast %258 : vector<1x16x24xf32> to vector<16x24xf32>
      %260 = vector.shape_cast %257 : vector<16x24xf32> to vector<1x16x24xf32>
      tpu.vector_store %arg9[%c1, %c2_51, %c0_52], %260 {strides = array<i32>} : memref<12x20x24xf32, #tpu.memory_space<vmem>>, vector<1x16x24xf32>,
    } else {
    }
    %c1_i32 = arith.constant 1 : i32
    %48 = arith.cmpi slt, %arg1, %c1_i32 : i32
    %49 = arith.extui %48 : i1 to i32
    %c0_i32_26 = arith.constant 0 : i32
    %50 = arith.cmpi ne, %49, %c0_i32_26 : i32
    scf.if %50 {
      %c8_i32_44 = arith.constant 8 : i32
      %244 = arith.addi %0, %c8_i32_44 : i32
      %c16_i32_45 = arith.constant 16 : i32
      %245 = arith.muli %244, %c16_i32_45 : i32
      %246 = tpu.assume_multiple %245, 8 : i32
      %c0_46 = arith.constant 0 : index
      %247 = arith.index_cast %246 : i32 to index
      %c0_47 = arith.constant 0 : index
      %248 = vector.load %arg2[%c0_46, %247, %c0_47] : memref<1x256x8xf32, #tpu.memory_space<vmem>>, vector<1x32x8xf32>
      %249 = vector.shape_cast %248 : vector<1x32x8xf32> to vector<32x8xf32>
      %cst_48 = arith.constant dense<0.000000e+00> : vector<32x24xf32>
      %250 = tpu.matmul %249, %1, %cst_48 {dimension_numbers = #tpu.dot_dimension_numbers<[1], [0], [0], [1], [0, 0, 1, 1], [], []>} : vector<32x8xf32>, vector<8x24xf32>, vector<32x24xf32> -> vector<32x24xf32>
      %251 = vector.broadcast %2 : vector<1x24xf32> to vector<32x24xf32>
      %252 = arith.addf %250, %251 : vector<32x24xf32>
      %253 = vector.extract_strided_slice %252 {offsets = [0, 0], sizes = [16, 24], strides = [1, 1]} : vector<32x24xf32> to vector<16x24xf32>
      %c10 = arith.constant 10 : index
      %c2_49 = arith.constant 2 : index
      %c0_50 = arith.constant 0 : index
      %254 = vector.load %arg9[%c10, %c2_49, %c0_50] : memref<12x20x24xf32, #tpu.memory_space<vmem>>, vector<1x16x24xf32>
      %255 = vector.shape_cast %254 : vector<1x16x24xf32> to vector<16x24xf32>
      %256 = vector.shape_cast %253 : vector<16x24xf32> to vector<1x16x24xf32>
      tpu.vector_store %arg9[%c10, %c2_49, %c0_50], %256 {strides = array<i32>} : memref<12x20x24xf32, #tpu.memory_space<vmem>>, vector<1x16x24xf32>,
      %257 = vector.extract_strided_slice %252 {offsets = [16, 0], sizes = [16, 24], strides = [1, 1]} : vector<32x24xf32> to vector<16x24xf32>
      %c11 = arith.constant 11 : index
      %c2_51 = arith.constant 2 : index
      %c0_52 = arith.constant 0 : index
      %258 = vector.load %arg9[%c11, %c2_51, %c0_52] : memref<12x20x24xf32, #tpu.memory_space<vmem>>, vector<1x16x24xf32>
      %259 = vector.shape_cast %258 : vector<1x16x24xf32> to vector<16x24xf32>
      %260 = vector.shape_cast %257 : vector<16x24xf32> to vector<1x16x24xf32>
      tpu.vector_store %arg9[%c11, %c2_51, %c0_52], %260 {strides = array<i32>} : memref<12x20x24xf32, #tpu.memory_space<vmem>>, vector<1x16x24xf32>,
    } else {
    }
    %c0_27 = arith.constant 0 : index
    %c0_28 = arith.constant 0 : index
    %c0_29 = arith.constant 0 : index
    %51 = vector.load %arg5[%c0_27, %c0_28, %c0_29] : memref<5x5x24xf32, #tpu.memory_space<vmem>>, vector<5x5x24xf32>
    %c0_30 = arith.constant 0 : index
    %c0_31 = arith.constant 0 : index
    %52 = vector.load %arg6[%c0_30, %c0_31] : memref<1x24xf32, #tpu.memory_space<vmem>>, vector<1x24xf32>
    %c0_32 = arith.constant 0 : index
    %c0_33 = arith.constant 0 : index
    %c0_34 = arith.constant 0 : index
    %53 = vector.load %arg9[%c0_32, %c0_33, %c0_34] : memref<12x20x24xf32, #tpu.memory_space<vmem>>, vector<12x20x24xf32>
    %cst_35 = arith.constant 0.000000e+00 : f32
    %54 = vector.broadcast %cst_35 : f32 to vector<8x16x24xf32>
    %55 = vector.extract_strided_slice %53 {offsets = [0, 0, 0], sizes = [8, 16, 24], strides = [1, 1, 1]} : vector<12x20x24xf32> to vector<8x16x24xf32>
    %56 = vector.extract_strided_slice %51 {offsets = [0, 0, 0], sizes = [1, 1, 24], strides = [1, 1, 1]} : vector<5x5x24xf32> to vector<1x1x24xf32>
    %57 = vector.shape_cast %56 : vector<1x1x24xf32> to vector<24xf32>
    %58 = vector.shape_cast %57 : vector<24xf32> to vector<1x1x24xf32>
    %59 = vector.broadcast %58 : vector<1x1x24xf32> to vector<8x16x24xf32>
    %60 = arith.mulf %55, %59 : vector<8x16x24xf32>
    %61 = arith.addf %54, %60 : vector<8x16x24xf32>
    %62 = vector.extract_strided_slice %53 {offsets = [0, 1, 0], sizes = [8, 16, 24], strides = [1, 1, 1]} : vector<12x20x24xf32> to vector<8x16x24xf32>
    %63 = vector.extract_strided_slice %51 {offsets = [0, 1, 0], sizes = [1, 1, 24], strides = [1, 1, 1]} : vector<5x5x24xf32> to vector<1x1x24xf32>
    %64 = vector.shape_cast %63 : vector<1x1x24xf32> to vector<24xf32>
    %65 = vector.shape_cast %64 : vector<24xf32> to vector<1x1x24xf32>
    %66 = vector.broadcast %65 : vector<1x1x24xf32> to vector<8x16x24xf32>
    %67 = arith.mulf %62, %66 : vector<8x16x24xf32>
    %68 = arith.addf %61, %67 : vector<8x16x24xf32>
    %69 = vector.extract_strided_slice %53 {offsets = [0, 2, 0], sizes = [8, 16, 24], strides = [1, 1, 1]} : vector<12x20x24xf32> to vector<8x16x24xf32>
    %70 = vector.extract_strided_slice %51 {offsets = [0, 2, 0], sizes = [1, 1, 24], strides = [1, 1, 1]} : vector<5x5x24xf32> to vector<1x1x24xf32>
    %71 = vector.shape_cast %70 : vector<1x1x24xf32> to vector<24xf32>
    %72 = vector.shape_cast %71 : vector<24xf32> to vector<1x1x24xf32>
    %73 = vector.broadcast %72 : vector<1x1x24xf32> to vector<8x16x24xf32>
    %74 = arith.mulf %69, %73 : vector<8x16x24xf32>
    %75 = arith.addf %68, %74 : vector<8x16x24xf32>
    %76 = vector.extract_strided_slice %53 {offsets = [0, 3, 0], sizes = [8, 16, 24], strides = [1, 1, 1]} : vector<12x20x24xf32> to vector<8x16x24xf32>
    %77 = vector.extract_strided_slice %51 {offsets = [0, 3, 0], sizes = [1, 1, 24], strides = [1, 1, 1]} : vector<5x5x24xf32> to vector<1x1x24xf32>
    %78 = vector.shape_cast %77 : vector<1x1x24xf32> to vector<24xf32>
    %79 = vector.shape_cast %78 : vector<24xf32> to vector<1x1x24xf32>
    %80 = vector.broadcast %79 : vector<1x1x24xf32> to vector<8x16x24xf32>
    %81 = arith.mulf %76, %80 : vector<8x16x24xf32>
    %82 = arith.addf %75, %81 : vector<8x16x24xf32>
    %83 = vector.extract_strided_slice %53 {offsets = [0, 4, 0], sizes = [8, 16, 24], strides = [1, 1, 1]} : vector<12x20x24xf32> to vector<8x16x24xf32>
    %84 = vector.extract_strided_slice %51 {offsets = [0, 4, 0], sizes = [1, 1, 24], strides = [1, 1, 1]} : vector<5x5x24xf32> to vector<1x1x24xf32>
    %85 = vector.shape_cast %84 : vector<1x1x24xf32> to vector<24xf32>
    %86 = vector.shape_cast %85 : vector<24xf32> to vector<1x1x24xf32>
    %87 = vector.broadcast %86 : vector<1x1x24xf32> to vector<8x16x24xf32>
    %88 = arith.mulf %83, %87 : vector<8x16x24xf32>
    %89 = arith.addf %82, %88 : vector<8x16x24xf32>
    %90 = vector.extract_strided_slice %53 {offsets = [1, 0, 0], sizes = [8, 16, 24], strides = [1, 1, 1]} : vector<12x20x24xf32> to vector<8x16x24xf32>
    %91 = vector.extract_strided_slice %51 {offsets = [1, 0, 0], sizes = [1, 1, 24], strides = [1, 1, 1]} : vector<5x5x24xf32> to vector<1x1x24xf32>
    %92 = vector.shape_cast %91 : vector<1x1x24xf32> to vector<24xf32>
    %93 = vector.shape_cast %92 : vector<24xf32> to vector<1x1x24xf32>
    %94 = vector.broadcast %93 : vector<1x1x24xf32> to vector<8x16x24xf32>
    %95 = arith.mulf %90, %94 : vector<8x16x24xf32>
    %96 = arith.addf %89, %95 : vector<8x16x24xf32>
    %97 = vector.extract_strided_slice %53 {offsets = [1, 1, 0], sizes = [8, 16, 24], strides = [1, 1, 1]} : vector<12x20x24xf32> to vector<8x16x24xf32>
    %98 = vector.extract_strided_slice %51 {offsets = [1, 1, 0], sizes = [1, 1, 24], strides = [1, 1, 1]} : vector<5x5x24xf32> to vector<1x1x24xf32>
    %99 = vector.shape_cast %98 : vector<1x1x24xf32> to vector<24xf32>
    %100 = vector.shape_cast %99 : vector<24xf32> to vector<1x1x24xf32>
    %101 = vector.broadcast %100 : vector<1x1x24xf32> to vector<8x16x24xf32>
    %102 = arith.mulf %97, %101 : vector<8x16x24xf32>
    %103 = arith.addf %96, %102 : vector<8x16x24xf32>
    %104 = vector.extract_strided_slice %53 {offsets = [1, 2, 0], sizes = [8, 16, 24], strides = [1, 1, 1]} : vector<12x20x24xf32> to vector<8x16x24xf32>
    %105 = vector.extract_strided_slice %51 {offsets = [1, 2, 0], sizes = [1, 1, 24], strides = [1, 1, 1]} : vector<5x5x24xf32> to vector<1x1x24xf32>
    %106 = vector.shape_cast %105 : vector<1x1x24xf32> to vector<24xf32>
    %107 = vector.shape_cast %106 : vector<24xf32> to vector<1x1x24xf32>
    %108 = vector.broadcast %107 : vector<1x1x24xf32> to vector<8x16x24xf32>
    %109 = arith.mulf %104, %108 : vector<8x16x24xf32>
    %110 = arith.addf %103, %109 : vector<8x16x24xf32>
    %111 = vector.extract_strided_slice %53 {offsets = [1, 3, 0], sizes = [8, 16, 24], strides = [1, 1, 1]} : vector<12x20x24xf32> to vector<8x16x24xf32>
    %112 = vector.extract_strided_slice %51 {offsets = [1, 3, 0], sizes = [1, 1, 24], strides = [1, 1, 1]} : vector<5x5x24xf32> to vector<1x1x24xf32>
    %113 = vector.shape_cast %112 : vector<1x1x24xf32> to vector<24xf32>
    %114 = vector.shape_cast %113 : vector<24xf32> to vector<1x1x24xf32>
    %115 = vector.broadcast %114 : vector<1x1x24xf32> to vector<8x16x24xf32>
    %116 = arith.mulf %111, %115 : vector<8x16x24xf32>
    %117 = arith.addf %110, %116 : vector<8x16x24xf32>
    %118 = vector.extract_strided_slice %53 {offsets = [1, 4, 0], sizes = [8, 16, 24], strides = [1, 1, 1]} : vector<12x20x24xf32> to vector<8x16x24xf32>
    %119 = vector.extract_strided_slice %51 {offsets = [1, 4, 0], sizes = [1, 1, 24], strides = [1, 1, 1]} : vector<5x5x24xf32> to vector<1x1x24xf32>
    %120 = vector.shape_cast %119 : vector<1x1x24xf32> to vector<24xf32>
    %121 = vector.shape_cast %120 : vector<24xf32> to vector<1x1x24xf32>
    %122 = vector.broadcast %121 : vector<1x1x24xf32> to vector<8x16x24xf32>
    %123 = arith.mulf %118, %122 : vector<8x16x24xf32>
    %124 = arith.addf %117, %123 : vector<8x16x24xf32>
    %125 = vector.extract_strided_slice %53 {offsets = [2, 0, 0], sizes = [8, 16, 24], strides = [1, 1, 1]} : vector<12x20x24xf32> to vector<8x16x24xf32>
    %126 = vector.extract_strided_slice %51 {offsets = [2, 0, 0], sizes = [1, 1, 24], strides = [1, 1, 1]} : vector<5x5x24xf32> to vector<1x1x24xf32>
    %127 = vector.shape_cast %126 : vector<1x1x24xf32> to vector<24xf32>
    %128 = vector.shape_cast %127 : vector<24xf32> to vector<1x1x24xf32>
    %129 = vector.broadcast %128 : vector<1x1x24xf32> to vector<8x16x24xf32>
    %130 = arith.mulf %125, %129 : vector<8x16x24xf32>
    %131 = arith.addf %124, %130 : vector<8x16x24xf32>
    %132 = vector.extract_strided_slice %53 {offsets = [2, 1, 0], sizes = [8, 16, 24], strides = [1, 1, 1]} : vector<12x20x24xf32> to vector<8x16x24xf32>
    %133 = vector.extract_strided_slice %51 {offsets = [2, 1, 0], sizes = [1, 1, 24], strides = [1, 1, 1]} : vector<5x5x24xf32> to vector<1x1x24xf32>
    %134 = vector.shape_cast %133 : vector<1x1x24xf32> to vector<24xf32>
    %135 = vector.shape_cast %134 : vector<24xf32> to vector<1x1x24xf32>
    %136 = vector.broadcast %135 : vector<1x1x24xf32> to vector<8x16x24xf32>
    %137 = arith.mulf %132, %136 : vector<8x16x24xf32>
    %138 = arith.addf %131, %137 : vector<8x16x24xf32>
    %139 = vector.extract_strided_slice %53 {offsets = [2, 2, 0], sizes = [8, 16, 24], strides = [1, 1, 1]} : vector<12x20x24xf32> to vector<8x16x24xf32>
    %140 = vector.extract_strided_slice %51 {offsets = [2, 2, 0], sizes = [1, 1, 24], strides = [1, 1, 1]} : vector<5x5x24xf32> to vector<1x1x24xf32>
    %141 = vector.shape_cast %140 : vector<1x1x24xf32> to vector<24xf32>
    %142 = vector.shape_cast %141 : vector<24xf32> to vector<1x1x24xf32>
    %143 = vector.broadcast %142 : vector<1x1x24xf32> to vector<8x16x24xf32>
    %144 = arith.mulf %139, %143 : vector<8x16x24xf32>
    %145 = arith.addf %138, %144 : vector<8x16x24xf32>
    %146 = vector.extract_strided_slice %53 {offsets = [2, 3, 0], sizes = [8, 16, 24], strides = [1, 1, 1]} : vector<12x20x24xf32> to vector<8x16x24xf32>
    %147 = vector.extract_strided_slice %51 {offsets = [2, 3, 0], sizes = [1, 1, 24], strides = [1, 1, 1]} : vector<5x5x24xf32> to vector<1x1x24xf32>
    %148 = vector.shape_cast %147 : vector<1x1x24xf32> to vector<24xf32>
    %149 = vector.shape_cast %148 : vector<24xf32> to vector<1x1x24xf32>
    %150 = vector.broadcast %149 : vector<1x1x24xf32> to vector<8x16x24xf32>
    %151 = arith.mulf %146, %150 : vector<8x16x24xf32>
    %152 = arith.addf %145, %151 : vector<8x16x24xf32>
    %153 = vector.extract_strided_slice %53 {offsets = [2, 4, 0], sizes = [8, 16, 24], strides = [1, 1, 1]} : vector<12x20x24xf32> to vector<8x16x24xf32>
    %154 = vector.extract_strided_slice %51 {offsets = [2, 4, 0], sizes = [1, 1, 24], strides = [1, 1, 1]} : vector<5x5x24xf32> to vector<1x1x24xf32>
    %155 = vector.shape_cast %154 : vector<1x1x24xf32> to vector<24xf32>
    %156 = vector.shape_cast %155 : vector<24xf32> to vector<1x1x24xf32>
    %157 = vector.broadcast %156 : vector<1x1x24xf32> to vector<8x16x24xf32>
    %158 = arith.mulf %153, %157 : vector<8x16x24xf32>
    %159 = arith.addf %152, %158 : vector<8x16x24xf32>
    %160 = vector.extract_strided_slice %53 {offsets = [3, 0, 0], sizes = [8, 16, 24], strides = [1, 1, 1]} : vector<12x20x24xf32> to vector<8x16x24xf32>
    %161 = vector.extract_strided_slice %51 {offsets = [3, 0, 0], sizes = [1, 1, 24], strides = [1, 1, 1]} : vector<5x5x24xf32> to vector<1x1x24xf32>
    %162 = vector.shape_cast %161 : vector<1x1x24xf32> to vector<24xf32>
    %163 = vector.shape_cast %162 : vector<24xf32> to vector<1x1x24xf32>
    %164 = vector.broadcast %163 : vector<1x1x24xf32> to vector<8x16x24xf32>
    %165 = arith.mulf %160, %164 : vector<8x16x24xf32>
    %166 = arith.addf %159, %165 : vector<8x16x24xf32>
    %167 = vector.extract_strided_slice %53 {offsets = [3, 1, 0], sizes = [8, 16, 24], strides = [1, 1, 1]} : vector<12x20x24xf32> to vector<8x16x24xf32>
    %168 = vector.extract_strided_slice %51 {offsets = [3, 1, 0], sizes = [1, 1, 24], strides = [1, 1, 1]} : vector<5x5x24xf32> to vector<1x1x24xf32>
    %169 = vector.shape_cast %168 : vector<1x1x24xf32> to vector<24xf32>
    %170 = vector.shape_cast %169 : vector<24xf32> to vector<1x1x24xf32>
    %171 = vector.broadcast %170 : vector<1x1x24xf32> to vector<8x16x24xf32>
    %172 = arith.mulf %167, %171 : vector<8x16x24xf32>
    %173 = arith.addf %166, %172 : vector<8x16x24xf32>
    %174 = vector.extract_strided_slice %53 {offsets = [3, 2, 0], sizes = [8, 16, 24], strides = [1, 1, 1]} : vector<12x20x24xf32> to vector<8x16x24xf32>
    %175 = vector.extract_strided_slice %51 {offsets = [3, 2, 0], sizes = [1, 1, 24], strides = [1, 1, 1]} : vector<5x5x24xf32> to vector<1x1x24xf32>
    %176 = vector.shape_cast %175 : vector<1x1x24xf32> to vector<24xf32>
    %177 = vector.shape_cast %176 : vector<24xf32> to vector<1x1x24xf32>
    %178 = vector.broadcast %177 : vector<1x1x24xf32> to vector<8x16x24xf32>
    %179 = arith.mulf %174, %178 : vector<8x16x24xf32>
    %180 = arith.addf %173, %179 : vector<8x16x24xf32>
    %181 = vector.extract_strided_slice %53 {offsets = [3, 3, 0], sizes = [8, 16, 24], strides = [1, 1, 1]} : vector<12x20x24xf32> to vector<8x16x24xf32>
    %182 = vector.extract_strided_slice %51 {offsets = [3, 3, 0], sizes = [1, 1, 24], strides = [1, 1, 1]} : vector<5x5x24xf32> to vector<1x1x24xf32>
    %183 = vector.shape_cast %182 : vector<1x1x24xf32> to vector<24xf32>
    %184 = vector.shape_cast %183 : vector<24xf32> to vector<1x1x24xf32>
    %185 = vector.broadcast %184 : vector<1x1x24xf32> to vector<8x16x24xf32>
    %186 = arith.mulf %181, %185 : vector<8x16x24xf32>
    %187 = arith.addf %180, %186 : vector<8x16x24xf32>
    %188 = vector.extract_strided_slice %53 {offsets = [3, 4, 0], sizes = [8, 16, 24], strides = [1, 1, 1]} : vector<12x20x24xf32> to vector<8x16x24xf32>
    %189 = vector.extract_strided_slice %51 {offsets = [3, 4, 0], sizes = [1, 1, 24], strides = [1, 1, 1]} : vector<5x5x24xf32> to vector<1x1x24xf32>
    %190 = vector.shape_cast %189 : vector<1x1x24xf32> to vector<24xf32>
    %191 = vector.shape_cast %190 : vector<24xf32> to vector<1x1x24xf32>
    %192 = vector.broadcast %191 : vector<1x1x24xf32> to vector<8x16x24xf32>
    %193 = arith.mulf %188, %192 : vector<8x16x24xf32>
    %194 = arith.addf %187, %193 : vector<8x16x24xf32>
    %195 = vector.extract_strided_slice %53 {offsets = [4, 0, 0], sizes = [8, 16, 24], strides = [1, 1, 1]} : vector<12x20x24xf32> to vector<8x16x24xf32>
    %196 = vector.extract_strided_slice %51 {offsets = [4, 0, 0], sizes = [1, 1, 24], strides = [1, 1, 1]} : vector<5x5x24xf32> to vector<1x1x24xf32>
    %197 = vector.shape_cast %196 : vector<1x1x24xf32> to vector<24xf32>
    %198 = vector.shape_cast %197 : vector<24xf32> to vector<1x1x24xf32>
    %199 = vector.broadcast %198 : vector<1x1x24xf32> to vector<8x16x24xf32>
    %200 = arith.mulf %195, %199 : vector<8x16x24xf32>
    %201 = arith.addf %194, %200 : vector<8x16x24xf32>
    %202 = vector.extract_strided_slice %53 {offsets = [4, 1, 0], sizes = [8, 16, 24], strides = [1, 1, 1]} : vector<12x20x24xf32> to vector<8x16x24xf32>
    %203 = vector.extract_strided_slice %51 {offsets = [4, 1, 0], sizes = [1, 1, 24], strides = [1, 1, 1]} : vector<5x5x24xf32> to vector<1x1x24xf32>
    %204 = vector.shape_cast %203 : vector<1x1x24xf32> to vector<24xf32>
    %205 = vector.shape_cast %204 : vector<24xf32> to vector<1x1x24xf32>
    %206 = vector.broadcast %205 : vector<1x1x24xf32> to vector<8x16x24xf32>
    %207 = arith.mulf %202, %206 : vector<8x16x24xf32>
    %208 = arith.addf %201, %207 : vector<8x16x24xf32>
    %209 = vector.extract_strided_slice %53 {offsets = [4, 2, 0], sizes = [8, 16, 24], strides = [1, 1, 1]} : vector<12x20x24xf32> to vector<8x16x24xf32>
    %210 = vector.extract_strided_slice %51 {offsets = [4, 2, 0], sizes = [1, 1, 24], strides = [1, 1, 1]} : vector<5x5x24xf32> to vector<1x1x24xf32>
    %211 = vector.shape_cast %210 : vector<1x1x24xf32> to vector<24xf32>
    %212 = vector.shape_cast %211 : vector<24xf32> to vector<1x1x24xf32>
    %213 = vector.broadcast %212 : vector<1x1x24xf32> to vector<8x16x24xf32>
    %214 = arith.mulf %209, %213 : vector<8x16x24xf32>
    %215 = arith.addf %208, %214 : vector<8x16x24xf32>
    %216 = vector.extract_strided_slice %53 {offsets = [4, 3, 0], sizes = [8, 16, 24], strides = [1, 1, 1]} : vector<12x20x24xf32> to vector<8x16x24xf32>
    %217 = vector.extract_strided_slice %51 {offsets = [4, 3, 0], sizes = [1, 1, 24], strides = [1, 1, 1]} : vector<5x5x24xf32> to vector<1x1x24xf32>
    %218 = vector.shape_cast %217 : vector<1x1x24xf32> to vector<24xf32>
    %219 = vector.shape_cast %218 : vector<24xf32> to vector<1x1x24xf32>
    %220 = vector.broadcast %219 : vector<1x1x24xf32> to vector<8x16x24xf32>
    %221 = arith.mulf %216, %220 : vector<8x16x24xf32>
    %222 = arith.addf %215, %221 : vector<8x16x24xf32>
    %223 = vector.extract_strided_slice %53 {offsets = [4, 4, 0], sizes = [8, 16, 24], strides = [1, 1, 1]} : vector<12x20x24xf32> to vector<8x16x24xf32>
    %224 = vector.extract_strided_slice %51 {offsets = [4, 4, 0], sizes = [1, 1, 24], strides = [1, 1, 1]} : vector<5x5x24xf32> to vector<1x1x24xf32>
    %225 = vector.shape_cast %224 : vector<1x1x24xf32> to vector<24xf32>
    %226 = vector.shape_cast %225 : vector<24xf32> to vector<1x1x24xf32>
    %227 = vector.broadcast %226 : vector<1x1x24xf32> to vector<8x16x24xf32>
    %228 = arith.mulf %223, %227 : vector<8x16x24xf32>
    %229 = arith.addf %222, %228 : vector<8x16x24xf32>
    %230 = vector.shape_cast %52 : vector<1x24xf32> to vector<24xf32>
    %231 = vector.shape_cast %230 : vector<24xf32> to vector<1x1x24xf32>
    %232 = vector.broadcast %231 : vector<1x1x24xf32> to vector<8x16x24xf32>
    %233 = arith.addf %229, %232 : vector<8x16x24xf32>
    %234 = vector.extract_strided_slice %233 {offsets = [0, 0, 0], sizes = [8, 16, 8], strides = [1, 1, 1]} : vector<8x16x24xf32> to vector<8x16x8xf32>
    %235 = vector.extract_strided_slice %233 {offsets = [0, 0, 8], sizes = [8, 16, 8], strides = [1, 1, 1]} : vector<8x16x24xf32> to vector<8x16x8xf32>
    %236 = vector.extract_strided_slice %233 {offsets = [0, 0, 16], sizes = [8, 16, 8], strides = [1, 1, 1]} : vector<8x16x24xf32> to vector<8x16x8xf32>
    %237 = arith.mulf %234, %235 : vector<8x16x8xf32>
    %c0_36 = arith.constant 0 : index
    %c0_37 = arith.constant 0 : index
    %c0_38 = arith.constant 0 : index
    %c0_39 = arith.constant 0 : index
    %238 = vector.load %arg7[%c0_36, %c0_37, %c0_38, %c0_39] : memref<1x8x16x8xf32, #tpu.memory_space<vmem>>, vector<1x8x16x8xf32>
    %239 = vector.shape_cast %238 : vector<1x8x16x8xf32> to vector<8x16x8xf32>
    %240 = vector.shape_cast %237 : vector<8x16x8xf32> to vector<1x8x16x8xf32>
    tpu.vector_store %arg7[%c0_36, %c0_37, %c0_38, %c0_39], %240 {strides = array<i32>} : memref<1x8x16x8xf32, #tpu.memory_space<vmem>>, vector<1x8x16x8xf32>,
    %c0_40 = arith.constant 0 : index
    %c0_41 = arith.constant 0 : index
    %c0_42 = arith.constant 0 : index
    %c0_43 = arith.constant 0 : index
    %241 = vector.load %arg8[%c0_40, %c0_41, %c0_42, %c0_43] : memref<1x8x16x8xf32, #tpu.memory_space<vmem>>, vector<1x8x16x8xf32>
    %242 = vector.shape_cast %241 : vector<1x8x16x8xf32> to vector<8x16x8xf32>
    %243 = vector.shape_cast %236 : vector<8x16x8xf32> to vector<1x8x16x8xf32>
    tpu.vector_store %arg8[%c0_40, %c0_41, %c0_42, %c0_43], %243 {strides = array<i32>} : memref<1x8x16x8xf32, #tpu.memory_space<vmem>>, vector<1x8x16x8xf32>,
    return
  }
  func.func @transform_0(%arg0: i32, %arg1: i32) -> (i32, i32, i32) {
    %c0_i32 = arith.constant 0 : i32
    %c0_i32_0 = arith.constant 0 : i32
    %c0_i32_1 = arith.constant 0 : i32
    return %arg0, %c0_i32, %c0_i32_0 : i32, i32, i32
  }
  func.func @transform_1(%arg0: i32, %arg1: i32) -> (i32, i32) {
    %c0_i32 = arith.constant 0 : i32
    %c0_i32_0 = arith.constant 0 : i32
    %c0_i32_1 = arith.constant 0 : i32
    return %c0_i32, %c0_i32_0 : i32, i32
  }
  func.func @transform_2(%arg0: i32, %arg1: i32) -> (i32, i32) {
    %c0_i32 = arith.constant 0 : i32
    %c0_i32_0 = arith.constant 0 : i32
    %c0_i32_1 = arith.constant 0 : i32
    return %c0_i32, %c0_i32_0 : i32, i32
  }
  func.func @transform_3(%arg0: i32, %arg1: i32) -> (i32, i32, i32) {
    %c0_i32 = arith.constant 0 : i32
    %c0_i32_0 = arith.constant 0 : i32
    %c0_i32_1 = arith.constant 0 : i32
    %c0_i32_2 = arith.constant 0 : i32
    return %c0_i32, %c0_i32_0, %c0_i32_1 : i32, i32, i32
  }
  func.func @transform_4(%arg0: i32, %arg1: i32) -> (i32, i32) {
    %c0_i32 = arith.constant 0 : i32
    %c0_i32_0 = arith.constant 0 : i32
    %c0_i32_1 = arith.constant 0 : i32
    return %c0_i32, %c0_i32_0 : i32, i32
  }
  func.func @transform_5(%arg0: i32, %arg1: i32) -> (i32, i32, i32, i32) {
    %c0_i32 = arith.constant 0 : i32
    %c0_i32_0 = arith.constant 0 : i32
    %c0_i32_1 = arith.constant 0 : i32
    return %arg0, %arg1, %c0_i32, %c0_i32_0 : i32, i32, i32, i32
  }
  func.func @transform_6(%arg0: i32, %arg1: i32) -> (i32, i32, i32, i32) {
    %c0_i32 = arith.constant 0 : i32
    %c0_i32_0 = arith.constant 0 : i32
    %c0_i32_1 = arith.constant 0 : i32
    return %arg0, %arg1, %c0_i32, %c0_i32_0 : i32, i32, i32, i32
  }
}

</mosaic_0001>

<bundles_post_ra>
// kernel: tpu_custom_call.1
= control target key start
LH: loop header
LB: loop body
LE: loop exit
PB: predicated region body
PF: predicated region fallthrough
CT: control target
= control target key end

     0   :  { %s3805_s21 = smov 0   ;;  %s3807_s22 = smov 0   ;;  %s7080_s0 = inlined_call_operand.vmem [shape: f32[2,256,8], index: 0, kind: input, shape index: {}]   ;;  %s7081_s1 = inlined_call_operand.vmem [shape: f32[8,24], index: 1, kind: input, shape index: {}]   ;;  %s7082_s2 = inlined_call_operand.vmem [shape: f32[1,24], index: 2, kind: input, shape index: {}]   ;;  %s7083_s3 = inlined_call_operand.vmem [shape: f32[5,5,24], index: 3, kind: input, shape index: {}]   ;;  %s7084_s4 = inlined_call_operand.vmem [shape: f32[1,24], index: 4, kind: input, shape index: {}]   ;;  %s7085_s5 = inlined_call_operand.vmem [shape: f32[2,16,16,8], index: 5, kind: output, shape index: {0}]   ;;  %s7086_s6 = inlined_call_operand.vmem [shape: f32[2,16,16,8], index: 6, kind: output, shape index: {1}]  }
   0x1   :  { %s3809_s23 = smov 0   ;;  %s3811_s24 = smov 0  }
   0x2   :  { %s3813_s25 = smov 0  }
   0x3 LB: > { %s26_s26 = sadd.s32 1, %s3757_s23  ;;  %s29_s27 = sadd.s32 1, %s3761_s24  ;;  %s3765_s25 = sphi %s3813_s25, %s17_s25   ;;  %s3761_s24 = sphi %s3811_s24, %s8032_s24   ;;  %s3757_s23 = sphi %s3809_s23, %s8031_s23   ;;  %s3753_s22 = sphi %s3807_s22, %s8030_s22   ;;  %s3749_s21 = sphi %s3805_s21, %s8029_s21  }
   0x4   : > { %p27_p0 = scmp.ge.s32.totalorder %s26_s26, 2  ;;  %p3586_p1 = scmp.ge.s32.totalorder %s3765_s25, 1 }
   0x5   : > { %p231_p2 = scmp.lt.s32.totalorder %s3765_s25, 5 }
   0x6   : > { %s8034_s26 = smov (%p27_p0, %s26_s26), 0  ;;  %s8036_s27 = smov (!%p27_p0, %s29_s27), %s3761_s24 }
   0x7   : > { %p232_p3 = pnand %p3586_p1, %p231_p2  ;;  %p31_p4 = scmp.ge.s32.totalorder %s8036_s27, 2 }
   0x9   : > { %s8038_s27 = smov (%p31_p4, %s8036_s27), 0  ;;  %235 = sbr.rel (%p232_p3) target bundleno = 1100 (0x44c), region = 40 }
   0xe   : > { %v3840_v0 = vld [vmem:[%s7081_s1] sm:$0xff]  ;;  %p276_p5 = scmp.lt.s32.totalorder %s3753_s22, 1  ;;  %s3843_s30 = sshll.u32 %s3749_s21, 3  ;;  %vm306_vm0 = vcmask 195584   ;;  %v3767_v1 = vmov 0.0   ;;  %vm365_vm1 = vcmask 64512  }
   0xf   : > { %3638 = vmatpush.msra.mxu2 %v3840_v0  ;;  %3639 = vmatpush.msra.mxu3 %v3840_v0  ;;  %p284_p6 = scmp.lt.s32.totalorder %s3843_s30, 15  ;;  %s3598_s7 = sshll.u32 %s3749_s21, 7  ;;  %307 = vst.msk [vmem:[#allocation2] sm:$0xff] %vm306_vm0, %v3767_v1  ;;  %vm309_vm2 = vcmask 191488   ;;  %v305_v18 = vld [vmem:[%s7082_s2] sm:$0x1] }
  0x10   : > { %s8040_s22 = smov (!%p276_p5, %s3753_s22), 1  ;;  %429 = vmatpush.msra.mxu0 %v3840_v0  ;;  %3637 = vmatpush.msra.mxu1 %v3840_v0  ;;  %308 = vst.msk [vmem:[#allocation2 + $0x8] sm:$0xff] %vm306_vm0, %v3767_v1  ;;  %v3965_v19 = vperm.slane %v305_v18, 0  ;;  %p3615_p7 = scmp.le.s32.totalorder %s3749_s21, 0 }
  0x11   : > { %s285_s8 = scalar_select %p284_p6, %s3843_s30, 15  ;;  %311 = vst.msk [vmem:[#allocation2 + $0x18] sm:$0xff] %vm306_vm0, %v3767_v1 }
  0x12   : > { %s3635_s9 = sshll.u32 %s8040_s22, 8  ;;  %s3591_s10 = sshll.u32 %s8040_s22, 5  ;;  %312 = vst.msk [vmem:[#allocation2 + $0x20] sm:$0xff] %vm306_vm0, %v3767_v1 }
  0x13   : > { %s3861_s13 = scalar_lea.vmem %s7080_s0, %s3635_s9  ;;  %s3590_s14 = sshll.u32 %s285_s8, 1  ;;  %314 = vst.msk [vmem:[#allocation2 + $0x30] sm:$0xff] %vm306_vm0, %v3767_v1 }
  0x14   : > { %s288_s15 = sadd.s32 %s3591_s10, %s3590_s14  ;;  %s3866_s16 = scalar_lea.vmem %s3861_s13, %s3598_s7  ;;  %315 = vst.msk [vmem:[#allocation2 + $0x38] sm:$0xff] %vm306_vm0, %v3767_v1 }
  0x15   : > { %s3592_s17 = sshll.u32 %s288_s15, 3  ;;  %v354_v2 = vld [vmem:[%s3866_s16 + $0x40] sm:$0xff]  ;;  %338 = vst.msk [vmem:[#allocation2 + $0xf0] sm:$0xff] %vm306_vm0, %v3767_v1  ;;  %v355_v6 = vld [vmem:[%s3866_s16 + $0x48] sm:$0xff]  ;;  %v356_v10 = vld [vmem:[%s3866_s16 + $0x50] sm:$0xff]  ;;  %s3616_s9 = sadd.s32 (!%p3615_p7), 4294967294, %s3843_s30 }
  0x16   : > { %v358_v3 = vld [vmem:[%s3866_s16 + $0x60] sm:$0xff]  ;;  %s3878_s20 = scalar_lea.vmem %s7085_s5, %s3592_s17  ;;  %s3883_s29 = scalar_lea.vmem %s7086_s6, %s3592_s17  ;;  %3607 = vmatmul.msk.f32.vlgmr.msra.gmra.mxu2 %vm365_vm1, %v354_v2  ;;  %339 = vst.msk [vmem:[#allocation2 + $0xf8] sm:$0xff] %vm306_vm0, %v3767_v1  ;;  %v359_v7 = vld [vmem:[%s3866_s16 + $0x68] sm:$0xff]  ;;  %v360_v11 = vld [vmem:[%s3866_s16 + $0x70] sm:$0xff] }
  0x17   : > { %v346_v4 = vld [vmem:[%s3866_s16] sm:$0xff]  ;;  %3611 = vmatmul.msk.f32.vlgmr.msra.gmra.mxu3 %vm365_vm1, %v358_v3  ;;  %341 = vst.msk [vmem:[#allocation2 + $0x108] sm:$0xff] %vm306_vm0, %v3767_v1  ;;  %v347_v8 = vld [vmem:[%s3866_s16 + $0x8] sm:$0xff]  ;;  %v348_v12 = vld [vmem:[%s3866_s16 + $0x10] sm:$0xff]  ;;  %s3617_s10 = sshll.u32 (!%p3615_p7), %s3616_s9, 4 }
  0x18   : > { %v350_v5 = vld [vmem:[%s3866_s16 + $0x20] sm:$0xff]  ;;  %3599 = vmatmul.msk.f32.vlgmr.msra.gmra.mxu0 %vm365_vm1, %v346_v4  ;;  %342 = vst.msk [vmem:[#allocation2 + $0x110] sm:$0xff] %vm306_vm0, %v3767_v1  ;;  %v351_v9 = vld [vmem:[%s3866_s16 + $0x28] sm:$0xff]  ;;  %v352_v13 = vld [vmem:[%s3866_s16 + $0x30] sm:$0xff]  ;;  %s509_s11 = scalar_lea.vmem (!%p3615_p7), %s3861_s13, %s3617_s10 }
  0x19   : > { %3603 = vmatmul.msk.f32.vlgmr.msra.gmra.mxu1 %vm365_vm1, %v350_v5  ;;  %317 = vst.msk [vmem:[#allocation2 + $0x48] sm:$0xff] %vm306_vm0, %v3767_v1  ;;  %v357_v14 = vld [vmem:[%s3866_s16 + $0x58] sm:$0xff] }
  0x1a   : > { %318 = vst.msk [vmem:[#allocation2 + $0x50] sm:$0xff] %vm306_vm0, %v3767_v1  ;;  %v361_v15 = vld [vmem:[%s3866_s16 + $0x78] sm:$0xff] }
  0x1b   : > { %320 = vst.msk [vmem:[#allocation2 + $0x60] sm:$0xff] %vm306_vm0, %v3767_v1  ;;  %v349_v16 = vld [vmem:[%s3866_s16 + $0x18] sm:$0xff] }
  0x1c   : > { %321 = vst.msk [vmem:[#allocation2 + $0x68] sm:$0xff] %vm306_vm0, %v3767_v1  ;;  %v353_v17 = vld [vmem:[%s3866_s16 + $0x38] sm:$0xff] }
  0x1d   : > { %323 = vst.msk [vmem:[#allocation2 + $0x78] sm:$0xff] %vm306_vm0, %v3767_v1 }
  0x1e   : > { %3608 = vmatmul.msk.f32.gmra.mxu2 %vm365_vm1, %v355_v6  ;;  %324 = vst.msk [vmem:[#allocation2 + $0x80] sm:$0xff] %vm306_vm0, %v3767_v1 }
  0x1f   : > { %3612 = vmatmul.msk.f32.gmra.mxu3 %vm365_vm1, %v359_v7  ;;  %326 = vst.msk [vmem:[#allocation2 + $0x90] sm:$0xff] %vm306_vm0, %v3767_v1 }
  0x20   : > { %3600 = vmatmul.msk.f32.gmra.mxu0 %vm365_vm1, %v347_v8  ;;  %327 = vst.msk [vmem:[#allocation2 + $0x98] sm:$0xff] %vm306_vm0, %v3767_v1 }
  0x21   : > { %3604 = vmatmul.msk.f32.gmra.mxu1 %vm365_vm1, %v351_v9  ;;  %329 = vst.msk [vmem:[#allocation2 + $0xa8] sm:$0xff] %vm306_vm0, %v3767_v1 }
  0x22   : > { %330 = vst.msk [vmem:[#allocation2 + $0xb0] sm:$0xff] %vm306_vm0, %v3767_v1 }
  0x23   : > { %332 = vst.msk [vmem:[#allocation2 + $0xc0] sm:$0xff] %vm306_vm0, %v3767_v1 }
  0x24   : > { %333 = vst.msk [vmem:[#allocation2 + $0xc8] sm:$0xff] %vm306_vm0, %v3767_v1 }
  0x25   : > { %335 = vst.msk [vmem:[#allocation2 + $0xd8] sm:$0xff] %vm306_vm0, %v3767_v1 }
  0x26   : > { %3609 = vmatmul.msk.f32.gmra.mxu2 %vm365_vm1, %v356_v10  ;;  %336 = vst.msk [vmem:[#allocation2 + $0xe0] sm:$0xff] %vm306_vm0, %v3767_v1 }
  0x27   : > { %3613 = vmatmul.msk.f32.gmra.mxu3 %vm365_vm1, %v360_v11  ;;  %310 = vst.msk [vmem:[#allocation2 + $0x10] sm:$0xf] %vm309_vm2, %v3767_v1 }
  0x28   : > { %3601 = vmatmul.msk.f32.gmra.mxu0 %vm365_vm1, %v348_v12  ;;  %313 = vst.msk [vmem:[#allocation2 + $0x28] sm:$0xf] %vm309_vm2, %v3767_v1 }
  0x29   : > { %3605 = vmatmul.msk.f32.gmra.mxu1 %vm365_vm1, %v352_v13  ;;  %316 = vst.msk [vmem:[#allocation2 + $0x40] sm:$0xf] %vm309_vm2, %v3767_v1 }
  0x2a   : > { %340 = vst.msk [vmem:[#allocation2 + $0x100] sm:$0xf] %vm309_vm2, %v3767_v1 }
  0x2b   : > { %343 = vst.msk [vmem:[#allocation2 + $0x118] sm:$0xf] %vm309_vm2, %v3767_v1 }
  0x2c   : > { %319 = vst.msk [vmem:[#allocation2 + $0x58] sm:$0xf] %vm309_vm2, %v3767_v1 }
  0x2d   : > { %322 = vst.msk [vmem:[#allocation2 + $0x70] sm:$0xf] %vm309_vm2, %v3767_v1 }
  0x2e   : > { %3610 = vmatmul.msk.f32.gmra.mxu2 %vm365_vm1, %v357_v14  ;;  %325 = vst.msk [vmem:[#allocation2 + $0x88] sm:$0xf] %vm309_vm2, %v3767_v1 }
  0x2f   : > { %3614 = vmatmul.msk.f32.gmra.mxu3 %vm365_vm1, %v361_v15  ;;  %328 = vst.msk [vmem:[#allocation2 + $0xa0] sm:$0xf] %vm309_vm2, %v3767_v1 }
  0x30   : > { %3602 = vmatmul.msk.f32.gmra.mxu0 %vm365_vm1, %v349_v16  ;;  %331 = vst.msk [vmem:[#allocation2 + $0xb8] sm:$0xf] %vm309_vm2, %v3767_v1 }
  0x31   : > { %3606 = vmatmul.msk.f32.gmra.mxu1 %vm365_vm1, %v353_v17  ;;  %334 = vst.msk [vmem:[#allocation2 + $0xd0] sm:$0xf] %vm309_vm2, %v3767_v1 }
  0x32   : > { %337 = vst.msk [vmem:[#allocation2 + $0xe8] sm:$0xf] %vm309_vm2, %v3767_v1 }
  0x95   : > { %v431_v20 = vpop.f32.mrf.mxu0 }
  0x96   : > { %v443_v21 = vpop.f32.mrf.mxu1  ;;  %v432_v22 = vadd.f32 %v431_v20, %v3965_v19 }
  0x97   : > { %v444_v23 = vadd.f32 %v443_v21, %v3965_v19 }
  0x98   : > { %480 = vst.msk [vmem:[#allocation2 + $0x32] sm:$0xff] %vm306_vm0, %v432_v22 }
  0x99   : > { %486 = vst.msk [vmem:[#allocation2 + $0x62] sm:$0xff] %vm306_vm0, %v444_v23  ;;  %v455_v24 = vpop.f32.mrf.mxu2 }
  0x9a   : > { %v467_v25 = vpop.f32.mrf.mxu3  ;;  %v456_v26 = vadd.f32 %v455_v24, %v3965_v19 }
  0x9b   : > { %v468_v27 = vadd.f32 %v467_v25, %v3965_v19 }
  0x9c   : > { %492 = vst.msk [vmem:[#allocation2 + $0x92] sm:$0xff] %vm306_vm0, %v456_v26 }
  0x9d   : > { %v434_v28 = vpop.f32.mrf.mxu0  ;;  %498 = vst.msk [vmem:[#allocation2 + $0xc2] sm:$0xff] %vm306_vm0, %v468_v27 }
  0x9e   : > { %v446_v29 = vpop.f32.mrf.mxu1  ;;  %v435_v30 = vadd.f32 %v434_v28, %v3965_v19 }
  0x9f   : > { %v447_v31 = vadd.f32 %v446_v29, %v3965_v19 }
  0xa0   : > { %481 = vst.msk [vmem:[#allocation2 + $0x3a] sm:$0xff] %vm306_vm0, %v435_v30 }
  0xa1   : > { %487 = vst.msk [vmem:[#allocation2 + $0x6a] sm:$0xff] %vm306_vm0, %v447_v31  ;;  %v458_v32 = vpop.f32.mrf.mxu2 }
  0xa2   : > { %v470_v33 = vpop.f32.mrf.mxu3  ;;  %v459_v34 = vadd.f32 %v458_v32, %v3965_v19 }
  0xa3   : > { %v471_v35 = vadd.f32 %v470_v33, %v3965_v19 }
  0xa4   : > { %493 = vst.msk [vmem:[#allocation2 + $0x9a] sm:$0xff] %vm306_vm0, %v459_v34 }
  0xa5   : > { %v437_v36 = vpop.f32.mrf.mxu0  ;;  %499 = vst.msk [vmem:[#allocation2 + $0xca] sm:$0xff] %vm306_vm0, %v471_v35 }
  0xa6   : > { %v449_v37 = vpop.f32.mrf.mxu1  ;;  %v438_v38 = vadd.f32 %v437_v36, %v3965_v19 }
  0xa7   : > { %v450_v39 = vadd.f32 %v449_v37, %v3965_v19 }
  0xa8   : > { %483 = vst.msk [vmem:[#allocation2 + $0x4a] sm:$0xff] %vm306_vm0, %v438_v38 }
  0xa9   : > { %489 = vst.msk [vmem:[#allocation2 + $0x7a] sm:$0xff] %vm306_vm0, %v450_v39  ;;  %v461_v40 = vpop.f32.mrf.mxu2 }
  0xaa   : > { %v473_v41 = vpop.f32.mrf.mxu3  ;;  %v462_v42 = vadd.f32 %v461_v40, %v3965_v19 }
  0xab   : > { %v474_v43 = vadd.f32 %v473_v41, %v3965_v19 }
  0xac   : > { %495 = vst.msk [vmem:[#allocation2 + $0xaa] sm:$0xff] %vm306_vm0, %v462_v42 }
  0xad   : > { %v440_v44 = vpop.f32.mrf.mxu0  ;;  %501 = vst.msk [vmem:[#allocation2 + $0xda] sm:$0xff] %vm306_vm0, %v474_v43 }
  0xae   : > { %v452_v45 = vpop.f32.mrf.mxu1  ;;  %v441_v46 = vadd.f32 %v440_v44, %v3965_v19 }
  0xaf   : > { %v453_v47 = vadd.f32 %v452_v45, %v3965_v19 }
  0xb0   : > { %484 = vst.msk [vmem:[#allocation2 + $0x52] sm:$0xff] %vm306_vm0, %v441_v46 }
  0xb1   : > { %490 = vst.msk [vmem:[#allocation2 + $0x82] sm:$0xff] %vm306_vm0, %v453_v47  ;;  %v464_v48 = vpop.f32.mrf.mxu2  ;;  %506 = sbr.rel (%p3615_p7) target bundleno = 320 (0x140), region = 44 }
  0xb2   : > { %v476_v49 = vpop.f32.mrf.mxu3  ;;  %v465_v50 = vadd.f32 %v464_v48, %v3965_v19 }
  0xb3   : > { %v477_v51 = vadd.f32 %v476_v49, %v3965_v19 }
  0xb4   : > { %496 = vst.msk [vmem:[#allocation2 + $0xb2] sm:$0xff] %vm306_vm0, %v465_v50 }
  0xb5   : > { %502 = vst.msk [vmem:[#allocation2 + $0xe2] sm:$0xff] %vm306_vm0, %v477_v51 }
  0xb6   : > { %3641 = vmatpush.msra.mxu2 %v3840_v0  ;;  %3642 = vmatpush.msra.mxu3 %v3840_v0  ;;  %v512_v52 = vld [vmem:[%s509_s11 + $0x10] sm:$0xff]  ;;  %v513_v53 = vld [vmem:[%s509_s11 + $0x18] sm:$0xff]  ;;  %v510_v54 = vld [vmem:[%s509_s11] sm:$0xff] }
  0xb7   : > { %541 = vmatpush.msra.mxu0 %v3840_v0  ;;  %3640 = vmatpush.msra.mxu1 %v3840_v0  ;;  %v511_v55 = vld [vmem:[%s509_s11 + $0x8] sm:$0xff] }
  0xb8   : > { %3620 = vmatmul.msk.f32.vlgmr.msra.gmra.mxu2 %vm365_vm1, %v512_v52  ;;  %3621 = vmatmul.msk.f32.vlgmr.msra.gmra.mxu3 %vm365_vm1, %v513_v53 }
  0xb9   : > { %3618 = vmatmul.msk.f32.vlgmr.msra.gmra.mxu0 %vm365_vm1, %v510_v54  ;;  %3619 = vmatmul.msk.f32.vlgmr.msra.gmra.mxu1 %vm365_vm1, %v511_v55 }
 0x136   : > { %v543_v56 = vpop.f32.mrf.mxu0  ;;  %v546_v57 = vpop.f32.mrf.mxu1 }
 0x137   : > { %v544_v58 = vadd.f32 %v543_v56, %v3965_v19  ;;  %v547_v59 = vadd.f32 %v546_v57, %v3965_v19 }
 0x139   : > { %555 = vst.msk [vmem:[#allocation2 + $0x2] sm:$0xff] %vm306_vm0, %v544_v58 }
 0x13a   : > { %556 = vst.msk [vmem:[#allocation2 + $0xa] sm:$0xff] %vm306_vm0, %v547_v59 }
 0x13b   : > { %v549_v60 = vpop.f32.mrf.mxu2  ;;  %v552_v61 = vpop.f32.mrf.mxu3 }
 0x13c   : > { %v550_v62 = vadd.f32 %v549_v60, %v3965_v19  ;;  %v553_v63 = vadd.f32 %v552_v61, %v3965_v19 }
 0x13e   : > { %558 = vst.msk [vmem:[#allocation2 + $0x1a] sm:$0xff] %vm306_vm0, %v550_v62 }
 0x13f   : > { %559 = vst.msk [vmem:[#allocation2 + $0x22] sm:$0xff] %vm306_vm0, %v553_v63 }
 0x140 PF: > { %p3622_p8 = scmp.ge.s32.totalorder %s3749_s21, 1 }
 0x142   : > { %563 = sbr.rel (%p3622_p8) target bundleno = 464 (0x1d0), region = 48 }
 0x147   : > { %3644 = vmatpush.msra.mxu2 %v3840_v0  ;;  %3645 = vmatpush.msra.mxu3 %v3840_v0  ;;  %v3627_v1 = vld [vmem:[%s3866_s16 + $0x90] sm:$0xff]  ;;  %v3628_v2 = vld [vmem:[%s3866_s16 + $0x98] sm:$0xff]  ;;  %v3625_v3 = vld [vmem:[%s3866_s16 + $0x80] sm:$0xff] }
 0x148   : > { %3631 = vmatmul.msk.f32.vlgmr.msra.gmra.mxu2 %vm365_vm1, %v3627_v1  ;;  %3632 = vmatmul.msk.f32.vlgmr.msra.gmra.mxu3 %vm365_vm1, %v3628_v2  ;;  %v3626_v4 = vld [vmem:[%s3866_s16 + $0x88] sm:$0xff] }
 0x149   : > { %598 = vmatpush.msra.mxu0 %v3840_v0  ;;  %3643 = vmatpush.msra.mxu1 %v3840_v0 }
 0x14a   : > { %3629 = vmatmul.msk.f32.vlgmr.msra.gmra.mxu0 %vm365_vm1, %v3625_v3  ;;  %3630 = vmatmul.msk.f32.vlgmr.msra.gmra.mxu1 %vm365_vm1, %v3626_v4 }
 0x1c7   : > { %v600_v5 = vpop.f32.mrf.mxu0  ;;  %v603_v6 = vpop.f32.mrf.mxu1 }
 0x1c8   : > { %v601_v7 = vadd.f32 %v600_v5, %v3965_v19  ;;  %v604_v8 = vadd.f32 %v603_v6, %v3965_v19 }
 0x1ca   : > { %613 = vst.msk [vmem:[#allocation2 + $0xf2] sm:$0xff] %vm306_vm0, %v601_v7 }
 0x1cb   : > { %614 = vst.msk [vmem:[#allocation2 + $0xfa] sm:$0xff] %vm306_vm0, %v604_v8  ;;  %v606_v9 = vpop.f32.mrf.mxu2  ;;  %v609_v10 = vpop.f32.mrf.mxu3 }
 0x1cc   : > { %v607_v11 = vadd.f32 %v606_v9, %v3965_v19  ;;  %v610_v0 = vadd.f32 %v609_v10, %v3965_v19 }
 0x1ce   : > { %616 = vst.msk [vmem:[#allocation2 + $0x10a] sm:$0xff] %vm306_vm0, %v607_v11 }
 0x1cf   : > { %617 = vst.msk [vmem:[#allocation2 + $0x112] sm:$0xff] %vm306_vm0, %v610_v0 }
 0x1d0 PF: > { %v618_v12 = vld [vmem:[%s7083_s3] sm:$0x1f]  ;;  %v4042_v13 = vld [vmem:[#allocation2 + $0x18] sm:$0xff]  ;;  %vm742_vm3 = vcmask 1046528   ;;  %vm864_vm4 = vcmask 1045504   ;;  %vm986_vm5 = vcmask 1044480  }
 0x1d1   : > { %v4044_v14 = vld [vmem:[#allocation2 + $0x20] sm:$0xff]  ;;  %v4046_v15 = vperm.slane %v618_v12, 0  ;;  %v4048_v16 = vperm.slane %v618_v12, 1  ;;  %v4050_v17 = vperm.slane %v618_v12, 2  ;;  %v4052_v18 = vperm.slane %v618_v12, 3  ;;  %v4080_v30 = vld [vmem:[#allocation2 + $0x30] sm:$0xff] }
 0x1d2   : > { %7413 = vst [vmem:[#allocation3_spill] sm:$0xff] %v4044_v14  ;;  %v619_v22 = vld [vmem:[%s7083_s3 + $0x8] sm:$0x1f]  ;;  %v4078_v29 = vperm.slane %v618_v12, 4  ;;  %vm1108_vm6 = vcmask 1043456   ;;  %v4084_v35 = vld [vmem:[#allocation2 + $0x38] sm:$0xff] }
 0x1d3   : > { %7414 = vst [vmem:[#allocation4_spill] sm:$0xff] %v4046_v15  ;;  %v663_v19 = vmul.f32 %v4046_v15, %v4042_v13  ;;  %v697_v20 = vmul.f32 %v4048_v16, %v4042_v13  ;;  %v4060_v21 = vmul.f32 %v4048_v16, %v4044_v14  ;;  %v819_v23 = vmul.f32 %v4050_v17, %v4042_v13  ;;  %v620_v60 = vld [vmem:[%s7083_s3 + $0x10] sm:$0x1f]  ;;  %v4158_v12 = vld [vmem:[#allocation2 + $0x48] sm:$0xff]  ;;  %s3768_s7 = smov 120   ;;  %s3769_s10 = smov 112  }
 0x1d4   : > { %7415 = vst [vmem:[#allocation5_spill] sm:$0xff] %v4048_v16  ;;  %v4069_v24 = vmul.f32 %v4050_v17, %v4044_v14  ;;  %v941_v25 = vmul.f32 %v4052_v18, %v4042_v13  ;;  %v4075_v26 = vmul.f32 %v4052_v18, %v4044_v14  ;;  %v1063_v37 = vmul.f32 %v4078_v29, %v4042_v13 }
 0x1d5   : > { %7416 = vst [vmem:[#allocation6_spill] sm:$0xff] %v4050_v17  ;;  %v748_v27 = vrot.slane %v697_v20, 1  ;;  %v7097_v28 = vrot.slane %v4060_v21, 1  ;;  %v870_v31 = vrot.slane %v819_v23, 2  ;;  %v4093_v38 = vmul.f32 %v4078_v29, %v4044_v14 }
 0x1d6   : > { %7417 = vst [vmem:[#allocation7_spill] sm:$0xff] %v4052_v18  ;;  %v7096_v32 = vrot.slane %v4069_v24, 2  ;;  %v992_v33 = vrot.slane %v941_v25, 3  ;;  %v7095_v34 = vrot.slane %v4075_v26, 3  ;;  %v4095_v39 = vperm.slane %v619_v22, 0 }
 0x1d7   : > { %7418 = vst [vmem:[#allocation8_spill] sm:$0xff] %v4075_v26  ;;  %v750_v36 = vsel %vm742_vm3, %v748_v27, %v7097_v28  ;;  %v4103_v43 = vperm.slane %v619_v22, 1  ;;  %v1114_v44 = vrot.slane %v1063_v37, 4  ;;  %v7094_v45 = vrot.slane %v4093_v38, 4 }
 0x1d8   : > { %7419 = vst [vmem:[#allocation9_spill] sm:$0xff] %v4084_v35  ;;  %v801_v40 = vadd.f32 %v750_v36, %v663_v19  ;;  %v872_v41 = vsel %vm864_vm4, %v870_v31, %v7096_v32  ;;  %v994_v42 = vsel %vm986_vm5, %v992_v33, %v7095_v34  ;;  %v1184_v46 = vmul.f32 %v4095_v39, %v4080_v30  ;;  %v4160_v19 = vld [vmem:[#allocation2 + $0x50] sm:$0xff] }
 0x1d9   : > { %7420 = vst [vmem:[#allocation10_spill] sm:$0xff] %v4093_v38  ;;  %v4108_v47 = vperm.slane %v619_v22, 2  ;;  %v1218_v49 = vmul.f32 %v4103_v43, %v4080_v30  ;;  %v4114_v50 = vmul.f32 %v4103_v43, %v4084_v35  ;;  %v4116_v51 = vperm.slane %v619_v22, 3 }
 0x1da   : > { %v923_v48 = vadd.f32 %v872_v41, %v801_v40  ;;  %v1116_v52 = vsel %vm1108_vm6, %v1114_v44, %v7094_v45  ;;  %v4127_v55 = vperm.slane %v619_v22, 4  ;;  %v4154_v11 = vperm.slane %v620_v60, 1  ;;  %v621_v44 = vld [vmem:[%s7083_s3 + $0x18] sm:$0x1f] }
 0x1db   : > { %7421 = vst [vmem:[#allocation11_spill] sm:$0xff] %v4114_v50  ;;  %v1339_v53 = vmul.f32 %v4108_v47, %v4080_v30  ;;  %v4125_v54 = vmul.f32 %v4108_v47, %v4084_v35  ;;  %v1268_v57 = vrot.slane %v1218_v49, 1  ;;  %v7093_v58 = vrot.slane %v4114_v50, 1 }
 0x1dc   : > { %7422 = vst [vmem:[#allocation12_spill] sm:$0xff] %v4116_v51  ;;  %v1045_v56 = vadd.f32 %v994_v42, %v923_v48  ;;  %v1460_v59 = vmul.f32 %v4116_v51, %v4080_v30  ;;  %v4138_v63 = vmul.f32 %v4116_v51, %v4084_v35  ;;  %v1581_v1 = vmul.f32 %v4127_v55, %v4080_v30 }
 0x1dd   : > { %7423 = vst [vmem:[#allocation13_spill] sm:$0xff] %v4125_v54  ;;  %v1389_v61 = vrot.slane %v1339_v53, 2  ;;  %v7092_v62 = vrot.slane %v4125_v54, 2  ;;  %v4144_v4 = vmul.f32 %v4127_v55, %v4084_v35  ;;  %v1270_v5 = vsel %vm742_vm3, %v1268_v57, %v7093_v58  ;;  %v4309_v54 = vld [vmem:[#allocation2 + $0x8] sm:$0xff] }
 0x1de   : > { %7424 = vst [vmem:[#allocation14_spill] sm:$0xff] %v4138_v63  ;;  %v1167_v2 = vadd.f32 %v1116_v52, %v1045_v56  ;;  %v1510_v3 = vrot.slane %v1460_v59, 3  ;;  %v7091_v7 = vrot.slane %v4138_v63, 3  ;;  %v1631_v8 = vrot.slane %v1581_v1, 4 }
 0x1df   : > { %7425 = vst [vmem:[#allocation15_spill] sm:$0xff] %v4144_v4  ;;  %v1391_v6 = vsel %vm864_vm4, %v1389_v61, %v7092_v62  ;;  %v7090_v10 = vrot.slane %v4144_v4, 4  ;;  %v4156_v0 = vperm.slane %v620_v60, 2  ;;  %v4165_v22 = vperm.slane %v620_v60, 0 }
 0x1e0   : > { %v1200_v9 = vadd.f32 %v1184_v46, %v1167_v2  ;;  %7426 = vst [vmem:[#allocation16_spill] sm:$0xff] %v4154_v11  ;;  %v1512_v20 = vsel %vm986_vm5, %v1510_v3, %v7091_v7  ;;  %v4167_v23 = vperm.slane %v620_v60, 3  ;;  %v4169_v25 = vperm.slane %v620_v60, 4 }
 0x1e1   : > { %7427 = vst [vmem:[#allocation17_spill] sm:$0xff] %v4156_v0  ;;  %v1633_v31 = vsel %vm1108_vm6, %v1631_v8, %v7090_v10  ;;  %v1735_v33 = vmul.f32 %v4154_v11, %v4158_v12  ;;  %v4178_v36 = vmul.f32 %v4154_v11, %v4160_v19  ;;  %v1856_v37 = vmul.f32 %v4156_v0, %v4158_v12  ;;  %v4214_v8 = vld [vmem:[#allocation2 + $0x60] sm:$0xff] }
 0x1e2   : > { %7428 = vst [vmem:[#allocation18_spill] sm:$0xff] %v4165_v22  ;;  %v1321_v27 = vadd.f32 %v1270_v5, %v1200_v9  ;;  %v4184_v40 = vmul.f32 %v4156_v0, %v4160_v19  ;;  %v1977_v41 = vmul.f32 %v4167_v23, %v4158_v12  ;;  %v4190_v42 = vmul.f32 %v4167_v23, %v4160_v19  ;;  %v4216_v9 = vld [vmem:[#allocation2 + $0x68] sm:$0xff] }
 0x1e3   : > { %7429 = vst [vmem:[#allocation19_spill] sm:$0xff] %v4167_v23  ;;  %v1785_v48 = vrot.slane %v1735_v33, 1  ;;  %v7089_v49 = vrot.slane %v4178_v36, 1  ;;  %v2098_v52 = vmul.f32 %v4169_v25, %v4158_v12  ;;  %v1906_v53 = vrot.slane %v1856_v37, 2 }
 0x1e4   : > { %7430 = vst [vmem:[#allocation20_spill] sm:$0xff] %v4178_v36  ;;  %v1442_v46 = vadd.f32 %v1391_v6, %v1321_v27  ;;  %v7088_v56 = vrot.slane %v4184_v40, 2  ;;  %v2027_v57 = vrot.slane %v1977_v41, 3  ;;  %v7087_v59 = vrot.slane %v4190_v42, 3 }
 0x1e5   : > { %7431 = vst [vmem:[#allocation21_spill] sm:$0xff] %v4184_v40  ;;  %v1701_v61 = vmul.f32 %v4165_v22, %v4158_v12  ;;  %v4204_v1 = vmul.f32 %v4169_v25, %v4160_v19  ;;  %v1787_v2 = vsel %vm742_vm3, %v1785_v48, %v7089_v49  ;;  %v2148_v5 = vrot.slane %v2098_v52, 4  ;;  %v624_v40 = vld [vmem:[#allocation2] sm:$0xff] }
 0x1e6   : > { %7432 = vst [vmem:[#allocation22_spill] sm:$0xff] %v4190_v42  ;;  %v1563_v60 = vadd.f32 %v1512_v20, %v1442_v46  ;;  %v1908_v3 = vsel %vm864_vm4, %v1906_v53, %v7088_v56  ;;  %v4212_v6 = vperm.slane %v621_v44, 1  ;;  %v2029_v27 = vsel %vm986_vm5, %v2027_v57, %v7087_v59 }
 0x1e7   : > { %7433 = vst [vmem:[#allocation23_spill] sm:$0xff] %v4204_v1  ;;  %v4221_v33 = vperm.slane %v621_v44, 2  ;;  %v4223_v37 = vperm.slane %v621_v44, 3  ;;  %v4225_v41 = vperm.slane %v621_v44, 0  ;;  %v4233_v52 = vperm.slane %v621_v44, 4 }
 0x1e8   : > { %v1684_v20 = vadd.f32 %v1633_v31, %v1563_v60  ;;  %v2252_v46 = vmul.f32 %v4212_v6, %v4214_v8  ;;  %v4231_v48 = vmul.f32 %v4212_v6, %v4216_v9  ;;  %v7100_v53 = vrot.slane %v4204_v1, 4  ;;  %7447 = vst [vmem:[#allocation35_spill] sm:$0xff] %v4309_v54 }
 0x1e9   : > { %v2373_v57 = vmul.f32 %v4221_v33, %v4214_v8  ;;  %v4240_v60 = vmul.f32 %v4221_v33, %v4216_v9  ;;  %v2494_v49 = vmul.f32 %v4223_v37, %v4214_v8  ;;  %v4247_v44 = vmul.f32 %v4223_v37, %v4216_v9 }
 0x1ea   : > { %7434 = vst [vmem:[#allocation24_spill] sm:$0xff] %v4231_v48  ;;  %v1717_v31 = vadd.f32 %v1701_v61, %v1684_v20  ;;  %v2302_v59 = vrot.slane %v2252_v46, 1  ;;  %v7101_v56 = vrot.slane %v4231_v48, 1  ;;  %v622_v61 = vld [vmem:[%s7083_s3 + $0x20] sm:$0x1f]  ;;  %v2615_v46 = vmul.f32 %v4233_v52, %v4214_v8 }
 0x1eb   : > { %7435 = vst [vmem:[#allocation25_spill] sm:$0xff] %v4240_v60  ;;  %v2423_v10 = vrot.slane %v2373_v57, 2  ;;  %v7102_v7 = vrot.slane %v4240_v60, 2  ;;  %v2218_v62 = vmul.f32 %v4225_v41, %v4214_v8  ;;  %v2544_v58 = vrot.slane %v2494_v49, 3 }
 0x1ec   : > { %7436 = vst [vmem:[#allocation26_spill] sm:$0xff] %v4247_v44  ;;  %v1838_v20 = vadd.f32 %v1787_v2, %v1717_v31  ;;  %v4260_v34 = vmul.f32 %v4233_v52, %v4216_v9  ;;  %v2150_v2 = vsel %vm1108_vm6, %v2148_v5, %v7100_v53  ;;  %v2304_v31 = vsel %vm742_vm3, %v2302_v59, %v7101_v56 }
 0x1ed   : > { %v2425_v57 = vsel %vm864_vm4, %v2423_v10, %v7102_v7  ;;  %v2665_v49 = vrot.slane %v2615_v46, 4  ;;  %v4271_v28 = vperm.slane %v622_v61, 0  ;;  %v4273_v45 = vperm.slane %v622_v61, 1 }
 0x1ee   : > { %7437 = vst [vmem:[#allocation27_spill] sm:$0xff] %v4260_v34  ;;  %v1959_v32 = vadd.f32 %v1908_v3, %v1838_v20  ;;  %v4275_v42 = vperm.slane %v622_v61, 2  ;;  %v639_v3 = vld [vmem:[#allocation2 + $0x78] sm:$0xff]  ;;  %v4277_v20 = vld [vmem:[#allocation2 + $0x80] sm:$0xff]  ;;  %v4280_v53 = vperm.slane %v622_v61, 3  ;;  %v4282_v59 = vperm.slane %v622_v61, 4 }
 0x1ef   : > { %7438 = vst [vmem:[#allocation28_spill] sm:$0xff] %v4271_v28  ;;  %v7443_v56 = vrot.slane %v4247_v44, 3  ;;  %v2769_v46 = vmul.f32 %v4273_v45, %v639_v3  ;;  %v4290_v7 = vmul.f32 %v4273_v45, %v4277_v20  ;;  %v2735_v4 = vmul.f32 %v4271_v28, %v639_v3 }
 0x1f0   : > { %7439 = vst [vmem:[#allocation29_spill] sm:$0xff] %v4275_v42  ;;  %v2080_v1 = vadd.f32 %v2029_v27, %v1959_v32  ;;  %v2890_v60 = vmul.f32 %v4275_v42, %v639_v3  ;;  %v4295_v32 = vmul.f32 %v4275_v42, %v4277_v20  ;;  %v3011_v27 = vmul.f32 %v4280_v53, %v639_v3 }
 0x1f1   : > { %7440 = vst [vmem:[#allocation30_spill] sm:$0xff] %v4277_v20  ;;  %v2546_v10 = vsel %vm986_vm5, %v2544_v58, %v7443_v56  ;;  %v4300_v61 = vmul.f32 %v4280_v53, %v4277_v20  ;;  %v2819_v58 = vrot.slane %v2769_v46, 1  ;;  %v7113_v56 = vrot.slane %v4290_v7, 1 }
 0x1f2   : > { %7441 = vst [vmem:[#allocation31_spill] sm:$0xff] %v4280_v53  ;;  %v2201_v48 = vadd.f32 %v2150_v2, %v2080_v1  ;;  %v2940_v5 = vrot.slane %v2890_v60, 2  ;;  %v3132_v44 = vmul.f32 %v4282_v59, %v639_v3  ;;  %v7446_v1 = vrot.slane %v4260_v34, 4 }
 0x1f3   : > { %7442 = vst [vmem:[#allocation32_spill] sm:$0xff] %v4282_v59  ;;  %v7114_v63 = vrot.slane %v4295_v32, 2  ;;  %v2821_v46 = vsel %vm742_vm3, %v2819_v58, %v7113_v56  ;;  %v3061_v50 = vrot.slane %v3011_v27, 3  ;;  %v694_v3 = vmul.f32 %v4048_v16, %v624_v40 }
 0x1f4   : > { %7444 = vst [vmem:[#allocation33_spill] sm:$0xff] %v4290_v7  ;;  %v2234_v36 = vadd.f32 %v2218_v62, %v2201_v48  ;;  %v2667_v2 = vsel %vm1108_vm6, %v2665_v49, %v7446_v1  ;;  %v4317_v62 = vmul.f32 %v4282_v59, %v4277_v20  ;;  %v3182_v34 = vrot.slane %v3132_v44, 4 }
 0x1f5   : > { %7445 = vst [vmem:[#allocation34_spill] sm:$0xff] %v4295_v32  ;;  %v661_v49 = vmul.f32 %v4046_v15, %v624_v40  ;;  %v2942_v1 = vsel %vm864_vm4, %v2940_v5, %v7114_v63  ;;  %v4326_v58 = vmul.f32 %v4048_v16, %v4309_v54  ;;  %v816_v27 = vmul.f32 %v4050_v17, %v624_v40 }
 0x1f6   : > { %7448 = vst [vmem:[#allocation36_spill] sm:$0xff] %v4317_v62  ;;  %v2355_v48 = vadd.f32 %v2304_v31, %v2234_v36  ;;  %v4331_v56 = vmul.f32 %v4050_v17, %v4309_v54  ;;  %v743_v44 = vrot.slane %v694_v3, 1  ;;  %v938_v31 = vmul.f32 %v4052_v18, %v624_v40 }
 0x1f7   : > { %7449 = vst [vmem:[#allocation37_spill] sm:$0xff] %v4326_v58  ;;  %v4336_v60 = vmul.f32 %v4052_v18, %v4309_v54  ;;  %v7121_v63 = vrot.slane %v4326_v58, 1  ;;  %v865_v32 = vrot.slane %v816_v27, 2  ;;  %v4351_v5 = vmul.f32 %v4078_v29, %v4309_v54 }
 0x1f8   : > { %7450 = vst [vmem:[#allocation38_spill] sm:$0xff] %v4331_v56  ;;  %v2476_v36 = vadd.f32 %v2425_v57, %v2355_v48  ;;  %v7122_v7 = vrot.slane %v4331_v56, 2  ;;  %v987_v38 = vrot.slane %v938_v31, 3  ;;  %v1060_v57 = vmul.f32 %v4078_v29, %v624_v40 }
 0x1f9   : > { %7451 = vst [vmem:[#allocation39_spill] sm:$0xff] %v4336_v60  ;;  %v7124_v26 = vrot.slane %v4336_v60, 3  ;;  %v745_v48 = vsel %vm742_vm3, %v743_v44, %v7121_v63  ;;  %v7131_v44 = vrot.slane %v4351_v5, 4  ;;  %v1215_v63 = vmul.f32 %v4103_v43, %v4042_v13 }
 0x1fa   : > { %v2597_v20 = vadd.f32 %v2546_v10, %v2476_v36  ;;  %v867_v3 = vsel %vm864_vm4, %v865_v32, %v7122_v7  ;;  %7452 = vst [vmem:[#allocation40_spill] sm:$0xff] %v4351_v5  ;;  %v1182_v10 = vmul.f32 %v4095_v39, %v4042_v13  ;;  %v799_v36 = vadd.f32 %v745_v48, %v661_v49 }
 0x1fb   : > { %v989_v40 = vsel %vm986_vm5, %v987_v38, %v7124_v26  ;;  %v1109_v31 = vrot.slane %v1060_v57, 4  ;;  %v4363_v32 = vmul.f32 %v4103_v43, %v4044_v14  ;;  %v1336_v7 = vmul.f32 %v4108_v47, %v4042_v13 }
 0x1fc   : > { %v2718_v27 = vadd.f32 %v2667_v2, %v2597_v20  ;;  %v921_v20 = vadd.f32 %v867_v3, %v799_v36  ;;  %v4369_v2 = vmul.f32 %v4108_v47, %v4044_v14  ;;  %v1457_v38 = vmul.f32 %v4116_v51, %v4042_v13 }
 0x1fd   : > { %7453 = vst [vmem:[#allocation41_spill] sm:$0xff] %v4363_v32  ;;  %v1111_v49 = vsel %vm1108_vm6, %v1109_v31, %v7131_v44  ;;  %v1263_v57 = vrot.slane %v1215_v63, 1  ;;  %v7129_v48 = vrot.slane %v4363_v32, 1  ;;  %v1384_v26 = vrot.slane %v1336_v7, 2 }
 0x1fe   : > { %v2751_v56 = vadd.f32 %v2735_v4, %v2718_v27  ;;  %7454 = vst [vmem:[#allocation42_spill] sm:$0xff] %v4369_v2  ;;  %v1043_v58 = vadd.f32 %v989_v40, %v921_v20  ;;  %v7128_v4 = vrot.slane %v4369_v2, 2  ;;  %v4380_v3 = vmul.f32 %v4116_v51, %v4044_v14 }
 0x1ff   : > { %v7456_v27 = vrot.slane %v4300_v61, 3  ;;  %v1505_v54 = vrot.slane %v1457_v38, 3  ;;  %v1578_v31 = vmul.f32 %v4127_v55, %v4042_v13  ;;  %v4389_v63 = vmul.f32 %v4127_v55, %v4044_v14 }
 0x200   : > { %v2872_v60 = vadd.f32 %v2821_v46, %v2751_v56  ;;  %7455 = vst [vmem:[#allocation43_spill] sm:$0xff] %v4380_v3  ;;  %v7458_v56 = vrot.slane %v4317_v62, 4  ;;  %v1165_v40 = vadd.f32 %v1111_v49, %v1043_v58  ;;  %v7130_v20 = vrot.slane %v4380_v3, 3 }
 0x201   : > { %v3063_v36 = vsel %vm986_vm5, %v3061_v50, %v7456_v27  ;;  %7457 = vst [vmem:[#allocation44_spill] sm:$0xff] %v4389_v63  ;;  %v1265_v50 = vsel %vm742_vm3, %v1263_v57, %v7129_v48  ;;  %v1386_v13 = vsel %vm864_vm4, %v1384_v26, %v7128_v4  ;;  %v1626_v38 = vrot.slane %v1578_v31, 4 }
 0x202   : > { %v2993_v7 = vadd.f32 %v2942_v1, %v2872_v60  ;;  %v3184_v46 = vsel %vm1108_vm6, %v3182_v34, %v7458_v56  ;;  %v1732_v27 = vmul.f32 %v4154_v11, %v4080_v30  ;;  %v4406_v34 = vld [vmem:[%s7084_s4] ss:$0 sm:$0xff]  ;;  %v1198_v1 = vadd.f32 %v1182_v10, %v1165_v40 }
 0x203   : > { %7459 = vst [vmem:[#allocation45_spill] sm:$0xff] %v4406_v34  ;;  %v7133_v58 = vrot.slane %v4389_v63, 4  ;;  %v4411_v49 = vmul.f32 %v4154_v11, %v4084_v35  ;;  %v1507_v26 = vsel %vm986_vm5, %v1505_v54, %v7130_v20  ;;  %v4420_v31 = vmul.f32 %v4156_v0, %v4084_v35 }
 0x204   : > { %v3114_v60 = vadd.f32 %v3063_v36, %v2993_v7  ;;  %v1780_v57 = vrot.slane %v1732_v27, 1  ;;  %v1853_v36 = vmul.f32 %v4156_v0, %v4080_v30  ;;  %v1319_v10 = vadd.f32 %v1265_v50, %v1198_v1 }
 0x205   : > { %7460 = vst [vmem:[#allocation46_spill] sm:$0xff] %v4411_v49  ;;  %v7132_v56 = vrot.slane %v4411_v49, 1  ;;  %v1974_v40 = vmul.f32 %v4167_v23, %v4080_v30  ;;  %v4428_v54 = vmul.f32 %v4167_v23, %v4084_v35  ;;  %v2095_v27 = vmul.f32 %v4169_v25, %v4080_v30 }
 0x206   : > { %7461 = vst [vmem:[#allocation47_spill] sm:$0xff] %v4420_v31  ;;  %v3235_v7 = vadd.f32 %v3184_v46, %v3114_v60  ;;  %v1901_v4 = vrot.slane %v1853_v36, 2  ;;  %v1440_v46 = vadd.f32 %v1386_v13, %v1319_v10  ;;  %v1628_v50 = vsel %vm1108_vm6, %v1626_v38, %v7133_v58 }
 0x207   : > { %7462 = vst [vmem:[#allocation48_spill] sm:$0xff] %v4428_v54  ;;  %v1699_v60 = vmul.f32 %v4165_v22, %v4080_v30  ;;  %v1782_v1 = vsel %vm742_vm3, %v1780_v57, %v7132_v56  ;;  %v2022_v36 = vrot.slane %v1974_v40, 3  ;;  %v4446_v48 = vmul.f32 %v4169_v25, %v4084_v35 }
 0x208   : > { %v4433_v20 = vadd.f32 %v4406_v34, %v3235_v7  ;;  %v1561_v13 = vadd.f32 %v1507_v26, %v1440_v46  ;;  %v2143_v38 = vrot.slane %v2095_v27, 4  ;;  %v2249_v30 = vmul.f32 %v4212_v6, %v4158_v12 }
 0x209   : > { %7464 = vst [vmem:[#allocation50_spill] sm:$0xff] %v4446_v48  ;;  %v4454_v7 = vmul.f32 %v4212_v6, %v4160_v19  ;;  %v7466_v57 = vrot.slane %v4420_v31, 2  ;;  %v2370_v56 = vmul.f32 %v4221_v33, %v4158_v12  ;;  %v4464_v26 = vmul.f32 %v4221_v33, %v4160_v19 }
 0x20a   : > { %7463 = vst [vmem:[#allocation49_spill] sm:$0xff] %v4433_v20  ;;  %3288 = vrot.lane.b32.xlu1 %v4433_v20, %s3768_s7  ;;  %v1682_v27 = vadd.f32 %v1628_v50, %v1561_v13  ;;  %v2297_v46 = vrot.slane %v2249_v30, 1  ;;  %v2491_v44 = vmul.f32 %v4223_v37, %v4158_v12  ;;  %v2216_v20 = vmul.f32 %v4225_v41, %v4158_v12 }
 0x20b   : > { %7465 = vst [vmem:[#allocation51_spill] sm:$0xff] %v4454_v7  ;;  %v1903_v10 = vsel %vm864_vm4, %v1901_v4, %v7466_v57  ;;  %v2418_v4 = vrot.slane %v2370_v56, 2  ;;  %v4474_v40 = vmul.f32 %v4223_v37, %v4160_v19  ;;  %v7469_v49 = vrot.slane %v4428_v54, 3 }
 0x20c   : > { %7467 = vst [vmem:[#allocation52_spill] sm:$0xff] %v4464_v26  ;;  %v1715_v31 = vadd.f32 %v1699_v60, %v1682_v27  ;;  %v7470_v13 = vrot.slane %v4446_v48, 4  ;;  %v2612_v58 = vmul.f32 %v4233_v52, %v4158_v12  ;;  %v7471_v56 = vrot.slane %v4454_v7, 1  ;;  %v4520_v7 = vld [vmem:[#allocation2 + $0x28] sm:$0xf] }
 0x20d   : > { %7468 = vst [vmem:[#allocation53_spill] sm:$0xff] %v4474_v40  ;;  %v2024_v50 = vsel %vm986_vm5, %v2022_v36, %v7469_v49  ;;  %v7472_v63 = vrot.slane %v4464_v26, 2  ;;  %v2539_v60 = vrot.slane %v2491_v44, 3  ;;  %v4492_v27 = vmul.f32 %v4233_v52, %v4160_v19 }
 0x20e   : > { %v2145_v30 = vsel %vm1108_vm6, %v2143_v38, %v7470_v13  ;;  %v2299_v57 = vsel %vm742_vm3, %v2297_v46, %v7471_v56  ;;  %v1836_v49 = vadd.f32 %v1782_v1, %v1715_v31  ;;  %v2766_v38 = vmul.f32 %v4273_v45, %v4214_v8 }
 0x20f   : > { %v2420_v3 = vsel %vm864_vm4, %v2418_v4, %v7472_v63  ;;  %7473 = vst [vmem:[#allocation54_spill] sm:$0xff] %v4492_v27  ;;  %v4499_v12 = vmul.f32 %v4273_v45, %v4216_v9  ;;  %v2660_v46 = vrot.slane %v2612_v58, 4  ;;  %v2887_v44 = vmul.f32 %v4275_v42, %v4214_v8 }
 0x210   : > { %v4506_v63 = vmul.f32 %v4275_v42, %v4216_v9  ;;  %v1957_v31 = vadd.f32 %v1903_v10, %v1836_v49  ;;  %v2814_v1 = vrot.slane %v2766_v38, 1  ;;  %v3008_v56 = vmul.f32 %v4280_v53, %v4214_v8 }
 0x211   : > { %7474 = vst [vmem:[#allocation55_spill] sm:$0xff] %v4499_v12  ;;  %v4513_v36 = vmul.f32 %v4271_v28, %v4214_v8  ;;  %v2935_v58 = vrot.slane %v2887_v44, 2  ;;  %v4518_v26 = vmul.f32 %v4280_v53, %v4216_v9  ;;  %v7477_v49 = vrot.slane %v4474_v40, 3 }
 0x212   : > { %7475 = vst [vmem:[#allocation56_spill] sm:$0xff] %v4506_v63  ;;  %v2078_v10 = vadd.f32 %v2024_v50, %v1957_v31  ;;  %v3056_v4 = vrot.slane %v3008_v56, 3  ;;  %v3129_v48 = vmul.f32 %v4282_v59, %v4214_v8  ;;  %v7478_v54 = vrot.slane %v4492_v27, 4  ;;  %v4543_v8 = vld [vmem:[#allocation2 + $0x40] sm:$0xf] }
 0x213   : > { %7476 = vst [vmem:[#allocation57_spill] sm:$0xff] %v4518_v26  ;;  %v2541_v38 = vsel %vm986_vm5, %v2539_v60, %v7477_v49  ;;  %v7479_v13 = vrot.slane %v4499_v12, 1  ;;  %v7153_v32 = vrot.slane %v4518_v26, 3  ;;  %v4536_v50 = vmul.f32 %v4282_v59, %v4216_v9 }
 0x214   : > { %v2662_v44 = vsel %vm1108_vm6, %v2660_v46, %v7478_v54  ;;  %v2199_v31 = vadd.f32 %v2145_v30, %v2078_v10  ;;  %v7481_v60 = vrot.slane %v4506_v63, 2  ;;  %7482 = vst [vmem:[#allocation59_spill] sm:$0xff] %v4543_v8  ;;  %v699_v54 = vmul.f32 %v4048_v16, %v4520_v7 }
 0x215   : > { %v2816_v2 = vsel %vm742_vm3, %v2814_v1, %v7479_v13  ;;  %7480 = vst [vmem:[#allocation58_spill] sm:$0xff] %v4536_v50  ;;  %v821_v46 = vmul.f32 %v4050_v17, %v4520_v7  ;;  %v3177_v13 = vrot.slane %v3129_v48, 4  ;;  %v664_v1 = vmul.f32 %v4046_v15, %v4044_v14 }
 0x216   : > { %v4541_v56 = vsel %vm864_vm4, %v2935_v58, %v7481_v60  ;;  %v943_v30 = vmul.f32 %v4052_v18, %v4520_v7  ;;  %v1065_v10 = vmul.f32 %v4078_v29, %v4520_v7  ;;  %v2232_v58 = vadd.f32 %v2216_v20, %v2199_v31 }
 0x217   : > { %v4558_v49 = vsel %vm986_vm5, %v3056_v4, %v7153_v32  ;;  %v751_v60 = vrot.slane %v699_v54, 1  ;;  %v873_v63 = vrot.slane %v821_v46, 2  ;;  %v7158_v12 = vrot.slane %v4536_v50, 4  ;;  %v7485_v46 = vld [vmem:[#allocation8_spill] sm:$0xff] }
 0x218   : > { %v995_v48 = vrot.slane %v943_v30, 3  ;;  %v1117_v27 = vrot.slane %v1065_v10, 4  ;;  %v1220_v40 = vmul.f32 %v4103_v43, %v4543_v8  ;;  %v2353_v5 = vadd.f32 %v2299_v57, %v2232_v58  ;;  %v7499_v50 = vld [vmem:[#allocation20_spill] sm:$0xff] }
 0x219   : > { %v7483_v14 = vrot.slane %v4060_v21, 1  ;;  %v7484_v20 = vrot.slane %v4069_v24, 2  ;;  %v1341_v4 = vmul.f32 %v4108_v47, %v4543_v8  ;;  %v7486_v32 = vrot.slane %v7485_v46, 3  ;;  %v4576_v21 = vld [vmem:[#allocation2 + $0x58] sm:$0xf] }
 0x21a   : > { %v1185_v10 = vmul.f32 %v4095_v39, %v4084_v35  ;;  %v1271_v57 = vrot.slane %v1220_v40, 1  ;;  %v2474_v58 = vadd.f32 %v2420_v3, %v2353_v5  ;;  %7487 = vst [vmem:[#allocation8_spill] sm:$0xff] %v4576_v21  ;;  %v1462_v24 = vmul.f32 %v4116_v51, %v4543_v8  ;;  %v7490_v40 = vld [vmem:[#allocation11_spill] sm:$0xff] }
 0x21b   : > { %v752_v62 = vsel %vm742_vm3, %v7483_v14, %v751_v60  ;;  %v874_v31 = vsel %vm864_vm4, %v7484_v20, %v873_v63  ;;  %v996_v30 = vsel %vm986_vm5, %v7486_v32, %v995_v48  ;;  %v1392_v14 = vrot.slane %v1341_v4, 2  ;;  %v7488_v32 = vld [vmem:[#allocation10_spill] sm:$0xff] }
 0x21c   : > { %v802_v54 = vadd.f32 %v752_v62, %v664_v1  ;;  %v1583_v63 = vmul.f32 %v4127_v55, %v4543_v8  ;;  %v3179_v62 = vsel %vm1108_vm6, %v3177_v13, %v7158_v12  ;;  %v7489_v60 = vrot.slane %v7488_v32, 4 }
 0x21d   : > { %v1737_v5 = vmul.f32 %v4154_v11, %v4576_v21  ;;  %v2595_v3 = vadd.f32 %v2541_v38, %v2474_v58  ;;  %v7491_v20 = vrot.slane %v7490_v40, 1  ;;  %v1513_v46 = vrot.slane %v1462_v24, 3  ;;  %v4604_v58 = vld [vmem:[#allocation2 + $0x70] sm:$0xf]  ;;  %v7495_v24 = vld [vmem:[#allocation14_spill] sm:$0xff] }
 0x21e   : > { %v924_v1 = vadd.f32 %v874_v31, %v802_v54  ;;  %v1118_v48 = vsel %vm1108_vm6, %v7489_v60, %v1117_v27  ;;  %v1634_v26 = vrot.slane %v1583_v63, 4  ;;  %v1858_v13 = vmul.f32 %v4156_v0, %v4576_v21  ;;  %v7492_v27 = vld [vmem:[#allocation13_spill] sm:$0xff]  ;;  %7494 = vst [vmem:[#allocation10_spill] sm:$0xff] %v4604_v58 }
 0x21f   : > { %v1272_v4 = vsel %vm742_vm3, %v7491_v20, %v1271_v57  ;;  %v1788_v8 = vrot.slane %v1737_v5, 1  ;;  %v1979_v31 = vmul.f32 %v4167_v23, %v4576_v21  ;;  %v2716_v54 = vadd.f32 %v2662_v44, %v2595_v3  ;;  %v7497_v3 = vld [vmem:[#allocation15_spill] sm:$0xff] }
 0x220   : > { %v1046_v35 = vadd.f32 %v996_v30, %v924_v1  ;;  %v7493_v32 = vrot.slane %v7492_v27, 2  ;;  %v1702_v38 = vmul.f32 %v4165_v22, %v4160_v19  ;;  %v2100_v57 = vmul.f32 %v4169_v25, %v4576_v21 }
 0x221   : > { %v7496_v63 = vrot.slane %v7495_v24, 3  ;;  %v1909_v5 = vrot.slane %v1858_v13, 2  ;;  %v2030_v40 = vrot.slane %v1979_v31, 3  ;;  %v2749_v44 = vadd.f32 %v4513_v36, %v2716_v54  ;;  %v7501_v13 = vld [vmem:[#allocation21_spill] sm:$0xff] }
 0x222   : > { %v1393_v60 = vsel %vm864_vm4, %v7493_v32, %v1392_v14  ;;  %v1168_v30 = vadd.f32 %v1118_v48, %v1046_v35  ;;  %v7498_v20 = vrot.slane %v7497_v3, 4  ;;  %v2151_v27 = vrot.slane %v2100_v57, 4  ;;  %v4629_v57 = vld [vmem:[#allocation2 + $0x88] sm:$0xf] }
 0x223   : > { %v1514_v1 = vsel %vm986_vm5, %v7496_v63, %v1513_v46  ;;  %v2254_v32 = vmul.f32 %v4212_v6, %v4604_v58  ;;  %v7500_v21 = vrot.slane %v7499_v50, 1  ;;  %v4620_v48 = vmul.f32 %v4225_v41, %v4216_v9  ;;  %7503 = vst [vmem:[#allocation11_spill] sm:$0xff] %v4629_v57 }
 0x224   : > { %v1635_v14 = vsel %vm1108_vm6, %v7498_v20, %v1634_v26  ;;  %v1201_v12 = vadd.f32 %v1185_v10, %v1168_v30  ;;  %v2375_v36 = vmul.f32 %v4221_v33, %v4604_v58  ;;  %v2870_v46 = vadd.f32 %v2816_v2, %v2749_v44  ;;  %v7506_v44 = vld [vmem:[#allocation23_spill] sm:$0xff] }
 0x225   : > { %v1789_v35 = vsel %vm742_vm3, %v7500_v21, %v1788_v8  ;;  %v7502_v31 = vrot.slane %v7501_v13, 2  ;;  %v2305_v54 = vrot.slane %v2254_v32, 1  ;;  %v2496_v10 = vmul.f32 %v4223_v37, %v4604_v58  ;;  %v7504_v8 = vld [vmem:[#allocation22_spill] sm:$0xff] }
 0x226   : > { %v1322_v50 = vadd.f32 %v1272_v4, %v1201_v12  ;;  %v7505_v21 = vrot.slane %v7504_v8, 3  ;;  %v2426_v24 = vrot.slane %v2375_v36, 2  ;;  %v2617_v63 = vmul.f32 %v4233_v52, %v4604_v58  ;;  %v7508_v4 = vld [vmem:[#allocation30_spill] sm:$0xff] }
 0x227   : > { %v1910_v26 = vsel %vm864_vm4, %v7502_v31, %v1909_v5  ;;  %v2991_v2 = vadd.f32 %v4541_v56, %v2870_v46  ;;  %v7507_v3 = vrot.slane %v7506_v44, 4  ;;  %v2547_v20 = vrot.slane %v2496_v10, 3  ;;  %v7510_v56 = vld [vmem:[#allocation24_spill] sm:$0xff] }
 0x228   : > { %v2031_v30 = vsel %vm986_vm5, %v7505_v21, %v2030_v40  ;;  %v2771_v32 = vmul.f32 %v4273_v45, %v4629_v57  ;;  %v1443_v13 = vadd.f32 %v1393_v60, %v1322_v50  ;;  %v2668_v12 = vrot.slane %v2617_v63, 4  ;;  %v626_v60 = vld [vmem:[#allocation2 + $0x10] sm:$0xf] }
 0x229   : > { %v2152_v5 = vsel %vm1108_vm6, %v7507_v3, %v2151_v27  ;;  %v4644_v31 = vmul.f32 %v4271_v28, %v7508_v4  ;;  %v2892_v40 = vmul.f32 %v4275_v42, %v4629_v57  ;;  %v3112_v36 = vadd.f32 %v4558_v49, %v2991_v2  ;;  %v7512_v21 = vld [vmem:[#allocation25_spill] sm:$0xff] }
 0x22a   : > { %v7511_v46 = vrot.slane %v7510_v56, 1  ;;  %v2822_v27 = vrot.slane %v2771_v32, 1  ;;  %v3013_v10 = vmul.f32 %v4280_v53, %v4629_v57  ;;  %v1564_v50 = vadd.f32 %v1514_v1, %v1443_v13  ;;  %v7514_v56 = vld [vmem:[#allocation26_spill] sm:$0xff]  ;;  %v7516_v32 = vld [vmem:[#allocation27_spill] sm:$0xff] }
 0x22b   : > { %7509 = vst [vmem:[#allocation13_spill] sm:$0xff] %v4644_v31  ;;  %v7513_v63 = vrot.slane %v7512_v21, 2  ;;  %v2943_v3 = vrot.slane %v2892_v40, 2  ;;  %v3134_v49 = vmul.f32 %v4282_v59, %v4629_v57  ;;  %v3233_v2 = vadd.f32 %v3179_v62, %v3112_v36  ;;  %v7518_v21 = vld [vmem:[#allocation33_spill] sm:$0xff] }
 0x22c   : > { %v4652_v8 = vsel %vm742_vm3, %v7511_v46, %v2305_v54  ;;  %v7515_v4 = vrot.slane %v7514_v56, 3  ;;  %v7517_v46 = vrot.slane %v7516_v32, 4  ;;  %v3064_v1 = vrot.slane %v3013_v10, 3 }
 0x22d   : > { %v4659_v44 = vsel %vm864_vm4, %v7513_v63, %v2426_v24  ;;  %v1685_v13 = vadd.f32 %v1635_v14, %v1564_v50  ;;  %v7519_v24 = vrot.slane %v7518_v21, 1  ;;  %v7520_v63 = vld [vmem:[#allocation35_spill] sm:$0xff]  ;;  %v696_v36 = vmul.f32 %v4048_v16, %v626_v60  ;;  %v7522_v14 = vld [vmem:[#allocation34_spill] sm:$0xff] }
 0x22e   : > { %v4666_v54 = vsel %vm986_vm5, %v7515_v4, %v2547_v20  ;;  %v4671_v31 = vsel %vm1108_vm6, %v7517_v46, %v2668_v12  ;;  %v662_v62 = vmul.f32 %v4046_v15, %v7520_v63  ;;  %v4682_v20 = vadd.f32 %v4406_v34, %v3233_v2  ;;  %v7525_v63 = vld [vmem:[#allocation37_spill] sm:$0xff] }
 0x22f   : > { %v4676_v40 = vsel %vm742_vm3, %v7519_v24, %v2822_v27  ;;  %v3185_v4 = vrot.slane %v3134_v49, 4  ;;  %v818_v56 = vmul.f32 %v4050_v17, %v626_v60  ;;  %v940_v12 = vmul.f32 %v4052_v18, %v626_v60 }
 0x230   : > { %7521 = vst [vmem:[#allocation14_spill] sm:$0xff] %v4682_v20  ;;  %v1718_v10 = vadd.f32 %v1702_v38, %v1685_v13  ;;  %v7523_v50 = vrot.slane %v7522_v14, 2  ;;  %v746_v27 = vrot.slane %v696_v36, 1  ;;  %v1062_v46 = vmul.f32 %v4078_v29, %v626_v60  ;;  %3284 = vrot.lane.b32.xlu0 %v4682_v20, %s3768_s7 }
 0x231   : > { %v7524_v2 = vrot.slane %v4300_v61, 3  ;;  %v868_v21 = vrot.slane %v818_v56, 2  ;;  %v990_v24 = vrot.slane %v940_v12, 3  ;;  %v1217_v38 = vmul.f32 %v4103_v43, %v4520_v7  ;;  %v7529_v56 = vld [vmem:[#allocation38_spill] sm:$0xff] }
 0x232   : > { %v4689_v32 = vsel %vm864_vm4, %v7523_v50, %v2943_v3  ;;  %v1839_v13 = vadd.f32 %v1789_v35, %v1718_v10  ;;  %v7526_v3 = vrot.slane %v7525_v63, 1  ;;  %v1112_v14 = vrot.slane %v1062_v46, 4  ;;  %v7527_v50 = vld [vmem:[#allocation36_spill] sm:$0xff]  ;;  %v7531_v10 = vld [vmem:[#allocation39_spill] sm:$0xff] }
 0x233   : > { %v4697_v49 = vsel %vm986_vm5, %v7524_v2, %v3064_v1  ;;  %v1338_v60 = vmul.f32 %v4108_v47, %v4520_v7  ;;  %v7528_v20 = vrot.slane %v7527_v50, 4  ;;  %v7530_v12 = vrot.slane %v7529_v56, 2  ;;  %v7533_v46 = vld [vmem:[#allocation3_spill] sm:$0xff] }
 0x234   : > { %v747_v36 = vsel %vm742_vm3, %v7526_v3, %v746_v27  ;;  %v1266_v57 = vrot.slane %v1217_v38, 1  ;;  %v1960_v35 = vadd.f32 %v1910_v26, %v1839_v13  ;;  %v7532_v63 = vrot.slane %v7531_v10, 3  ;;  %v7536_v38 = vld [vmem:[#allocation41_spill] sm:$0xff] }
 0x235   : > { %v4709_v61 = vsel %vm1108_vm6, %v7528_v20, %v3185_v4  ;;  %v800_v1 = vadd.f32 %v747_v36, %v662_v62  ;;  %v869_v2 = vsel %vm864_vm4, %v7530_v12, %v868_v21  ;;  %v1183_v3 = vmul.f32 %v4095_v39, %v7533_v46  ;;  %v7534_v20 = vld [vmem:[#allocation40_spill] sm:$0xff]  ;;  %v7538_v12 = vld [vmem:[#allocation59_spill] sm:$0xff] }
 0x236   : > { %v991_v27 = vsel %vm986_vm5, %v7532_v63, %v990_v24  ;;  %v1459_v50 = vmul.f32 %v4116_v51, %v4520_v7  ;;  %v7535_v4 = vrot.slane %v7534_v20, 4  ;;  %v1387_v36 = vrot.slane %v1338_v60, 2 }
 0x237   : > { %v922_v34 = vadd.f32 %v869_v2, %v800_v1  ;;  %v1580_v21 = vmul.f32 %v4127_v55, %v4520_v7  ;;  %v2081_v26 = vadd.f32 %v2031_v30, %v1960_v35  ;;  %v7537_v13 = vrot.slane %v7536_v38, 1  ;;  %v7539_v2 = vld [vmem:[#allocation9_spill] sm:$0xff]  ;;  %v7542_v38 = vld [vmem:[#allocation43_spill] sm:$0xff] }
 0x238   : > { %v1113_v62 = vsel %vm1108_vm6, %v7535_v4, %v1112_v14  ;;  %v1508_v56 = vrot.slane %v1459_v50, 3  ;;  %v1734_v10 = vmul.f32 %v4154_v11, %v7538_v12  ;;  %v1855_v1 = vmul.f32 %v4156_v0, %v7538_v12  ;;  %v7540_v50 = vld [vmem:[#allocation42_spill] sm:$0xff] }
 0x239   : > { %v1267_v24 = vsel %vm742_vm3, %v7537_v13, %v1266_v57  ;;  %v1044_v63 = vadd.f32 %v991_v27, %v922_v34  ;;  %v1629_v46 = vrot.slane %v1580_v21, 4  ;;  %v1976_v14 = vmul.f32 %v4167_v23, %v7538_v12 }
 0x23a   : > { %v2202_v60 = vadd.f32 %v2152_v5, %v2081_v26  ;;  %v1700_v7 = vmul.f32 %v4165_v22, %v7539_v2  ;;  %v1783_v30 = vrot.slane %v1734_v10, 1  ;;  %v2097_v57 = vmul.f32 %v4169_v25, %v7538_v12  ;;  %v7544_v26 = vld [vmem:[#allocation44_spill] sm:$0xff]  ;;  %v7546_v2 = vld [vmem:[#allocation46_spill] sm:$0xff] }
 0x23b   : > { %v1166_v35 = vadd.f32 %v1113_v62, %v1044_v63  ;;  %v7541_v20 = vrot.slane %v7540_v50, 2  ;;  %v1904_v27 = vrot.slane %v1855_v1, 2  ;;  %v2025_v4 = vrot.slane %v1976_v14, 3  ;;  %v7548_v1 = vld [vmem:[#allocation8_spill] sm:$0xff] }
 0x23c   : > { %v2235_v21 = vadd.f32 %v4620_v48, %v2202_v60  ;;  %v7543_v13 = vrot.slane %v7542_v38, 3  ;;  %v7545_v23 = vrot.slane %v7544_v26, 4  ;;  %v7547_v22 = vrot.slane %v7546_v2, 1  ;;  %v7553_v26 = vld [vmem:[#allocation50_spill] sm:$0xff] }
 0x23d   : > { %v1388_v34 = vsel %vm864_vm4, %v7541_v20, %v1387_v36  ;;  %v1199_v12 = vadd.f32 %v1183_v3, %v1166_v35  ;;  %v2146_v63 = vrot.slane %v2097_v57, 4  ;;  %v4754_v36 = vmul.f32 %v4225_v41, %v4160_v19 }
 0x23e   : > { %v1509_v5 = vsel %vm986_vm5, %v7543_v13, %v1508_v56  ;;  %v1630_v10 = vsel %vm1108_vm6, %v7545_v23, %v1629_v46  ;;  %v1784_v62 = vsel %vm742_vm3, %v7547_v22, %v1783_v30  ;;  %v2251_v48 = vmul.f32 %v4212_v6, %v7548_v1  ;;  %v7549_v56 = vld [vmem:[#allocation47_spill] sm:$0xff]  ;;  %v7551_v46 = vld [vmem:[#allocation48_spill] sm:$0xff] }
 0x23f   : > { %v2356_v14 = vadd.f32 %v4652_v8, %v2235_v21  ;;  %v7550_v60 = vrot.slane %v7549_v56, 2  ;;  %v2372_v23 = vmul.f32 %v4221_v33, %v7548_v1  ;;  %v2493_v22 = vmul.f32 %v4223_v37, %v7548_v1  ;;  %v7555_v56 = vld [vmem:[#allocation51_spill] sm:$0xff] }
 0x240   : > { %v1320_v3 = vadd.f32 %v1267_v24, %v1199_v12  ;;  %v7552_v30 = vrot.slane %v7551_v46, 3  ;;  %v2300_v35 = vrot.slane %v2251_v48, 1  ;;  %v2614_v20 = vmul.f32 %v4233_v52, %v7548_v1 }
 0x241   : > { %v1905_v50 = vsel %vm864_vm4, %v7550_v60, %v1904_v27  ;;  %v2477_v8 = vadd.f32 %v4659_v44, %v2356_v14  ;;  %v2421_v21 = vrot.slane %v2372_v23, 2  ;;  %v2542_v38 = vrot.slane %v2493_v22, 3  ;;  %v7557_v22 = vld [vmem:[#allocation52_spill] sm:$0xff] }
 0x242   : > { %v2026_v57 = vsel %vm986_vm5, %v7552_v30, %v2025_v4  ;;  %v2768_v27 = vmul.f32 %v4273_v45, %v4604_v58  ;;  %v1441_v13 = vadd.f32 %v1388_v34, %v1320_v3  ;;  %v7554_v2 = vrot.slane %v7553_v26, 4  ;;  %v7561_v26 = vld [vmem:[#allocation54_spill] sm:$0xff] }
 0x243   : > { %v2663_v12 = vrot.slane %v2614_v20, 4  ;;  %v2889_v4 = vmul.f32 %v4275_v42, %v4604_v58  ;;  %v2598_v48 = vadd.f32 %v4666_v54, %v2477_v8  ;;  %v7556_v60 = vrot.slane %v7555_v56, 1 }
 0x244   : > { %v2147_v24 = vsel %vm1108_vm6, %v7554_v2, %v2146_v63  ;;  %v4787_v14 = vmul.f32 %v4271_v28, %v4216_v9  ;;  %v2817_v34 = vrot.slane %v2768_v27, 1  ;;  %v1562_v23 = vadd.f32 %v1509_v5, %v1441_v13  ;;  %v7563_v2 = vld [vmem:[#allocation55_spill] sm:$0xff] }
 0x245   : > { %v4783_v44 = vsel %vm742_vm3, %v7556_v60, %v2300_v35  ;;  %v7558_v3 = vrot.slane %v7557_v22, 2  ;;  %v2938_v46 = vrot.slane %v2889_v4, 2  ;;  %v4796_v54 = vmul.f32 %v4280_v53, %v4604_v58  ;;  %v7559_v35 = vld [vmem:[#allocation53_spill] sm:$0xff]  ;;  %v7566_v60 = vld [vmem:[#allocation56_spill] sm:$0xff] }
 0x246   : > { %v2719_v30 = vadd.f32 %v4671_v31, %v2598_v48  ;;  %v7560_v20 = vrot.slane %v7559_v35, 3  ;;  %v7562_v27 = vrot.slane %v7561_v26, 4  ;;  %v1683_v13 = vadd.f32 %v1630_v10, %v1562_v23  ;;  %v7565_v48 = vld [vmem:[#allocation13_spill] sm:$0xff] }
 0x247   : > { %v4792_v63 = vsel %vm864_vm4, %v7558_v3, %v2421_v21  ;;  %v4811_v21 = vmul.f32 %v4282_v59, %v4604_v58  ;;  %v7564_v4 = vrot.slane %v7563_v2, 1  ;;  %v668_v31 = vmul.f32 %v4046_v15, %v4160_v19 }
 0x248   : > { %v4802_v8 = vsel %vm986_vm5, %v7560_v20, %v2542_v38  ;;  %v4807_v5 = vsel %vm1108_vm6, %v7562_v27, %v2663_v12  ;;  %v4822_v38 = vmul.f32 %v4048_v16, %v4160_v19  ;;  %v2752_v12 = vadd.f32 %v7565_v48, %v2719_v30 }
 0x249   : > { %v4816_v56 = vsel %vm742_vm3, %v7564_v4, %v2817_v34  ;;  %v7567_v22 = vrot.slane %v7566_v60, 2  ;;  %v705_v10 = vmul.f32 %v4048_v16, %v7548_v1  ;;  %v4834_v34 = vmul.f32 %v4050_v17, %v4160_v19 }
 0x24a   : > { %v1716_v23 = vadd.f32 %v1700_v7, %v1683_v13  ;;  %v3059_v35 = vrot.slane %v4796_v54, 3  ;;  %v7172_v20 = vrot.slane %v4822_v38, 1  ;;  %v827_v30 = vmul.f32 %v4050_v17, %v7548_v1 }
 0x24b   : > { %v4828_v3 = vsel %vm864_vm4, %v7567_v22, %v2938_v46  ;;  %v2873_v26 = vadd.f32 %v4676_v40, %v2752_v12  ;;  %v761_v27 = vrot.slane %v705_v10, 1  ;;  %v7178_v2 = vrot.slane %v4834_v34, 2 }
 0x24c   : > { %v1837_v4 = vadd.f32 %v1784_v62, %v1716_v23  ;;  %v883_v48 = vrot.slane %v827_v30, 2  ;;  %v4845_v60 = vmul.f32 %v4052_v18, %v4160_v19  ;;  %v949_v7 = vmul.f32 %v4052_v18, %v7548_v1 }
 0x24d   : > { %v2994_v54 = vadd.f32 %v4689_v32, %v2873_v26  ;;  %v762_v40 = vsel %vm742_vm3, %v7172_v20, %v761_v27  ;;  %v4855_v13 = vmul.f32 %v4078_v29, %v4160_v19  ;;  %v1071_v62 = vmul.f32 %v4078_v29, %v7548_v1 }
 0x24e   : > { %v1958_v12 = vadd.f32 %v1905_v50, %v1837_v4  ;;  %v806_v22 = vadd.f32 %v762_v40, %v668_v31  ;;  %v884_v10 = vsel %vm864_vm4, %v7178_v2, %v883_v48  ;;  %v7177_v23 = vrot.slane %v4845_v60, 3 }
 0x24f   : > { %v3115_v32 = vadd.f32 %v4697_v49, %v2994_v54  ;;  %v1005_v30 = vrot.slane %v949_v7, 3  ;;  %v7173_v26 = vrot.slane %v4855_v13, 4  ;;  %v1127_v27 = vrot.slane %v1071_v62, 4 }
 0x250   : > { %v2079_v20 = vadd.f32 %v2026_v57, %v1958_v12  ;;  %v928_v19 = vadd.f32 %v884_v10, %v806_v22  ;;  %v1189_v46 = vmul.f32 %v4095_v39, %v4216_v9  ;;  %v4869_v1 = vmul.f32 %v4103_v43, %v4216_v9 }
 0x251   : > { %v3236_v50 = vadd.f32 %v4709_v61, %v3115_v32  ;;  %v1006_v31 = vsel %vm986_vm5, %v7177_v23, %v1005_v30  ;;  %v1128_v49 = vsel %vm1108_vm6, %v7173_v26, %v1127_v27  ;;  %v1226_v57 = vmul.f32 %v4103_v43, %v4604_v58  ;;  %v7568_v61 = vld [vmem:[#allocation45_spill] sm:$0xff] }
 0x252   : > { %v2200_v4 = vadd.f32 %v2147_v24, %v2079_v20  ;;  %v1050_v48 = vadd.f32 %v1006_v31, %v928_v19  ;;  %v7174_v7 = vrot.slane %v4869_v1, 1  ;;  %v4883_v54 = vmul.f32 %v4108_v47, %v4216_v9 }
 0x253   : > { %v4886_v40 = vadd.f32 %v7568_v61, %v3236_v50  ;;  %v1281_v62 = vrot.slane %v1226_v57, 1  ;;  %v1347_v12 = vmul.f32 %v4108_v47, %v4604_v58  ;;  %v4892_v22 = vmul.f32 %v4116_v51, %v4216_v9 }
 0x254   : > { %v2233_v24 = vadd.f32 %v4754_v36, %v2200_v4  ;;  %v1172_v20 = vadd.f32 %v1128_v49, %v1050_v48  ;;  %v7176_v10 = vrot.slane %v4883_v54, 2  ;;  %v1468_v32 = vmul.f32 %v4116_v51, %v4604_v58  ;;  %v7570_v4 = vld [vmem:[#allocation57_spill] sm:$0xff] }
 0x255   : > { %7569 = vst [vmem:[#allocation15_spill] sm:$0xff] %v4886_v40  ;;  %3290 = vrot.lane.b32.xlu1 %v4886_v40, %s3768_s7  ;;  %v1282_v30 = vsel %vm742_vm3, %v7174_v7, %v1281_v62  ;;  %v1402_v27 = vrot.slane %v1347_v12, 2  ;;  %v7175_v19 = vrot.slane %v4892_v22, 3  ;;  %v4906_v50 = vmul.f32 %v4127_v55, %v4216_v9  ;;  %v7572_v7 = vld [vmem:[#allocation30_spill] sm:$0xff] }
 0x256   : > { %v2354_v36 = vadd.f32 %v4783_v44, %v2233_v24  ;;  %v1205_v31 = vadd.f32 %v1189_v46, %v1172_v20  ;;  %v1523_v49 = vrot.slane %v1468_v32, 3  ;;  %v1589_v57 = vmul.f32 %v4127_v55, %v4604_v58  ;;  %v7573_v32 = vld [vmem:[#allocation11_spill] sm:$0xff] }
 0x257   : > { %v7571_v48 = vrot.slane %v7570_v4, 3  ;;  %v1403_v62 = vsel %vm864_vm4, %v7176_v10, %v1402_v27  ;;  %v7179_v12 = vrot.slane %v4906_v50, 4  ;;  %v4920_v9 = vmul.f32 %v4154_v11, %v7572_v7 }
 0x258   : > { %v2475_v44 = vadd.f32 %v4792_v63, %v2354_v36  ;;  %v1326_v46 = vadd.f32 %v1282_v30, %v1205_v31  ;;  %v1524_v24 = vsel %vm986_vm5, %v7175_v19, %v1523_v49  ;;  %v1644_v20 = vrot.slane %v1589_v57, 4  ;;  %v7575_v31 = vld [vmem:[#allocation19_spill] sm:$0xff] }
 0x259   : > { %v3060_v26 = vsel %vm986_vm5, %v7571_v48, %v3059_v35  ;;  %v1743_v35 = vmul.f32 %v4154_v11, %v7573_v32  ;;  %v4931_v27 = vmul.f32 %v4156_v0, %v7572_v7  ;;  %v1864_v48 = vmul.f32 %v4156_v0, %v7573_v32 }
 0x25a   : > { %v2596_v63 = vadd.f32 %v4802_v8, %v2475_v44  ;;  %v1447_v30 = vadd.f32 %v1403_v62, %v1326_v46  ;;  %v1645_v36 = vsel %vm1108_vm6, %v7179_v12, %v1644_v20  ;;  %v4941_v49 = vmul.f32 %v7575_v31, %v7572_v7  ;;  %v7576_v8 = vld [vmem:[#allocation18_spill] sm:$0xff] }
 0x25b   : > { %7574 = vst [vmem:[#allocation20_spill] sm:$0xff] %v4931_v27  ;;  %v1798_v57 = vrot.slane %v1743_v35, 1  ;;  %v1919_v10 = vrot.slane %v1864_v48, 2  ;;  %v1985_v23 = vmul.f32 %v7575_v31, %v7573_v32  ;;  %v1706_v62 = vmul.f32 %v7576_v8, %v7572_v7  ;;  %v7578_v20 = vld [vmem:[#allocation58_spill] sm:$0xff] }
 0x25c   : > { %v2717_v2 = vadd.f32 %v4807_v5, %v2596_v63  ;;  %v1568_v4 = vadd.f32 %v1524_v24, %v1447_v30  ;;  %v4951_v44 = vmul.f32 %v4169_v25, %v7572_v7  ;;  %v7577_v46 = vrot.slane %v4811_v21, 4  ;;  %v4965_v30 = vld [vmem:[#allocation2 + $0x98] sm:$0xff]  ;;  %v4967_v7 = vld [vmem:[#allocation2 + $0xa0] sm:$0xf] }
 0x25d   : > { %v7579_v35 = vrot.slane %v7578_v20, 4  ;;  %v7580_v48 = vrot.slane %v4920_v9, 1  ;;  %v7184_v5 = vrot.slane %v4941_v49, 3  ;;  %v2106_v24 = vmul.f32 %v4169_v25, %v7573_v32  ;;  %7581 = vst [vmem:[#allocation21_spill] sm:$0xff] %v4965_v30 }
 0x25e   : > { %v2750_v63 = vadd.f32 %v4787_v14, %v2717_v2  ;;  %7582 = vst [vmem:[#allocation22_spill] sm:$0xff] %v4967_v7  ;;  %v1689_v21 = vadd.f32 %v1645_v36, %v1568_v4  ;;  %v7583_v20 = vrot.slane %v4931_v27, 2  ;;  %v2260_v14 = vmul.f32 %v4212_v6, %v4967_v7 }
 0x25f   : > { %v3181_v12 = vsel %vm1108_vm6, %v7579_v35, %v7577_v46  ;;  %v1799_v19 = vsel %vm742_vm3, %v7580_v48, %v1798_v57  ;;  %v2040_v35 = vrot.slane %v1985_v23, 3  ;;  %v2161_v57 = vrot.slane %v2106_v24, 4 }
 0x260   : > { %v1920_v46 = vsel %vm864_vm4, %v7583_v20, %v1919_v10  ;;  %v4975_v48 = vmul.f32 %v4212_v6, %v4965_v30  ;;  %v2871_v2 = vadd.f32 %v4816_v56, %v2750_v63  ;;  %v1722_v32 = vadd.f32 %v1706_v62, %v1689_v21 }
 0x261   : > { %v4982_v4 = vmul.f32 %v4221_v33, %v4965_v30  ;;  %v2381_v23 = vmul.f32 %v4221_v33, %v4967_v7  ;;  %v2223_v10 = vmul.f32 %v4225_v41, %v4965_v30  ;;  %v2315_v24 = vrot.slane %v2260_v14, 1 }
 0x262   : > { %v4991_v20 = vmul.f32 %v4223_v37, %v4965_v30  ;;  %v2992_v56 = vadd.f32 %v4828_v3, %v2871_v2  ;;  %v1843_v62 = vadd.f32 %v1799_v19, %v1722_v32  ;;  %v2041_v40 = vsel %vm986_vm5, %v7184_v5, %v2040_v35  ;;  %v5007_v19 = vld [vmem:[#allocation2 + $0xb0] sm:$0xff]  ;;  %v5014_v5 = vld [vmem:[#allocation2 + $0xb8] sm:$0xf] }
 0x263   : > { %7584 = vst [vmem:[#allocation23_spill] sm:$0xff] %v4982_v4  ;;  %v7189_v63 = vrot.slane %v4982_v4, 2  ;;  %v2436_v21 = vrot.slane %v2381_v23, 2  ;;  %v7586_v58 = vrot.slane %v4951_v44, 4  ;;  %v2502_v14 = vmul.f32 %v4223_v37, %v4967_v7 }
 0x264   : > { %7585 = vst [vmem:[#allocation24_spill] sm:$0xff] %v4991_v20  ;;  %v5005_v36 = vmul.f32 %v4233_v52, %v4965_v30  ;;  %v3113_v3 = vadd.f32 %v3060_v26, %v2992_v56  ;;  %v1964_v2 = vadd.f32 %v1920_v46, %v1843_v62  ;;  %v7589_v32 = vrot.slane %v4975_v48, 1 }
 0x265   : > { %v2162_v27 = vsel %vm1108_vm6, %v7586_v58, %v2161_v57  ;;  %7588 = vst [vmem:[#allocation26_spill] sm:$0xff] %v5007_v19  ;;  %v2623_v35 = vmul.f32 %v4233_v52, %v4967_v7  ;;  %v2437_v58 = vsel %vm864_vm4, %v7189_v63, %v2436_v21  ;;  %v7190_v57 = vrot.slane %v4991_v20, 3 }
 0x266   : > { %7587 = vst [vmem:[#allocation25_spill] sm:$0xff] %v5005_v36  ;;  %v2316_v23 = vsel %vm742_vm3, %v7589_v32, %v2315_v24  ;;  %v2557_v30 = vrot.slane %v2502_v14, 3  ;;  %v5022_v26 = vmul.f32 %v4273_v45, %v5007_v19  ;;  %v3234_v46 = vadd.f32 %v3181_v12, %v3113_v3 }
 0x267   : > { %7590 = vst [vmem:[#allocation27_spill] sm:$0xff] %v5014_v5  ;;  %v2085_v56 = vadd.f32 %v2041_v40, %v1964_v2  ;;  %v2777_v62 = vmul.f32 %v4273_v45, %v5014_v5  ;;  %v2678_v32 = vrot.slane %v2623_v35, 4  ;;  %v5030_v21 = vmul.f32 %v4275_v42, %v5007_v19 }
 0x268   : > { %7591 = vst [vmem:[#allocation33_spill] sm:$0xff] %v5022_v26  ;;  %v2898_v14 = vmul.f32 %v4275_v42, %v5014_v5  ;;  %v5035_v63 = vadd.f32 %v7568_v61, %v3234_v46  ;;  %v2740_v40 = vmul.f32 %v4271_v28, %v5007_v19  ;;  %v2558_v2 = vsel %vm986_vm5, %v7190_v57, %v2557_v30 }
 0x269   : > { %v2206_v12 = vadd.f32 %v2162_v27, %v2085_v56  ;;  %v2832_v3 = vrot.slane %v2777_v62, 1  ;;  %v5045_v7 = vmul.f32 %v4280_v53, %v5007_v19  ;;  %v3019_v24 = vmul.f32 %v4280_v53, %v5014_v5 }
 0x26a   : > { %7592 = vst [vmem:[#allocation35_spill] sm:$0xff] %v5035_v63  ;;  %3286 = vrot.lane.b32.xlu0 %v5035_v63, %s3768_s7  ;;  %v2953_v46 = vrot.slane %v2898_v14, 2  ;;  %v5053_v56 = vmul.f32 %v4282_v59, %v5007_v19  ;;  %v3140_v30 = vmul.f32 %v4282_v59, %v5014_v5  ;;  %v7594_v62 = vrot.slane %v5005_v36, 4 }
 0x26b   : > { %7593 = vst [vmem:[#allocation34_spill] sm:$0xff] %v5045_v7  ;;  %v2239_v27 = vadd.f32 %v2223_v10, %v2206_v12  ;;  %v7595_v35 = vrot.slane %v5022_v26, 1  ;;  %v7209_v4 = vrot.slane %v5045_v7, 3  ;;  %v3074_v63 = vrot.slane %v3019_v24, 3  ;;  %v5065_v12 = vld [vmem:[#allocation2 + $0x48] sm:$0xff] }
 0x26c   : > { %v2679_v57 = vsel %vm1108_vm6, %v7594_v62, %v2678_v32  ;;  %7596 = vst [vmem:[#allocation37_spill] sm:$0xff] %v5065_v12  ;;  %v667_v19 = vmul.f32 %v5065_v12, %v4046_v15  ;;  %v703_v5 = vmul.f32 %v5065_v12, %v4048_v16  ;;  %v3195_v36 = vrot.slane %v3140_v30, 4 }
 0x26d   : > { %v2833_v20 = vsel %vm742_vm3, %v7595_v35, %v2832_v3  ;;  %v2360_v10 = vadd.f32 %v2316_v23, %v2239_v27  ;;  %v825_v32 = vmul.f32 %v5065_v12, %v4050_v17  ;;  %v947_v3 = vmul.f32 %v5065_v12, %v4052_v18  ;;  %v5083_v17 = vld [vmem:[#allocation2 + $0x60] sm:$0xff] }
 0x26e   : > { %v1069_v23 = vmul.f32 %v5065_v12, %v4078_v29  ;;  %v7597_v35 = vrot.slane %v5030_v21, 2  ;;  %v3075_v62 = vsel %vm986_vm5, %v7209_v4, %v3074_v63  ;;  %v758_v14 = vrot.slane %v703_v5, 1 }
 0x26f   : > { %v2481_v24 = vadd.f32 %v2437_v58, %v2360_v10  ;;  %v880_v30 = vrot.slane %v825_v32, 2  ;;  %v1002_v26 = vrot.slane %v947_v3, 3  ;;  %v1224_v18 = vmul.f32 %v5083_v17, %v4103_v43 }
 0x270   : > { %v2954_v27 = vsel %vm864_vm4, %v7597_v35, %v2953_v46  ;;  %v1124_v16 = vrot.slane %v1069_v23, 4  ;;  %v7598_v58 = vrot.slane %v4822_v38, 1  ;;  %v1345_v46 = vmul.f32 %v5083_v17, %v4108_v47 }
 0x271   : > { %v2602_v15 = vadd.f32 %v2558_v2, %v2481_v24  ;;  %v1466_v63 = vmul.f32 %v5083_v17, %v4116_v51  ;;  %v7599_v5 = vrot.slane %v5053_v56, 4  ;;  %v7600_v23 = vrot.slane %v4834_v34, 2 }
 0x272   : > { %v760_v10 = vsel %vm742_vm3, %v758_v14, %v7598_v58  ;;  %v1188_v38 = vmul.f32 %v5083_v17, %v4095_v39  ;;  %v7601_v14 = vrot.slane %v4845_v60, 3  ;;  %v1278_v58 = vrot.slane %v1224_v18, 1 }
 0x273   : > { %v3196_v32 = vsel %vm1108_vm6, %v7599_v5, %v3195_v36  ;;  %v805_v3 = vadd.f32 %v760_v10, %v667_v19  ;;  %v882_v35 = vsel %vm864_vm4, %v880_v30, %v7600_v23  ;;  %v2723_v2 = vadd.f32 %v2679_v57, %v2602_v15  ;;  %v5107_v19 = vld [vmem:[#allocation2 + $0x78] sm:$0xff] }
 0x274   : > { %v1004_v24 = vsel %vm986_vm5, %v1002_v26, %v7601_v14  ;;  %v1399_v4 = vrot.slane %v1345_v46, 2  ;;  %v1520_v7 = vrot.slane %v1466_v63, 3  ;;  %v1587_v36 = vmul.f32 %v5083_v17, %v4127_v55  ;;  %7602 = vst [vmem:[#allocation36_spill] sm:$0xff] %v5107_v19 }
 0x275   : > { %v927_v12 = vadd.f32 %v882_v35, %v805_v3  ;;  %v1741_v34 = vmul.f32 %v5107_v19, %v4154_v11  ;;  %v2756_v30 = vadd.f32 %v2740_v40, %v2723_v2  ;;  %v7603_v10 = vrot.slane %v4855_v13, 4  ;;  %v5124_v13 = vld [vmem:[#allocation2 + $0x90] sm:$0xff] }
 0x276   : > { %v7604_v60 = vrot.slane %v4869_v1, 1  ;;  %v1705_v57 = vmul.f32 %v5107_v19, %v7576_v8  ;;  %v7605_v46 = vrot.slane %v4883_v54, 2  ;;  %v1641_v5 = vrot.slane %v1587_v36, 4 }
 0x277   : > { %v1126_v15 = vsel %vm1108_vm6, %v1124_v16, %v7603_v10  ;;  %v1049_v26 = vadd.f32 %v1004_v24, %v927_v12  ;;  %v1862_v40 = vmul.f32 %v5107_v19, %v4156_v0  ;;  %v2877_v3 = vadd.f32 %v2833_v20, %v2756_v30 }
 0x278   : > { %v1280_v18 = vsel %vm742_vm3, %v1278_v58, %v7604_v60  ;;  %v1401_v63 = vsel %vm864_vm4, %v1399_v4, %v7605_v46  ;;  %v1795_v16 = vrot.slane %v1741_v34, 1  ;;  %v1983_v1 = vmul.f32 %v5107_v19, %v7575_v31  ;;  %v7609_v60 = vld [vmem:[#allocation20_spill] sm:$0xff] }
 0x279   : > { %v2104_v23 = vmul.f32 %v5107_v19, %v4169_v25  ;;  %v1171_v35 = vadd.f32 %v1126_v15, %v1049_v26  ;;  %v7606_v12 = vrot.slane %v4892_v22, 3  ;;  %v1916_v4 = vrot.slane %v1862_v40, 2  ;;  %v5152_v40 = vld [vmem:[#allocation2 + $0xa8] sm:$0xff] }
 0x27a   : > { %v5135_v2 = vmul.f32 %v4225_v41, %v5124_v13  ;;  %v2998_v20 = vadd.f32 %v2954_v27, %v2877_v3  ;;  %v2037_v14 = vrot.slane %v1983_v1, 3  ;;  %v2258_v58 = vmul.f32 %v4212_v6, %v5124_v13 }
 0x27b   : > { %v1522_v54 = vsel %vm986_vm5, %v1520_v7, %v7606_v12  ;;  %v2158_v24 = vrot.slane %v2104_v23, 4  ;;  %v1204_v36 = vadd.f32 %v1188_v38, %v1171_v35  ;;  %v7607_v34 = vrot.slane %v4906_v50, 4 }
 0x27c   : > { %v2379_v22 = vmul.f32 %v4221_v33, %v5124_v13  ;;  %v2500_v7 = vmul.f32 %v4223_v37, %v5124_v13  ;;  %v3119_v10 = vadd.f32 %v3075_v62, %v2998_v20  ;;  %v7608_v15 = vrot.slane %v4920_v9, 1 }
 0x27d   : > { %v1643_v30 = vsel %vm1108_vm6, %v1641_v5, %v7607_v34  ;;  %v7610_v26 = vrot.slane %v7609_v60, 2  ;;  %v2312_v38 = vrot.slane %v2258_v58, 1  ;;  %v1325_v50 = vadd.f32 %v1280_v18, %v1204_v36 }
 0x27e   : > { %v1797_v27 = vsel %vm742_vm3, %v1795_v16, %v7608_v15  ;;  %v2433_v5 = vrot.slane %v2379_v22, 2  ;;  %v2554_v3 = vrot.slane %v2500_v7, 3  ;;  %v2621_v1 = vmul.f32 %v4233_v52, %v5124_v13  ;;  %v7617_v22 = vld [vmem:[#allocation24_spill] sm:$0xff]  ;;  %v7619_v15 = vld [vmem:[#allocation25_spill] sm:$0xff] }
 0x27f   : > { %v1918_v46 = vsel %vm864_vm4, %v1916_v4, %v7610_v26  ;;  %v3240_v23 = vadd.f32 %v3196_v32, %v3119_v10  ;;  %v7611_v62 = vrot.slane %v4941_v49, 3  ;;  %v7612_v16 = vrot.slane %v4951_v44, 4 }
 0x280   : > { %v2775_v12 = vmul.f32 %v4273_v45, %v5152_v40  ;;  %v1446_v4 = vadd.f32 %v1401_v63, %v1325_v50  ;;  %v7613_v18 = vrot.slane %v4975_v48, 1  ;;  %v2675_v58 = vrot.slane %v2621_v1, 4  ;;  %v7615_v48 = vld [vmem:[#allocation23_spill] sm:$0xff] }
 0x281   : > { %v2039_v9 = vsel %vm986_vm5, %v2037_v14, %v7611_v62  ;;  %v2160_v35 = vsel %vm1108_vm6, %v2158_v24, %v7612_v16  ;;  %v5171_v32 = vmul.f32 %v4271_v28, %v5152_v40  ;;  %v5174_v49 = vadd.f32 %v7568_v61, %v3240_v23  ;;  %v7623_v23 = vld [vmem:[#allocation33_spill] sm:$0xff] }
 0x282   : > { %v5167_v20 = vsel %vm742_vm3, %v2312_v38, %v7613_v18  ;;  %v2829_v44 = vrot.slane %v2775_v12, 1  ;;  %v2896_v14 = vmul.f32 %v4275_v42, %v5152_v40  ;;  %v3017_v63 = vmul.f32 %v4280_v53, %v5152_v40  ;;  %v7621_v38 = vld [vmem:[#allocation4_spill] sm:$0xff]  ;;  %v5208_v12 = vld [vmem:[#allocation2 + $0x80] sm:$0xff]  ;;  %v7626_v18 = vld [vmem:[#allocation6_spill] sm:$0xff] }
 0x283   : > { %7614 = vst [vmem:[#allocation38_spill] sm:$0xff] %v5174_v49  ;;  %v1567_v24 = vadd.f32 %v1522_v54, %v1446_v4  ;;  %v7616_v36 = vrot.slane %v7615_v48, 2  ;;  %v7618_v7 = vrot.slane %v7617_v22, 3  ;;  %v3138_v61 = vmul.f32 %v4282_v59, %v5152_v40  ;;  %3298 = vrot.lane.b32.xlu1 %v5174_v49, %s3768_s7 }
 0x284   : > { %v7620_v60 = vrot.slane %v7619_v15, 4  ;;  %v2950_v26 = vrot.slane %v2896_v14, 2  ;;  %v671_v50 = vmul.f32 %v5107_v19, %v7621_v38  ;;  %v7624_v62 = vrot.slane %v7623_v23, 1  ;;  %v7629_v23 = vld [vmem:[#allocation7_spill] sm:$0xff] }
 0x285   : > { %v5183_v34 = vsel %vm864_vm4, %v2433_v5, %v7616_v36  ;;  %v5188_v10 = vsel %vm986_vm5, %v2554_v3, %v7618_v7  ;;  %v7622_v5 = vld [vmem:[#allocation5_spill] sm:$0xff]  ;;  %v1688_v3 = vadd.f32 %v1643_v30, %v1567_v24  ;;  %v3071_v14 = vrot.slane %v3017_v63, 3 }
 0x286   : > { %v5197_v54 = vsel %vm1108_vm6, %v2675_v58, %v7620_v60  ;;  %v709_v1 = vmul.f32 %v5107_v19, %v7622_v5  ;;  %v5206_v16 = vsel %vm742_vm3, %v2829_v44, %v7624_v62  ;;  %v5212_v4 = vmul.f32 %v5208_v12, %v7622_v5 }
 0x287   : > { %v831_v58 = vmul.f32 %v5107_v19, %v7626_v18  ;;  %v3192_v48 = vrot.slane %v3138_v61, 4  ;;  %v5218_v30 = vmul.f32 %v5208_v12, %v7626_v18  ;;  %v1721_v24 = vadd.f32 %v1705_v57, %v1688_v3 }
 0x288   : > { %7625 = vst [vmem:[#allocation39_spill] sm:$0xff] %v5212_v4  ;;  %v768_v36 = vrot.slane %v709_v1, 1  ;;  %v7628_v44 = vrot.slane %v5030_v21, 2  ;;  %v7216_v7 = vrot.slane %v5212_v4, 1  ;;  %v953_v63 = vmul.f32 %v5107_v19, %v7629_v23 }
 0x289   : > { %7627 = vst [vmem:[#allocation3_spill] sm:$0xff] %v5218_v30  ;;  %v890_v15 = vrot.slane %v831_v58, 2  ;;  %v7220_v60 = vrot.slane %v5218_v30, 2  ;;  %v5231_v61 = vmul.f32 %v5208_v12, %v7629_v23  ;;  %v1075_v57 = vmul.f32 %v5107_v19, %v4078_v29 }
 0x28a   : > { %v5223_v22 = vsel %vm864_vm4, %v2950_v26, %v7628_v44  ;;  %v1842_v1 = vadd.f32 %v1797_v27, %v1721_v24  ;;  %v770_v21 = vsel %vm742_vm3, %v768_v36, %v7216_v7  ;;  %v5240_v26 = vmul.f32 %v5208_v12, %v4078_v29 }
 0x28b   : > { %7630 = vst [vmem:[#allocation40_spill] sm:$0xff] %v5231_v61  ;;  %v1192_v3 = vmul.f32 %v4095_v39, %v5124_v13  ;;  %v809_v62 = vadd.f32 %v770_v21, %v671_v50  ;;  %v892_v58 = vsel %vm864_vm4, %v890_v15, %v7220_v60  ;;  %v1012_v44 = vrot.slane %v953_v63, 3  ;;  %v7632_v50 = vld [vmem:[#allocation21_spill] sm:$0xff] }
 0x28c   : > { %7631 = vst [vmem:[#allocation41_spill] sm:$0xff] %v5240_v26  ;;  %v7219_v49 = vrot.slane %v5231_v61, 3  ;;  %v1963_v27 = vadd.f32 %v1918_v46, %v1842_v1  ;;  %v1134_v24 = vrot.slane %v1075_v57, 4  ;;  %v7222_v4 = vrot.slane %v5240_v26, 4 }
 0x28d   : > { %v1230_v36 = vmul.f32 %v4103_v43, %v5124_v13  ;;  %v931_v7 = vadd.f32 %v892_v58, %v809_v62  ;;  %v5256_v21 = vmul.f32 %v4103_v43, %v7632_v50  ;;  %v1351_v15 = vmul.f32 %v4108_v47, %v5124_v13 }
 0x28e   : > { %v1014_v19 = vsel %vm986_vm5, %v1012_v44, %v7219_v49  ;;  %v2084_v63 = vadd.f32 %v2039_v9, %v1963_v27  ;;  %v1136_v46 = vsel %vm1108_vm6, %v1134_v24, %v7222_v4  ;;  %v5265_v1 = vmul.f32 %v4108_v47, %v7632_v50  ;;  %v7636_v24 = vld [vmem:[#allocation34_spill] sm:$0xff] }
 0x28f   : > { %7633 = vst [vmem:[#allocation59_spill] sm:$0xff] %v5256_v21  ;;  %v1288_v57 = vrot.slane %v1230_v36, 1  ;;  %v1053_v62 = vadd.f32 %v1014_v19, %v931_v7  ;;  %v7223_v58 = vrot.slane %v5256_v21, 1  ;;  %v1409_v44 = vrot.slane %v1351_v15, 2 }
 0x290   : > { %7634 = vst [vmem:[#allocation9_spill] sm:$0xff] %v5265_v1  ;;  %v1472_v49 = vmul.f32 %v4116_v51, %v5124_v13  ;;  %v2205_v60 = vadd.f32 %v2160_v35, %v2084_v63  ;;  %v5273_v9 = vmul.f32 %v4116_v51, %v7632_v50  ;;  %v1593_v27 = vmul.f32 %v4127_v55, %v5124_v13 }
 0x291   : > { %v7637_v36 = vrot.slane %v7636_v24, 3  ;;  %v1175_v7 = vadd.f32 %v1136_v46, %v1053_v62  ;;  %v5284_v4 = vmul.f32 %v4127_v55, %v7632_v50  ;;  %v7639_v63 = vrot.slane %v5053_v56, 4 }
 0x292   : > { %7635 = vst [vmem:[#allocation42_spill] sm:$0xff] %v5273_v9  ;;  %v1530_v15 = vrot.slane %v1472_v49, 3  ;;  %v2238_v35 = vadd.f32 %v5135_v2, %v2205_v60  ;;  %v1290_v24 = vsel %vm742_vm3, %v1288_v57, %v7223_v58  ;;  %v7640_v49 = vrot.slane %v5265_v1, 2  ;;  %v7641_v60 = vld [vmem:[#allocation26_spill] sm:$0xff] }
 0x293   : > { %v5280_v19 = vsel %vm986_vm5, %v3071_v14, %v7637_v36  ;;  %7638 = vst [vmem:[#allocation43_spill] sm:$0xff] %v5284_v4  ;;  %v5290_v61 = vsel %vm1108_vm6, %v3192_v48, %v7639_v63  ;;  %v7224_v14 = vrot.slane %v5273_v9, 3  ;;  %v1208_v36 = vadd.f32 %v1192_v3, %v1175_v7 }
 0x294   : > { %v1411_v46 = vsel %vm864_vm4, %v1409_v44, %v7640_v49  ;;  %v1651_v62 = vrot.slane %v1593_v27, 4  ;;  %v1747_v2 = vmul.f32 %v4154_v11, %v5152_v40  ;;  %v2359_v56 = vadd.f32 %v5167_v20, %v2238_v35 }
 0x295   : > { %v5305_v63 = vmul.f32 %v4154_v11, %v7641_v60  ;;  %v1868_v57 = vmul.f32 %v4156_v0, %v5152_v40  ;;  %v1329_v3 = vadd.f32 %v1290_v24, %v1208_v36  ;;  %v1532_v44 = vsel %vm986_vm5, %v1530_v15, %v7224_v14 }
 0x296   : > { %v1805_v27 = vrot.slane %v1747_v2, 1  ;;  %v5314_v7 = vmul.f32 %v4156_v0, %v7641_v60  ;;  %v2480_v20 = vadd.f32 %v5183_v34, %v2359_v56  ;;  %v1989_v58 = vmul.f32 %v7575_v31, %v5152_v40 }
 0x297   : > { %7642 = vst [vmem:[#allocation44_spill] sm:$0xff] %v5305_v63  ;;  %v7228_v35 = vrot.slane %v5305_v63, 1  ;;  %v1926_v49 = vrot.slane %v1868_v57, 2  ;;  %v1450_v48 = vadd.f32 %v1411_v46, %v1329_v3  ;;  %v5323_v36 = vmul.f32 %v7575_v31, %v7641_v60  ;;  %v5337_v3 = vld [vmem:[#allocation2 + $0xc0] sm:$0xff] }
 0x298   : > { %7643 = vst [vmem:[#allocation46_spill] sm:$0xff] %v5314_v7  ;;  %v2110_v15 = vmul.f32 %v4169_v25, %v5152_v40  ;;  %v2601_v2 = vadd.f32 %v5188_v10, %v2480_v20  ;;  %v7645_v34 = vrot.slane %v5284_v4, 4  ;;  %v1709_v57 = vmul.f32 %v7576_v8, %v5152_v40  ;;  %v5387_v40 = vld [vmem:[#allocation2 + $0xd8] sm:$0xff] }
 0x299   : > { %7644 = vst [vmem:[#allocation8_spill] sm:$0xff] %v5323_v36  ;;  %v5335_v46 = vmul.f32 %v4169_v25, %v7641_v60  ;;  %v1571_v14 = vadd.f32 %v1532_v44, %v1450_v48  ;;  %v1807_v24 = vsel %vm742_vm3, %v1805_v27, %v7228_v35  ;;  %v7648_v10 = vrot.slane %v5314_v7, 2 }
 0x29a   : > { %v1653_v56 = vsel %vm1108_vm6, %v1651_v62, %v7645_v34  ;;  %7647 = vst [vmem:[#allocation48_spill] sm:$0xff] %v5337_v3  ;;  %v2047_v4 = vrot.slane %v1989_v58, 3  ;;  %v2722_v62 = vadd.f32 %v5197_v54, %v2601_v2  ;;  %v5346_v34 = vld [vmem:[#allocation2 + $0xc8] sm:$0xff]  ;;  %v2168_v9 = vrot.slane %v2110_v15, 4 }
 0x29b   : > { %7646 = vst [vmem:[#allocation47_spill] sm:$0xff] %v5335_v46  ;;  %v1928_v20 = vsel %vm864_vm4, %v1926_v49, %v7648_v10  ;;  %v2264_v1 = vmul.f32 %v4212_v6, %v5337_v3  ;;  %v1692_v48 = vadd.f32 %v1653_v56, %v1571_v14  ;;  %v5354_v27 = vmul.f32 %v4212_v6, %v5346_v34 }
 0x29c   : > { %v2385_v58 = vmul.f32 %v4221_v33, %v5337_v3  ;;  %v2755_v54 = vadd.f32 %v5171_v32, %v2722_v62  ;;  %v2226_v49 = vmul.f32 %v4225_v41, %v5337_v3  ;;  %v5363_v15 = vmul.f32 %v4221_v33, %v5346_v34  ;;  %7655 = vst [vmem:[#allocation54_spill] sm:$0xff] %v5387_v40 }
 0x29d   : > { %7649 = vst [vmem:[#allocation50_spill] sm:$0xff] %v5354_v27  ;;  %v2322_v2 = vrot.slane %v2264_v1, 1  ;;  %v1725_v14 = vadd.f32 %v1709_v57, %v1692_v48  ;;  %v2506_v35 = vmul.f32 %v4223_v37, %v5337_v3  ;;  %v5372_v32 = vmul.f32 %v4223_v37, %v5346_v34 }
 0x29e   : > { %7650 = vst [vmem:[#allocation51_spill] sm:$0xff] %v5363_v15  ;;  %v2443_v10 = vrot.slane %v2385_v58, 2  ;;  %v2876_v44 = vadd.f32 %v5206_v16, %v2755_v54  ;;  %v2627_v1 = vmul.f32 %v4233_v52, %v5337_v3  ;;  %v7652_v57 = vrot.slane %v5323_v36, 3 }
 0x29f   : > { %7651 = vst [vmem:[#allocation52_spill] sm:$0xff] %v5372_v32  ;;  %v1846_v62 = vadd.f32 %v1807_v24, %v1725_v14  ;;  %v7653_v58 = vrot.slane %v5335_v46, 4  ;;  %v5384_v16 = vmul.f32 %v4233_v52, %v5346_v34  ;;  %v7656_v7 = vrot.slane %v5354_v27, 1  ;;  %v5395_v46 = vld [vmem:[#allocation2 + $0xe0] sm:$0xff] }
 0x2a0   : > { %v2049_v48 = vsel %vm986_vm5, %v2047_v4, %v7652_v57  ;;  %v2997_v54 = vadd.f32 %v5223_v22, %v2876_v44  ;;  %v7657_v14 = vrot.slane %v5363_v15, 2  ;;  %v2564_v57 = vrot.slane %v2506_v35, 3  ;;  %7658 = vst [vmem:[#allocation55_spill] sm:$0xff] %v5395_v46 }
 0x2a1   : > { %v2170_v56 = vsel %vm1108_vm6, %v2168_v9, %v7653_v58  ;;  %7654 = vst [vmem:[#allocation53_spill] sm:$0xff] %v5384_v16  ;;  %v2324_v24 = vsel %vm742_vm3, %v2322_v2, %v7656_v7  ;;  %v1967_v9 = vadd.f32 %v1928_v20, %v1846_v62  ;;  %v7237_v58 = vrot.slane %v5372_v32, 3 }
 0x2a2   : > { %v2445_v4 = vsel %vm864_vm4, %v2443_v10, %v7657_v14  ;;  %v2685_v36 = vrot.slane %v2627_v1, 4  ;;  %v2781_v22 = vmul.f32 %v4273_v45, %v5387_v40  ;;  %v3118_v44 = vadd.f32 %v5280_v19, %v2997_v54 }
 0x2a3   : > { %v5404_v7 = vmul.f32 %v4273_v45, %v5395_v46  ;;  %v2902_v35 = vmul.f32 %v4275_v42, %v5387_v40  ;;  %v2088_v2 = vadd.f32 %v2049_v48, %v1967_v9  ;;  %v2743_v20 = vmul.f32 %v4271_v28, %v5387_v40 }
 0x2a4   : > { %v2839_v10 = vrot.slane %v2781_v22, 1  ;;  %v5412_v1 = vmul.f32 %v4275_v42, %v5395_v46  ;;  %v3239_v19 = vadd.f32 %v5290_v61, %v3118_v44  ;;  %v5418_v14 = vmul.f32 %v4280_v53, %v5387_v40  ;;  %v5432_v61 = vld [vmem:[%s7084_s4] ss:$0 sm:$0xff] }
 0x2a5   : > { %7659 = vst [vmem:[#allocation13_spill] sm:$0xff] %v5404_v7  ;;  %v2960_v54 = vrot.slane %v2902_v35, 2  ;;  %v2209_v27 = vadd.f32 %v2170_v56, %v2088_v2  ;;  %v5423_v9 = vmul.f32 %v4280_v53, %v5395_v46  ;;  %v5427_v22 = vmul.f32 %v4282_v59, %v5387_v40 }
 0x2a6   : > { %7660 = vst [vmem:[#allocation56_spill] sm:$0xff] %v5412_v1  ;;  %v5435_v44 = vadd.f32 %v5432_v61, %v3239_v19  ;;  %v2566_v56 = vsel %vm986_vm5, %v2564_v57, %v7237_v58  ;;  %v7664_v35 = vrot.slane %v5384_v16, 4  ;;  %v5445_v48 = vmul.f32 %v4282_v59, %v5395_v46 }
 0x2a7   : > { %7661 = vst [vmem:[#allocation45_spill] sm:$0xff] %v5423_v9  ;;  %v2242_v62 = vadd.f32 %v2226_v49, %v2209_v27  ;;  %v7666_v15 = vrot.slane %v5404_v7, 1  ;;  %v7667_v19 = vrot.slane %v5412_v1, 2  ;;  %v3081_v32 = vrot.slane %v5418_v14, 3  ;;  %v7669_v49 = vld [vmem:[#allocation10_spill] sm:$0xff] }
 0x2a8   : > { %7662 = vst [vmem:[#allocation57_spill] sm:$0xff] %v5432_v61  ;;  %v2687_v2 = vsel %vm1108_vm6, %v2685_v36, %v7664_v35  ;;  %3296 = vrot.lane.b32.xlu0 %v5435_v44, %s3768_s7  ;;  %v3202_v57 = vrot.slane %v5427_v22, 4  ;;  %v5458_v35 = vld [vmem:[#allocation2 + $0x68] sm:$0xff] }
 0x2a9   : > { %7663 = vst [vmem:[#allocation30_spill] sm:$0xff] %v5435_v44  ;;  %v2841_v63 = vsel %vm742_vm3, %v2839_v10, %v7666_v15  ;;  %v2962_v21 = vsel %vm864_vm4, %v2960_v54, %v7667_v19  ;;  %v5462_v27 = vmul.f32 %v5458_v35, %v7622_v5  ;;  %v708_v15 = vmul.f32 %v7622_v5, %v7669_v49  ;;  %v5472_v19 = vld [vmem:[#allocation2 + $0x70] sm:$0xf] }
 0x2aa   : > { %7665 = vst [vmem:[#allocation11_spill] sm:$0xff] %v5445_v48  ;;  %v2363_v10 = vadd.f32 %v2324_v24, %v2242_v62  ;;  %v670_v54 = vmul.f32 %v5458_v35, %v7621_v38  ;;  %v5470_v14 = vmul.f32 %v5458_v35, %v7626_v18  ;;  %v830_v22 = vmul.f32 %v5472_v19, %v7626_v18 }
 0x2ab   : > { %7668 = vst [vmem:[#allocation19_spill] sm:$0xff] %v5462_v27  ;;  %v7248_v36 = vrot.slane %v5462_v27, 1  ;;  %v766_v1 = vrot.slane %v708_v15, 1  ;;  %v5480_v24 = vmul.f32 %v5458_v35, %v7629_v23  ;;  %v952_v16 = vmul.f32 %v5472_v19, %v7629_v23 }
 0x2ac   : > { %7670 = vst [vmem:[#allocation18_spill] sm:$0xff] %v5470_v14  ;;  %v2484_v62 = vadd.f32 %v2445_v4, %v2363_v10  ;;  %v7251_v49 = vrot.slane %v5470_v14, 2  ;;  %v888_v7 = vrot.slane %v830_v22, 2  ;;  %v5491_v15 = vmul.f32 %v5458_v35, %v4078_v29 }
 0x2ad   : > { %7671 = vst [vmem:[#allocation58_spill] sm:$0xff] %v5472_v19  ;;  %v767_v26 = vsel %vm742_vm3, %v7248_v36, %v766_v1  ;;  %v1074_v30 = vmul.f32 %v5472_v19, %v4078_v29  ;;  %v1010_v44 = vrot.slane %v952_v16, 3  ;;  %v1191_v1 = vmul.f32 %v5208_v12, %v4095_v39 }
 0x2ae   : > { %7672 = vst [vmem:[#allocation20_spill] sm:$0xff] %v5480_v24  ;;  %v2605_v4 = vadd.f32 %v2566_v56, %v2484_v62  ;;  %v808_v10 = vadd.f32 %v767_v26, %v670_v54  ;;  %v889_v22 = vsel %vm864_vm4, %v7251_v49, %v888_v7  ;;  %v7252_v27 = vrot.slane %v5491_v15, 4  ;;  %v5508_v54 = vld [vmem:[#allocation2 + $0x88] sm:$0xf] }
 0x2af   : > { %7673 = vst [vmem:[#allocation23_spill] sm:$0xff] %v5491_v15  ;;  %v1132_v40 = vrot.slane %v1074_v30, 4  ;;  %v5503_v36 = vmul.f32 %v5208_v12, %v4103_v43  ;;  %v7675_v56 = vrot.slane %v5480_v24, 3  ;;  %v1229_v16 = vmul.f32 %v5508_v54, %v4103_v43 }
 0x2b0   : > { %v2726_v58 = vadd.f32 %v2687_v2, %v2605_v4  ;;  %v930_v3 = vadd.f32 %v889_v22, %v808_v10  ;;  %7676 = vst [vmem:[#allocation25_spill] sm:$0xff] %v5508_v54  ;;  %v5518_v62 = vmul.f32 %v5208_v12, %v4108_v47  ;;  %v1350_v2 = vmul.f32 %v5508_v54, %v4108_v47 }
 0x2b1   : > { %7674 = vst [vmem:[#allocation24_spill] sm:$0xff] %v5503_v36  ;;  %v1011_v26 = vsel %vm986_vm5, %v7675_v56, %v1010_v44  ;;  %v1133_v30 = vsel %vm1108_vm6, %v7252_v27, %v1132_v40  ;;  %v1286_v10 = vrot.slane %v1229_v16, 1  ;;  %v5524_v22 = vmul.f32 %v5208_v12, %v4116_v51 }
 0x2b2   : > { %7677 = vst [vmem:[#allocation5_spill] sm:$0xff] %v5518_v62  ;;  %v2759_v4 = vadd.f32 %v2743_v20, %v2726_v58  ;;  %v1052_v44 = vadd.f32 %v1011_v26, %v930_v3  ;;  %v1407_v49 = vrot.slane %v1350_v2, 2  ;;  %v1471_v40 = vmul.f32 %v5508_v54, %v4116_v51 }
 0x2b3   : > { %7678 = vst [vmem:[#allocation33_spill] sm:$0xff] %v5524_v22  ;;  %v5531_v27 = vmul.f32 %v5208_v12, %v4127_v55  ;;  %v7680_v15 = vrot.slane %v5423_v9, 3  ;;  %v7681_v20 = vrot.slane %v5503_v36, 1  ;;  %v7258_v16 = vrot.slane %v5524_v22, 3 }
 0x2b4   : > { %v2880_v7 = vadd.f32 %v2841_v63, %v2759_v4  ;;  %v1174_v58 = vadd.f32 %v1133_v30, %v1052_v44  ;;  %v1528_v2 = vrot.slane %v1471_v40, 3  ;;  %v1592_v56 = vmul.f32 %v5508_v54, %v4127_v55 }
 0x2b5   : > { %7679 = vst [vmem:[#allocation21_spill] sm:$0xff] %v5531_v27  ;;  %v3083_v3 = vsel %vm986_vm5, %v3081_v32, %v7680_v15  ;;  %v1287_v26 = vsel %vm742_vm3, %v7681_v20, %v1286_v10  ;;  %v7257_v24 = vrot.slane %v5531_v27, 4  ;;  %v7682_v63 = vrot.slane %v5445_v48, 4  ;;  %v7685_v10 = vld [vmem:[#allocation22_spill] sm:$0xff] }
 0x2b6   : > { %v3001_v14 = vadd.f32 %v2962_v21, %v2880_v7  ;;  %v1207_v9 = vadd.f32 %v1191_v1, %v1174_v58  ;;  %v5548_v32 = vmul.f32 %v4154_v11, %v7632_v50  ;;  %v7684_v15 = vrot.slane %v5518_v62, 2 }
 0x2b7   : > { %v3204_v4 = vsel %vm1108_vm6, %v3202_v57, %v7682_v63  ;;  %v1649_v44 = vrot.slane %v1592_v56, 4  ;;  %v1746_v40 = vmul.f32 %v4154_v11, %v7685_v10  ;;  %v5557_v21 = vmul.f32 %v4156_v0, %v7632_v50 }
 0x2b8   : > { %7683 = vst [vmem:[#allocation34_spill] sm:$0xff] %v5548_v32  ;;  %v1408_v30 = vsel %vm864_vm4, %v7684_v15, %v1407_v49  ;;  %v3122_v7 = vadd.f32 %v3083_v3, %v3001_v14  ;;  %v1328_v20 = vadd.f32 %v1287_v26, %v1207_v9  ;;  %v1867_v57 = vmul.f32 %v4156_v0, %v7685_v10 }
 0x2b9   : > { %7686 = vst [vmem:[#allocation26_spill] sm:$0xff] %v5557_v21  ;;  %v1529_v1 = vsel %vm986_vm5, %v7258_v16, %v1528_v2  ;;  %v1650_v49 = vsel %vm1108_vm6, %v7257_v24, %v1649_v44  ;;  %v7259_v56 = vrot.slane %v5548_v32, 1  ;;  %v5570_v58 = vmul.f32 %v7575_v31, %v7632_v50 }
 0x2ba   : > { %v3243_v63 = vadd.f32 %v3204_v4, %v3122_v7  ;;  %v1449_v14 = vadd.f32 %v1408_v30, %v1328_v20  ;;  %v1803_v9 = vrot.slane %v1746_v40, 1  ;;  %v1988_v3 = vmul.f32 %v7575_v31, %v7685_v10 }
 0x2bb   : > { %7687 = vst [vmem:[#allocation10_spill] sm:$0xff] %v5570_v58  ;;  %v7262_v26 = vrot.slane %v5557_v21, 2  ;;  %v1924_v15 = vrot.slane %v1867_v57, 2  ;;  %v5577_v2 = vmul.f32 %v4169_v25, %v7632_v50  ;;  %v2109_v44 = vmul.f32 %v4169_v25, %v7685_v10 }
 0x2bc   : > { %v5582_v24 = vadd.f32 %v5432_v61, %v3243_v63  ;;  %v1570_v16 = vadd.f32 %v1529_v1, %v1449_v14  ;;  %v1708_v4 = vmul.f32 %v7576_v8, %v7632_v50  ;;  %v2045_v40 = vrot.slane %v1988_v3, 3  ;;  %v7691_v63 = vld [vmem:[#allocation27_spill] sm:$0xff] }
 0x2bd   : > { %7688 = vst [vmem:[#allocation22_spill] sm:$0xff] %v5577_v2  ;;  %v2166_v20 = vrot.slane %v2109_v44, 4  ;;  %v5590_v57 = vmul.f32 %v4212_v6, %v7641_v60  ;;  %v1804_v1 = vsel %vm742_vm3, %v7259_v56, %v1803_v9  ;;  %v2263_v50 = vmul.f32 %v4212_v6, %v7691_v63 }
 0x2be   : > { %7689 = vst [vmem:[#allocation60_spill] sm:$0xff] %v5582_v24  ;;  %3304 = vrot.lane.b32.xlu1 %v5582_v24, %s3768_s7  ;;  %v1691_v10 = vadd.f32 %v1650_v49, %v1570_v16  ;;  %v5601_v14 = vmul.f32 %v4221_v33, %v7641_v60  ;;  %v1925_v3 = vsel %vm864_vm4, %v7262_v26, %v1924_v15  ;;  %v7694_v24 = vrot.slane %v5570_v58, 3  ;;  %v5631_v58 = vld [vmem:[#allocation2 + $0xd0] sm:$0xf] }
 0x2bf   : > { %7690 = vst [vmem:[#allocation61_spill] sm:$0xff] %v5590_v57  ;;  %v2384_v16 = vmul.f32 %v4221_v33, %v7691_v63  ;;  %v5611_v49 = vmul.f32 %v4223_v37, %v7641_v60  ;;  %v2225_v56 = vmul.f32 %v4225_v41, %v7641_v60  ;;  %v2320_v7 = vrot.slane %v2263_v50, 1 }
 0x2c0   : > { %7692 = vst [vmem:[#allocation27_spill] sm:$0xff] %v5601_v14  ;;  %v1724_v9 = vadd.f32 %v1708_v4, %v1691_v10  ;;  %v2505_v30 = vmul.f32 %v4223_v37, %v7691_v63  ;;  %v2046_v15 = vsel %vm986_vm5, %v7694_v24, %v2045_v40  ;;  %v7695_v26 = vrot.slane %v5577_v2, 4 }
 0x2c1   : > { %7693 = vst [vmem:[#allocation62_spill] sm:$0xff] %v5611_v49  ;;  %v5625_v48 = vmul.f32 %v4233_v52, %v7641_v60  ;;  %v2626_v4 = vmul.f32 %v4233_v52, %v7691_v63  ;;  %v7272_v50 = vrot.slane %v5601_v14, 2  ;;  %v2441_v21 = vrot.slane %v2384_v16, 2 }
 0x2c2   : > { %v2167_v44 = vsel %vm1108_vm6, %v7695_v26, %v2166_v20  ;;  %v1845_v10 = vadd.f32 %v1804_v1, %v1724_v9  ;;  %7697 = vst [vmem:[#allocation64_spill] sm:$0xff] %v5631_v58  ;;  %v7698_v24 = vrot.slane %v5590_v57, 1  ;;  %v2562_v26 = vrot.slane %v2505_v30, 3 }
 0x2c3   : > { %7696 = vst [vmem:[#allocation63_spill] sm:$0xff] %v5625_v48  ;;  %v5639_v60 = vmul.f32 %v4273_v45, %v5346_v34  ;;  %v2683_v1 = vrot.slane %v2626_v4, 4  ;;  %v2780_v16 = vmul.f32 %v4273_v45, %v5631_v58  ;;  %v5645_v9 = vmul.f32 %v4275_v42, %v5346_v34 }
 0x2c4   : > { %v2321_v40 = vsel %vm742_vm3, %v7698_v24, %v2320_v7  ;;  %v1966_v63 = vadd.f32 %v1925_v3, %v1845_v10  ;;  %v5649_v32 = vmul.f32 %v4271_v28, %v5346_v34  ;;  %v2901_v7 = vmul.f32 %v4275_v42, %v5631_v58 }
 0x2c5   : > { %7699 = vst [vmem:[#allocation65_spill] sm:$0xff] %v5639_v60  ;;  %v5656_v3 = vmul.f32 %v4280_v53, %v5346_v34  ;;  %v2837_v10 = vrot.slane %v2780_v16, 1  ;;  %v3022_v20 = vmul.f32 %v4280_v53, %v5631_v58  ;;  %v2442_v57 = vsel %vm864_vm4, %v7272_v50, %v2441_v21 }
 0x2c6   : > { %7700 = vst [vmem:[#allocation66_spill] sm:$0xff] %v5645_v9  ;;  %v2087_v4 = vadd.f32 %v2046_v15, %v1966_v63  ;;  %v7702_v30 = vrot.slane %v5611_v49, 3  ;;  %v2958_v27 = vrot.slane %v2901_v7, 2  ;;  %v5669_v22 = vmul.f32 %v4282_v59, %v5346_v34  ;;  %v3698_v7 = vld [vmem:[#allocation2 + $0x30] sm:$0xff] }
 0x2c7   : > { %7701 = vst [vmem:[#allocation67_spill] sm:$0xff] %v5656_v3  ;;  %v7704_v63 = vrot.slane %v5625_v48, 4  ;;  %v5677_v14 = vmul.f32 %v4282_v59, %v5631_v58  ;;  %v7705_v21 = vrot.slane %v5639_v60, 1  ;;  %v665_v50 = vmul.f32 %v3698_v7, %v7621_v38 }
 0x2c8   : > { %v2563_v2 = vsel %vm986_vm5, %v7702_v30, %v2562_v26  ;;  %7703 = vst [vmem:[#allocation68_spill] sm:$0xff] %v5669_v22  ;;  %v2208_v15 = vadd.f32 %v2167_v44, %v2087_v4  ;;  %v3079_v30 = vrot.slane %v3022_v20, 3  ;;  %v700_v44 = vmul.f32 %v3698_v7, %v7622_v5 }
 0x2c9   : > { %v2684_v16 = vsel %vm1108_vm6, %v7704_v63, %v2683_v1  ;;  %v2838_v26 = vsel %vm742_vm3, %v7705_v21, %v2837_v10  ;;  %v7706_v48 = vrot.slane %v5645_v9, 2  ;;  %v5687_v63 = vld [vmem:[#allocation2 + $0x38] sm:$0xff]  ;;  %v822_v60 = vmul.f32 %v3698_v7, %v7626_v18 }
 0x2ca   : > { %v2241_v4 = vadd.f32 %v2225_v56, %v2208_v15  ;;  %7707 = vst [vmem:[#allocation69_spill] sm:$0xff] %v5687_v63  ;;  %v5691_v24 = vmul.f32 %v5687_v63, %v7622_v5  ;;  %v753_v10 = vrot.slane %v700_v44, 1  ;;  %v5697_v21 = vmul.f32 %v5687_v63, %v7626_v18 }
 0x2cb   : > { %v2959_v1 = vsel %vm864_vm4, %v7706_v48, %v2958_v27  ;;  %v944_v56 = vmul.f32 %v3698_v7, %v7629_v23  ;;  %v875_v27 = vrot.slane %v822_v60, 2  ;;  %v5703_v9 = vmul.f32 %v5687_v63, %v7629_v23 }
 0x2cc   : > { %7708 = vst [vmem:[#allocation70_spill] sm:$0xff] %v5691_v24  ;;  %v2362_v15 = vadd.f32 %v2321_v40, %v2241_v4  ;;  %v7288_v48 = vrot.slane %v5691_v24, 1  ;;  %v7287_v49 = vrot.slane %v5697_v21, 2  ;;  %v1066_v20 = vmul.f32 %v3698_v7, %v4078_v29  ;;  %v7712_v4 = vld [vmem:[#allocation37_spill] sm:$0xff] }
 0x2cd   : > { %7709 = vst [vmem:[#allocation71_spill] sm:$0xff] %v5697_v21  ;;  %v997_v62 = vrot.slane %v944_v56, 3  ;;  %v5709_v44 = vmul.f32 %v5687_v63, %v4078_v29  ;;  %v7286_v60 = vrot.slane %v5703_v9, 3  ;;  %v1186_v54 = vmul.f32 %v7712_v4, %v4095_v39 }
 0x2ce   : > { %7710 = vst [vmem:[#allocation72_spill] sm:$0xff] %v5703_v9  ;;  %v2483_v36 = vadd.f32 %v2442_v57, %v2362_v15  ;;  %v755_v40 = vsel %vm742_vm3, %v753_v10, %v7288_v48  ;;  %v877_v56 = vsel %vm864_vm4, %v875_v27, %v7287_v49  ;;  %v1119_v7 = vrot.slane %v1066_v20, 4  ;;  %v5726_v15 = vld [vmem:[#allocation2 + $0x50] sm:$0xff] }
 0x2cf   : > { %7711 = vst [vmem:[#allocation73_spill] sm:$0xff] %v5709_v44  ;;  %v803_v19 = vadd.f32 %v755_v40, %v665_v50  ;;  %v7289_v46 = vrot.slane %v5709_v44, 4  ;;  %v999_v57 = vsel %vm986_vm5, %v997_v62, %v7286_v60  ;;  %v1221_v10 = vmul.f32 %v7712_v4, %v4103_v43 }
 0x2d0   : > { %v2604_v63 = vadd.f32 %v2563_v2, %v2483_v36  ;;  %7713 = vst [vmem:[#allocation37_spill] sm:$0xff] %v5726_v15  ;;  %v5730_v50 = vmul.f32 %v5726_v15, %v4103_v43  ;;  %v1342_v36 = vmul.f32 %v7712_v4, %v4108_v47  ;;  %v5739_v62 = vmul.f32 %v5726_v15, %v4108_v47 }
 0x2d1   : > { %v925_v40 = vadd.f32 %v877_v56, %v803_v19  ;;  %v1121_v20 = vsel %vm1108_vm6, %v1119_v7, %v7289_v46  ;;  %v1273_v27 = vrot.slane %v1221_v10, 1  ;;  %v1463_v49 = vmul.f32 %v7712_v4, %v4116_v51 }
 0x2d2   : > { %7714 = vst [vmem:[#allocation74_spill] sm:$0xff] %v5730_v50  ;;  %v2725_v2 = vadd.f32 %v2684_v16, %v2604_v63  ;;  %v1394_v19 = vrot.slane %v1342_v36, 2  ;;  %v5747_v7 = vmul.f32 %v5726_v15, %v4116_v51  ;;  %v7717_v44 = vrot.slane %v5656_v3, 3 }
 0x2d3   : > { %7715 = vst [vmem:[#allocation75_spill] sm:$0xff] %v5739_v62  ;;  %v1047_v48 = vadd.f32 %v999_v57, %v925_v40  ;;  %v3200_v63 = vrot.slane %v5677_v14, 4  ;;  %v1584_v10 = vmul.f32 %v7712_v4, %v4127_v55  ;;  %v7718_v57 = vrot.slane %v5730_v50, 1 }
 0x2d4   : > { %7716 = vst [vmem:[#allocation76_spill] sm:$0xff] %v5747_v7  ;;  %v2758_v46 = vadd.f32 %v5649_v32, %v2725_v2  ;;  %v3080_v16 = vsel %vm986_vm5, %v7717_v44, %v3079_v30  ;;  %v1515_v36 = vrot.slane %v1463_v49, 3  ;;  %v5761_v56 = vmul.f32 %v5726_v15, %v4127_v55 }
 0x2d5   : > { %v1169_v60 = vadd.f32 %v1121_v20, %v1047_v48  ;;  %v1275_v40 = vsel %vm742_vm3, %v1273_v27, %v7718_v57  ;;  %v7720_v2 = vrot.slane %v5739_v62, 2  ;;  %v7292_v14 = vrot.slane %v5747_v7, 3 }
 0x2d6   : > { %7719 = vst [vmem:[#allocation77_spill] sm:$0xff] %v5761_v56  ;;  %v2879_v32 = vadd.f32 %v2838_v26, %v2758_v46  ;;  %v1738_v44 = vmul.f32 %v5083_v17, %v4154_v11  ;;  %v1636_v4 = vrot.slane %v1584_v10, 4  ;;  %v5772_v49 = vmul.f32 %v5458_v35, %v4154_v11 }
 0x2d7   : > { %v1396_v30 = vsel %vm864_vm4, %v1394_v19, %v7720_v2  ;;  %v1202_v48 = vadd.f32 %v1186_v54, %v1169_v60  ;;  %v1859_v46 = vmul.f32 %v5083_v17, %v4156_v0  ;;  %v5778_v26 = vmul.f32 %v5458_v35, %v4156_v0 }
 0x2d8   : > { %7721 = vst [vmem:[#allocation78_spill] sm:$0xff] %v5772_v49  ;;  %v3000_v27 = vadd.f32 %v2959_v1, %v2879_v32  ;;  %v1790_v57 = vrot.slane %v1738_v44, 1  ;;  %v7723_v19 = vrot.slane %v5669_v22, 4  ;;  %v7294_v10 = vrot.slane %v5772_v49, 1 }
 0x2d9   : > { %7722 = vst [vmem:[#allocation79_spill] sm:$0xff] %v5778_v26  ;;  %v1323_v60 = vadd.f32 %v1275_v40, %v1202_v48  ;;  %v1980_v2 = vmul.f32 %v5083_v17, %v7575_v31  ;;  %v1517_v1 = vsel %vm986_vm5, %v1515_v36, %v7292_v14  ;;  %v1703_v32 = vmul.f32 %v5083_v17, %v7576_v8 }
 0x2da   : > { %v3201_v54 = vsel %vm1108_vm6, %v7723_v19, %v3200_v63  ;;  %v3121_v20 = vadd.f32 %v3080_v16, %v3000_v27  ;;  %v5793_v44 = vmul.f32 %v5458_v35, %v7575_v31  ;;  %v7725_v63 = vrot.slane %v5761_v56, 4 }
 0x2db   : > { %v1444_v22 = vadd.f32 %v1396_v30, %v1323_v60  ;;  %v1911_v48 = vrot.slane %v1859_v46, 2  ;;  %v2101_v16 = vmul.f32 %v5083_v17, %v4169_v25  ;;  %v1792_v36 = vsel %vm742_vm3, %v1790_v57, %v7294_v10 }
 0x2dc   : > { %7724 = vst [vmem:[#allocation80_spill] sm:$0xff] %v5793_v44  ;;  %v1638_v40 = vsel %vm1108_vm6, %v1636_v4, %v7725_v63  ;;  %v3242_v27 = vadd.f32 %v3201_v54, %v3121_v20  ;;  %v7295_v19 = vrot.slane %v5778_v26, 2  ;;  %v5806_v14 = vmul.f32 %v5458_v35, %v4169_v25  ;;  %v7727_v4 = vld [vmem:[#allocation36_spill] sm:$0xff] }
 0x2dd   : > { %v1565_v30 = vadd.f32 %v1517_v1, %v1444_v22  ;;  %v2032_v60 = vrot.slane %v1980_v2, 3  ;;  %v7298_v3 = vrot.slane %v5793_v44, 3  ;;  %v2255_v46 = vmul.f32 %v7727_v4, %v4212_v6 }
 0x2de   : > { %7726 = vst [vmem:[#allocation81_spill] sm:$0xff] %v5806_v14  ;;  %v5812_v17 = vadd.f32 %v5432_v61, %v3242_v27  ;;  %v2153_v20 = vrot.slane %v2101_v16, 4  ;;  %v7302_v54 = vrot.slane %v5806_v14, 4  ;;  %v5817_v57 = vmul.f32 %v5208_v12, %v4212_v6 }
 0x2df   : > { %v1686_v63 = vadd.f32 %v1638_v40, %v1565_v30  ;;  %v2307_v35 = vrot.slane %v2255_v46, 1  ;;  %v2376_v22 = vmul.f32 %v7727_v4, %v4221_v33  ;;  %v5823_v2 = vmul.f32 %v5208_v12, %v4221_v33 }
 0x2e0   : > { %7728 = vst [vmem:[#allocation36_spill] sm:$0xff] %v5812_v17  ;;  %3302 = vrot.lane.b32.xlu0 %v5812_v17, %s3768_s7  ;;  %v1913_v1 = vsel %vm864_vm4, %v1911_v48, %v7295_v19  ;;  %v2497_v40 = vmul.f32 %v7727_v4, %v4223_v37  ;;  %v5835_v27 = vmul.f32 %v5208_v12, %v4223_v37 }
 0x2e1   : > { %7729 = vst [vmem:[#allocation82_spill] sm:$0xff] %v5817_v57  ;;  %v1719_v30 = vadd.f32 %v1703_v32, %v1686_v63  ;;  %v2034_v46 = vsel %vm986_vm5, %v2032_v60, %v7298_v3  ;;  %v2220_v10 = vmul.f32 %v7727_v4, %v4225_v41  ;;  %v2618_v48 = vmul.f32 %v7727_v4, %v4233_v52 }
 0x2e2   : > { %7730 = vst [vmem:[#allocation83_spill] sm:$0xff] %v5823_v2  ;;  %v2155_v19 = vsel %vm1108_vm6, %v2153_v20, %v7302_v54  ;;  %v2428_v16 = vrot.slane %v2376_v22, 2  ;;  %v7306_v17 = vrot.slane %v5823_v2, 2  ;;  %v5850_v32 = vmul.f32 %v5208_v12, %v4233_v52  ;;  %v5859_v22 = vld [vmem:[#allocation2 + $0x98] sm:$0xff] }
 0x2e3   : > { %7731 = vst [vmem:[#allocation84_spill] sm:$0xff] %v5835_v27  ;;  %v1840_v63 = vadd.f32 %v1792_v36, %v1719_v30  ;;  %v7733_v60 = vrot.slane %v5817_v57, 1  ;;  %v2549_v44 = vrot.slane %v2497_v40, 3  ;;  %v2670_v4 = vrot.slane %v2618_v48, 4 }
 0x2e4   : > { %7732 = vst [vmem:[#allocation85_spill] sm:$0xff] %v5850_v32  ;;  %v2772_v20 = vmul.f32 %v4273_v45, %v5124_v13  ;;  %v5863_v12 = vmul.f32 %v5859_v22, %v4273_v45  ;;  %v2893_v30 = vmul.f32 %v4275_v42, %v5124_v13  ;;  %v3014_v40 = vmul.f32 %v4280_v53, %v5124_v13 }
 0x2e5   : > { %v2309_v3 = vsel %vm742_vm3, %v2307_v35, %v7733_v60  ;;  %7734 = vst [vmem:[#allocation86_spill] sm:$0xff] %v5859_v22  ;;  %v1961_v36 = vadd.f32 %v1913_v1, %v1840_v63  ;;  %v5869_v35 = vmul.f32 %v5859_v22, %v4275_v42  ;;  %v2430_v48 = vsel %vm864_vm4, %v2428_v16, %v7306_v17 }
 0x2e6   : > { %7735 = vst [vmem:[#allocation87_spill] sm:$0xff] %v5863_v12  ;;  %v2824_v60 = vrot.slane %v2772_v20, 1  ;;  %v5879_v1 = vmul.f32 %v5859_v22, %v4280_v53  ;;  %v2737_v14 = vmul.f32 %v4271_v28, %v5124_v13  ;;  %v2945_v26 = vrot.slane %v2893_v30, 2 }
 0x2e7   : > { %7736 = vst [vmem:[#allocation88_spill] sm:$0xff] %v5869_v35  ;;  %v2082_v63 = vadd.f32 %v2034_v46, %v1961_v36  ;;  %v7738_v49 = vrot.slane %v5835_v27, 3  ;;  %v7739_v16 = vrot.slane %v5850_v32, 4  ;;  %v3066_v17 = vrot.slane %v3014_v40, 3  ;;  %v5913_v40 = vld [vmem:[#allocation2 + $0xa0] sm:$0xf] }
 0x2e8   : > { %7737 = vst [vmem:[#allocation89_spill] sm:$0xff] %v5879_v1  ;;  %v7312_v54 = vrot.slane %v5879_v1, 3  ;;  %v7740_v46 = vrot.slane %v5863_v12, 1  ;;  %v5896_v30 = vmul.f32 %v4282_v59, %v5124_v13  ;;  %v5900_v57 = vmul.f32 %v5859_v22, %v7622_v5 }
 0x2e9   : > { %v2551_v2 = vsel %vm986_vm5, %v2549_v44, %v7738_v49  ;;  %v2672_v20 = vsel %vm1108_vm6, %v2670_v4, %v7739_v16  ;;  %v2203_v56 = vadd.f32 %v2155_v19, %v2082_v63  ;;  %v7741_v49 = vrot.slane %v5869_v35, 2  ;;  %7743 = vst [vmem:[#allocation91_spill] sm:$0xff] %v5913_v40 }
 0x2ea   : > { %v2826_v36 = vsel %vm742_vm3, %v2824_v60, %v7740_v46  ;;  %v5909_v19 = vmul.f32 %v5859_v22, %v4282_v59  ;;  %v674_v4 = vmul.f32 %v5859_v22, %v7621_v38  ;;  %v714_v13 = vmul.f32 %v5913_v40, %v7622_v5 }
 0x2eb   : > { %v5905_v44 = vsel %vm864_vm4, %v2945_v26, %v7741_v49  ;;  %v2236_v60 = vadd.f32 %v2220_v10, %v2203_v56  ;;  %v5920_v16 = vmul.f32 %v5859_v22, %v7626_v18  ;;  %v836_v26 = vmul.f32 %v5913_v40, %v7626_v18 }
 0x2ec   : > { %7742 = vst [vmem:[#allocation90_spill] sm:$0xff] %v5909_v19  ;;  %v3068_v46 = vsel %vm986_vm5, %v3066_v17, %v7312_v54  ;;  %v776_v49 = vrot.slane %v714_v13, 1  ;;  %v5929_v35 = vmul.f32 %v5859_v22, %v7629_v23  ;;  %v958_v56 = vmul.f32 %v5913_v40, %v7629_v23 }
 0x2ed   : > { %v2357_v10 = vadd.f32 %v2309_v3, %v2236_v60  ;;  %v7318_v63 = vrot.slane %v5920_v16, 2  ;;  %v898_v12 = vrot.slane %v836_v26, 2  ;;  %v5936_v32 = vmul.f32 %v5859_v22, %v4078_v29  ;;  %v5952_v22 = vld [vmem:[#allocation2 + $0xb0] sm:$0xff] }
 0x2ee   : > { %v7744_v1 = vrot.slane %v5900_v57, 1  ;;  %v7317_v13 = vrot.slane %v5929_v35, 3  ;;  %v1020_v54 = vrot.slane %v958_v56, 3  ;;  %v1080_v27 = vmul.f32 %v5913_v40, %v4078_v29  ;;  %7745 = vst [vmem:[#allocation92_spill] sm:$0xff] %v5952_v22 }
 0x2ef   : > { %v2478_v7 = vadd.f32 %v2430_v48, %v2357_v10  ;;  %v899_v3 = vsel %vm864_vm4, %v7318_v63, %v898_v12  ;;  %v7321_v60 = vrot.slane %v5936_v32, 4  ;;  %v3187_v26 = vrot.slane %v5896_v30, 4  ;;  %v5958_v10 = vld [vmem:[#allocation2 + $0xb8] sm:$0xf] }
 0x2f0   : > { %v777_v17 = vsel %vm742_vm3, %v7744_v1, %v776_v49  ;;  %v1021_v1 = vsel %vm986_vm5, %v7317_v13, %v1020_v54  ;;  %v1142_v49 = vrot.slane %v1080_v27, 4  ;;  %v5956_v56 = vmul.f32 %v5952_v22, %v4103_v43  ;;  %7746 = vst [vmem:[#allocation93_spill] sm:$0xff] %v5958_v10 }
 0x2f1   : > { %v812_v62 = vadd.f32 %v777_v17, %v674_v4  ;;  %v2599_v48 = vadd.f32 %v2551_v2, %v2478_v7  ;;  %v1235_v12 = vmul.f32 %v5958_v10, %v4103_v43  ;;  %v5964_v30 = vmul.f32 %v5952_v22, %v4108_v47 }
 0x2f2   : > { %v1143_v54 = vsel %vm1108_vm6, %v7321_v60, %v1142_v49  ;;  %v1356_v17 = vmul.f32 %v5958_v10, %v4108_v47  ;;  %v1477_v49 = vmul.f32 %v5958_v10, %v4116_v51  ;;  %v5983_v60 = vmul.f32 %v5952_v22, %v4127_v55 }
 0x2f3   : > { %v934_v4 = vadd.f32 %v899_v3, %v812_v62  ;;  %v5974_v62 = vmul.f32 %v5952_v22, %v4116_v51  ;;  %v2720_v7 = vadd.f32 %v2672_v20, %v2599_v48  ;;  %v1195_v3 = vmul.f32 %v5952_v22, %v4095_v39 }
 0x2f4   : > { %v1296_v13 = vrot.slane %v1235_v12, 1  ;;  %v1417_v40 = vrot.slane %v1356_v17, 2  ;;  %v7327_v50 = vrot.slane %v5909_v19, 4  ;;  %v1598_v20 = vmul.f32 %v5958_v10, %v4127_v55  ;;  %v6080_v10 = vld [vmem:[#allocation2 + $0x100] sm:$0xf] }
 0x2f5   : > { %v1056_v2 = vadd.f32 %v1021_v1, %v934_v4  ;;  %v2753_v27 = vadd.f32 %v2737_v14, %v2720_v7  ;;  %v7747_v1 = vrot.slane %v5956_v56, 1  ;;  %v7329_v4 = vrot.slane %v5974_v62, 3  ;;  %7757 = vst [vmem:[#allocation99_spill] sm:$0xff] %v6080_v10 }
 0x2f6   : > { %v1538_v12 = vrot.slane %v1477_v49, 3  ;;  %v7328_v17 = vrot.slane %v5983_v60, 4  ;;  %v1659_v22 = vrot.slane %v1598_v20, 4  ;;  %v5995_v14 = vmul.f32 %v4154_v11, %v5346_v34 }
 0x2f7   : > { %v1178_v15 = vadd.f32 %v1143_v54, %v1056_v2  ;;  %v1297_v48 = vsel %vm742_vm3, %v7747_v1, %v1296_v13  ;;  %v2874_v63 = vadd.f32 %v2826_v36, %v2753_v27  ;;  %v7748_v54 = vrot.slane %v5964_v30, 2 }
 0x2f8   : > { %v1752_v2 = vmul.f32 %v4154_v11, %v5631_v58  ;;  %v6004_v13 = vmul.f32 %v4156_v0, %v5346_v34  ;;  %v1873_v36 = vmul.f32 %v4156_v0, %v5631_v58  ;;  %v1660_v49 = vsel %vm1108_vm6, %v7328_v17, %v1659_v22 }
 0x2f9   : > { %v1211_v9 = vadd.f32 %v1195_v3, %v1178_v15  ;;  %v1418_v7 = vsel %vm864_vm4, %v7748_v54, %v1417_v40  ;;  %v2995_v15 = vadd.f32 %v5905_v44, %v2874_v63  ;;  %v3189_v3 = vsel %vm1108_vm6, %v3187_v26, %v7327_v50 }
 0x2fa   : > { %v1539_v40 = vsel %vm986_vm5, %v7329_v4, %v1538_v12  ;;  %v6020_v20 = vmul.f32 %v7575_v31, %v5346_v34  ;;  %v1994_v44 = vmul.f32 %v7575_v31, %v5631_v58  ;;  %v1813_v63 = vrot.slane %v1752_v2, 1 }
 0x2fb   : > { %v1332_v27 = vadd.f32 %v1297_v48, %v1211_v9  ;;  %v3116_v1 = vadd.f32 %v3068_v46, %v2995_v15  ;;  %v7330_v9 = vrot.slane %v5995_v14, 1  ;;  %v7331_v26 = vrot.slane %v6004_v13, 2 }
 0x2fc   : > { %v1934_v48 = vrot.slane %v1873_v36, 2  ;;  %v6028_v12 = vmul.f32 %v4169_v25, %v5346_v34  ;;  %v1712_v17 = vmul.f32 %v7576_v8, %v5346_v34  ;;  %v2115_v46 = vmul.f32 %v4169_v25, %v5631_v58 }
 0x2fd   : > { %v1453_v54 = vadd.f32 %v1418_v7, %v1332_v27  ;;  %v3237_v22 = vadd.f32 %v3189_v3, %v3116_v1  ;;  %v6034_v7 = vld [vmem:[#allocation2 + $0xe8] sm:$0xf]  ;;  %v2055_v2 = vrot.slane %v1994_v44, 3  ;;  %v7751_v27 = vld [vmem:[#allocation55_spill] sm:$0xff]  ;;  %v1814_v1 = vsel %vm742_vm3, %v7330_v9, %v1813_v63 }
 0x2fe   : > { %7749 = vst [vmem:[#allocation94_spill] sm:$0xff] %v6028_v12  ;;  %v6039_v36 = vmul.f32 %v4212_v6, %v7751_v27  ;;  %v6048_v34 = vmul.f32 %v4221_v33, %v7751_v27  ;;  %v6063_v15 = vmul.f32 %v4223_v37, %v7751_v27  ;;  %v2511_v63 = vmul.f32 %v4223_v37, %v6034_v7 }
 0x2ff   : > { %v1574_v50 = vadd.f32 %v1539_v40, %v1453_v54  ;;  %7750 = vst [vmem:[#allocation95_spill] sm:$0xff] %v6034_v7  ;;  %v6042_v4 = vadd.f32 %v5432_v61, %v3237_v22  ;;  %v2269_v40 = vmul.f32 %v4212_v6, %v6034_v7  ;;  %v1935_v54 = vsel %vm864_vm4, %v7331_v26, %v1934_v48 }
 0x300   : > { %7753 = vst [vmem:[#allocation96_spill] sm:$0xff] %v6048_v34  ;;  %v2176_v22 = vrot.slane %v2115_v46, 4  ;;  %v7755_v9 = vrot.slane %v6020_v20, 3  ;;  %v6073_v44 = vmul.f32 %v4233_v52, %v7751_v27  ;;  %v6077_v46 = vld [vmem:[#allocation2 + $0xf8] sm:$0xff]  ;;  %v7347_v19 = vrot.slane %v6048_v34, 2 }
 0x301   : > { %7752 = vst [vmem:[#allocation55_spill] sm:$0xff] %v6042_v4  ;;  %v1695_v3 = vadd.f32 %v1660_v49, %v1574_v50  ;;  %v2390_v50 = vmul.f32 %v4221_v33, %v6034_v7  ;;  %3292 = vrot.lane.b32.xlu2 %v6042_v4, %s3768_s7  ;;  %v2330_v4 = vrot.slane %v2269_v40, 1  ;;  %v6086_v21 = vmul.f32 %v4273_v45, %v6077_v46 }
 0x302   : > { %7754 = vst [vmem:[#allocation97_spill] sm:$0xff] %v6063_v15  ;;  %v2056_v48 = vsel %vm986_vm5, %v7755_v9, %v2055_v2  ;;  %v2572_v2 = vrot.slane %v2511_v63, 3  ;;  %v6092_v40 = vmul.f32 %v4275_v42, %v6077_v46  ;;  %v2229_v63 = vmul.f32 %v4225_v41, %v7751_v27 }
 0x303   : > { %v1728_v49 = vadd.f32 %v1712_v17, %v1695_v3  ;;  %v2632_v17 = vmul.f32 %v4233_v52, %v6034_v7  ;;  %7756 = vst [vmem:[#allocation98_spill] sm:$0xff] %v6077_v46  ;;  %v2451_v58 = vrot.slane %v2390_v50, 2  ;;  %v7760_v50 = vrot.slane %v6028_v12, 4 }
 0x304   : > { %7758 = vst [vmem:[#allocation100_spill] sm:$0xff] %v6086_v21  ;;  %v2907_v26 = vmul.f32 %v4275_v42, %v6080_v10  ;;  %v7762_v27 = vrot.slane %v6063_v15, 3  ;;  %v7360_v42 = vrot.slane %v6086_v21, 1  ;;  %v6126_v15 = vmul.f32 %v4282_v59, %v6077_v46 }
 0x305   : > { %v1849_v3 = vadd.f32 %v1814_v1, %v1728_v49  ;;  %v2693_v7 = vrot.slane %v2632_v17, 4  ;;  %v2786_v1 = vmul.f32 %v4273_v45, %v6080_v10  ;;  %7759 = vst [vmem:[#allocation101_spill] sm:$0xff] %v6092_v40  ;;  %v2177_v49 = vsel %vm1108_vm6, %v7760_v50, %v2176_v22 }
 0x306   : > { %v2452_v61 = vsel %vm864_vm4, %v7347_v19, %v2451_v58  ;;  %v2746_v22 = vmul.f32 %v4271_v28, %v6077_v46  ;;  %v2573_v50 = vsel %vm986_vm5, %v7762_v27, %v2572_v2  ;;  %v2968_v19 = vrot.slane %v2907_v26, 2 }
 0x307   : > { %v1970_v24 = vadd.f32 %v1935_v54, %v1849_v3  ;;  %v6103_v54 = vmul.f32 %v4280_v53, %v6077_v46  ;;  %v7761_v3 = vrot.slane %v6039_v36, 1  ;;  %v2847_v12 = vrot.slane %v2786_v1, 1  ;;  %v6130_v1 = vld [vmem:[#allocation2 + $0x90] sm:$0xff] }
 0x308   : > { %v3149_v2 = vmul.f32 %v4282_v59, %v6080_v10  ;;  %7764 = vst [vmem:[#allocation102_spill] sm:$0xff] %v6130_v1  ;;  %v834_v26 = vmul.f32 %v6130_v1, %v7626_v18  ;;  %v956_v27 = vmul.f32 %v6130_v1, %v7629_v23  ;;  %v6145_v59 = vld [vmem:[#allocation2 + $0xa8] sm:$0xff] }
 0x309   : > { %v2091_v17 = vadd.f32 %v2056_v48, %v1970_v24  ;;  %v2331_v9 = vsel %vm742_vm3, %v7761_v3, %v2330_v4  ;;  %v3028_v24 = vmul.f32 %v4280_v53, %v6080_v10  ;;  %v7763_v4 = vrot.slane %v6073_v44, 4  ;;  %7765 = vst [vmem:[#allocation103_spill] sm:$0xff] %v6145_v59 }
 0x30a   : > { %v1078_v10 = vmul.f32 %v6130_v1, %v4078_v29  ;;  %v1233_v18 = vmul.f32 %v6145_v59, %v4103_v43 }
 0x30b   : > { %v2212_v48 = vadd.f32 %v2177_v49, %v2091_v17  ;;  %v2694_v3 = vsel %vm1108_vm6, %v7763_v4, %v2693_v7  ;;  %v712_v49 = vmul.f32 %v6130_v1, %v7622_v5  ;;  %v673_v7 = vmul.f32 %v6130_v1, %v7621_v38 }
 0x30c   : > { %v2848_v4 = vsel %vm742_vm3, %v7360_v42, %v2847_v12  ;;  %v3089_v34 = vrot.slane %v3028_v24, 3  ;;  %v7766_v38 = vrot.slane %v5900_v57, 1  ;;  %v1139_v21 = vrot.slane %v1078_v10, 4 }
 0x30d   : > { %v2245_v17 = vadd.f32 %v2229_v63, %v2212_v48  ;;  %v773_v58 = vrot.slane %v712_v49, 1  ;;  %v895_v63 = vrot.slane %v834_v26, 2  ;;  %v1017_v48 = vrot.slane %v956_v27, 3 }
 0x30e   : > { %v1354_v12 = vmul.f32 %v6145_v59, %v4108_v47  ;;  %v1475_v24 = vmul.f32 %v6145_v59, %v4116_v51  ;;  %v7768_v27 = vrot.slane %v5920_v16, 2  ;;  %v7769_v57 = vrot.slane %v6103_v54, 3 }
 0x30f   : > { %v2366_v46 = vadd.f32 %v2331_v9, %v2245_v17  ;;  %v775_v23 = vsel %vm742_vm3, %v773_v58, %v7766_v38  ;;  %v7767_v9 = vrot.slane %v6092_v40, 2  ;;  %v7366_v10 = vrot.slane %v6126_v15, 4 }
 0x310   : > { %v811_v26 = vadd.f32 %v775_v23, %v673_v7  ;;  %v897_v42 = vsel %vm864_vm4, %v895_v63, %v7768_v27  ;;  %v3090_v38 = vsel %vm986_vm5, %v7769_v57, %v3089_v34  ;;  %v3210_v58 = vrot.slane %v3149_v2, 4  ;;  %v7772_v34 = vld [vmem:[#allocation48_spill] sm:$0xff] }
 0x311   : > { %v2487_v49 = vadd.f32 %v2452_v61, %v2366_v46  ;;  %v2969_v17 = vsel %vm864_vm4, %v7767_v9, %v2968_v19  ;;  %v7770_v1 = vrot.slane %v5929_v35, 3  ;;  %v1293_v40 = vrot.slane %v1233_v18, 1 }
 0x312   : > { %v933_v51 = vadd.f32 %v897_v42, %v811_v26  ;;  %v1414_v19 = vrot.slane %v1354_v12, 2  ;;  %v7771_v23 = vrot.slane %v5936_v32, 4  ;;  %v1535_v7 = vrot.slane %v1475_v24, 3 }
 0x313   : > { %v1019_v61 = vsel %vm986_vm5, %v1017_v48, %v7770_v1  ;;  %v2608_v46 = vadd.f32 %v2573_v50, %v2487_v49  ;;  %v1596_v63 = vmul.f32 %v6145_v59, %v4127_v55  ;;  %v1750_v9 = vmul.f32 %v4154_v11, %v7772_v34 }
 0x314   : > { %v1141_v16 = vsel %vm1108_vm6, %v1139_v21, %v7771_v23  ;;  %v1055_v27 = vadd.f32 %v1019_v61, %v933_v51  ;;  %v1194_v35 = vmul.f32 %v6145_v59, %v4095_v39  ;;  %v1871_v42 = vmul.f32 %v4156_v0, %v7772_v34  ;;  %v7776_v61 = vld [vmem:[#allocation54_spill] sm:$0xff] }
 0x315   : > { %v2729_v2 = vadd.f32 %v2694_v3, %v2608_v46  ;;  %v3211_v18 = vsel %vm1108_vm6, %v7366_v10, %v3210_v58  ;;  %v1711_v21 = vmul.f32 %v7576_v8, %v7772_v34  ;;  %v1992_v32 = vmul.f32 %v7575_v31, %v7772_v34 }
 0x316   : > { %v2113_v50 = vmul.f32 %v4169_v25, %v7772_v34  ;;  %v1177_v3 = vadd.f32 %v1141_v16, %v1055_v27  ;;  %v7773_v1 = vrot.slane %v5956_v56, 1  ;;  %v7774_v12 = vrot.slane %v5964_v30, 2 }
 0x317   : > { %v2762_v51 = vadd.f32 %v2746_v22, %v2729_v2  ;;  %v7775_v49 = vrot.slane %v5974_v62, 3  ;;  %v1656_v57 = vrot.slane %v1596_v63, 4  ;;  %v1810_v58 = vrot.slane %v1750_v9, 1  ;;  %v654_v22 = vld [vmem:[#allocation2 + $0xf0] sm:$0xff] }
 0x318   : > { %v1295_v48 = vsel %vm742_vm3, %v1293_v40, %v7773_v1  ;;  %v1416_v24 = vsel %vm864_vm4, %v1414_v19, %v7774_v12  ;;  %v2267_v46 = vmul.f32 %v4212_v6, %v7776_v61  ;;  %v1210_v16 = vadd.f32 %v1194_v35, %v1177_v3 }
 0x319   : > { %v1537_v26 = vsel %vm986_vm5, %v1535_v7, %v7775_v49  ;;  %v2883_v23 = vadd.f32 %v2848_v4, %v2762_v51  ;;  %v1931_v34 = vrot.slane %v1871_v42, 2  ;;  %v2388_v56 = vmul.f32 %v4221_v33, %v7776_v61 }
 0x31a   : > { %v2052_v40 = vrot.slane %v1992_v32, 3  ;;  %v2173_v30 = vrot.slane %v2113_v50, 4  ;;  %v2327_v2 = vrot.slane %v2267_v46, 1  ;;  %v2509_v62 = vmul.f32 %v4223_v37, %v7776_v61 }
 0x31b   : > { %v3004_v19 = vadd.f32 %v2969_v17, %v2883_v23  ;;  %v1331_v7 = vadd.f32 %v1295_v48, %v1210_v16  ;;  %v6206_v63 = vmul.f32 %v4225_v41, %v7776_v61  ;;  %v2630_v4 = vmul.f32 %v4233_v52, %v7776_v61 }
 0x31c   : > { %v7777_v9 = vrot.slane %v5983_v60, 4  ;;  %v2448_v35 = vrot.slane %v2388_v56, 2  ;;  %v2569_v42 = vrot.slane %v2509_v62, 3  ;;  %v2784_v32 = vmul.f32 %v4273_v45, %v654_v22 }
 0x31d   : > { %v3125_v50 = vadd.f32 %v3090_v38, %v3004_v19  ;;  %v1452_v51 = vadd.f32 %v1416_v24, %v1331_v7  ;;  %v7778_v17 = vrot.slane %v5995_v14, 1  ;;  %v2690_v1 = vrot.slane %v2630_v4, 4 }
 0x31e   : > { %v1658_v27 = vsel %vm1108_vm6, %v1656_v57, %v7777_v9  ;;  %v7779_v48 = vrot.slane %v6004_v13, 2  ;;  %v7780_v49 = vrot.slane %v6020_v20, 3  ;;  %v7781_v57 = vld [vmem:[#allocation94_spill] sm:$0xff]  ;;  %v7783_v38 = vrot.slane %v6039_v36, 1  ;;  %v7784_v13 = vld [vmem:[#allocation29_spill] sm:$0xff] }
 0x31f   : > { %v1812_v3 = vsel %vm742_vm3, %v1810_v58, %v7778_v17  ;;  %v7782_v61 = vrot.slane %v7781_v57, 4  ;;  %v3246_v14 = vadd.f32 %v3211_v18, %v3125_v50  ;;  %v1573_v58 = vadd.f32 %v1537_v26, %v1452_v51  ;;  %v7789_v18 = vld [vmem:[#allocation57_spill] sm:$0xff]  ;;  %v3707_v9 = vld [vmem:[#allocation2 + $0x40] sm:$0xf]  ;;  %v7792_v50 = vld [vmem:[#allocation32_spill] sm:$0xff] }
 0x320   : > { %v1933_v12 = vsel %vm864_vm4, %v1931_v34, %v7779_v48  ;;  %v2054_v60 = vsel %vm986_vm5, %v2052_v40, %v7780_v49  ;;  %v6229_v24 = vsel %vm742_vm3, %v2327_v2, %v7783_v38  ;;  %v6232_v23 = vmul.f32 %v4271_v28, %v654_v22  ;;  %v7785_v34 = vld [vmem:[#allocation96_spill] sm:$0xff]  ;;  %v7787_v40 = vld [vmem:[#allocation97_spill] sm:$0xff]  ;;  %v7796_v57 = vld [vmem:[#allocation7_spill] sm:$0xff] }
 0x321   : > { %v2175_v46 = vsel %vm1108_vm6, %v2173_v30, %v7782_v61  ;;  %v2905_v16 = vmul.f32 %v7784_v13, %v654_v22  ;;  %v7786_v20 = vrot.slane %v7785_v34, 2  ;;  %v7788_v62 = vrot.slane %v7787_v40, 3  ;;  %v7793_v17 = vld [vmem:[#allocation4_spill] sm:$0xff]  ;;  %v3708_v40 = vld [vmem:[#allocation2 + $0x58] sm:$0xf] }
 0x322   : > { %v2844_v36 = vrot.slane %v2784_v32, 1  ;;  %v3026_v2 = vmul.f32 %v4280_v53, %v654_v22  ;;  %v6247_v26 = vadd.f32 %v7789_v18, %v3246_v14  ;;  %v1694_v19 = vadd.f32 %v1658_v27, %v1573_v58  ;;  %v7795_v32 = vld [vmem:[#allocation6_spill] sm:$0xff]  ;;  %v7797_v14 = vld [vmem:[#allocation100_spill] sm:$0xff] }
 0x323   : > { %v6238_v56 = vsel %vm864_vm4, %v2448_v35, %v7786_v20  ;;  %v6243_v30 = vsel %vm986_vm5, %v2569_v42, %v7788_v62  ;;  %v7791_v7 = vrot.slane %v6073_v44, 4  ;;  %v702_v35 = vmul.f32 %v3707_v9, %v7622_v5  ;;  %v7794_v42 = vld [vmem:[#allocation69_spill] sm:$0xff] }
 0x324   : > { %7790 = vst [vmem:[#allocation48_spill] sm:$0xff] %v6247_v26  ;;  %v3147_v51 = vmul.f32 %v7792_v50, %v654_v22  ;;  %v666_v48 = vmul.f32 %v7794_v42, %v7793_v17  ;;  %v824_v49 = vmul.f32 %v3707_v9, %v7795_v32  ;;  %v946_v61 = vmul.f32 %v3707_v9, %v7796_v57 }
 0x325   : > { %v6252_v4 = vsel %vm1108_vm6, %v2690_v1, %v7791_v7  ;;  %3310 = vrot.lane.b32.xlu1 %v6247_v26, %s3768_s7  ;;  %v1727_v27 = vadd.f32 %v1711_v21, %v1694_v19  ;;  %v2965_v44 = vrot.slane %v2905_v16, 2  ;;  %v756_v38 = vrot.slane %v702_v35, 1  ;;  %v7799_v7 = vld [vmem:[#allocation70_spill] sm:$0xff] }
 0x326   : > { %v1068_v1 = vmul.f32 %v3707_v9, %v4078_v29  ;;  %v7798_v58 = vrot.slane %v7797_v14, 1  ;;  %v878_v22 = vrot.slane %v824_v49, 2  ;;  %v1000_v20 = vrot.slane %v946_v61, 3  ;;  %v7801_v14 = vld [vmem:[#allocation71_spill] sm:$0xff]  ;;  %v7803_v61 = vld [vmem:[#allocation101_spill] sm:$0xff] }
 0x327   : > { %v1223_v62 = vmul.f32 %v3708_v40, %v4103_v43  ;;  %v1848_v18 = vadd.f32 %v1812_v3, %v1727_v27  ;;  %v7800_v42 = vrot.slane %v7799_v7, 1  ;;  %v1344_v16 = vmul.f32 %v3708_v40, %v4108_v47  ;;  %v7805_v3 = vld [vmem:[#allocation72_spill] sm:$0xff] }
 0x328   : > { %v6266_v34 = vsel %vm742_vm3, %v2844_v36, %v7798_v58  ;;  %v1122_v21 = vrot.slane %v1068_v1, 4  ;;  %v3086_v19 = vrot.slane %v3026_v2, 3  ;;  %v3207_v9 = vrot.slane %v3147_v51, 4  ;;  %v7807_v1 = vld [vmem:[#allocation12_spill] sm:$0xff]  ;;  %v7808_v2 = vld [vmem:[#allocation73_spill] sm:$0xff] }
 0x329   : > { %v757_v10 = vsel %vm742_vm3, %v7800_v42, %v756_v38  ;;  %v7802_v26 = vrot.slane %v7801_v14, 2  ;;  %v1969_v49 = vadd.f32 %v1933_v12, %v1848_v18  ;;  %v7804_v58 = vrot.slane %v7803_v61, 2 }
 0x32a   : > { %v804_v35 = vadd.f32 %v757_v10, %v666_v48  ;;  %v7806_v27 = vrot.slane %v7805_v3, 3  ;;  %v1465_v7 = vmul.f32 %v3708_v40, %v7807_v1  ;;  %v7809_v51 = vrot.slane %v7808_v2, 4  ;;  %v7817_v2 = vld [vmem:[#allocation75_spill] sm:$0xff] }
 0x32b   : > { %v879_v36 = vsel %vm864_vm4, %v7802_v26, %v878_v22  ;;  %v6279_v59 = vsel %vm864_vm4, %v2965_v44, %v7804_v58  ;;  %v1276_v48 = vrot.slane %v1223_v62, 1  ;;  %v1586_v26 = vmul.f32 %v3708_v40, %v4127_v55  ;;  %v7810_v44 = vld [vmem:[#allocation58_spill] sm:$0xff]  ;;  %v7811_v58 = vld [vmem:[#allocation37_spill] sm:$0xff] }
 0x32c   : > { %v1001_v38 = vsel %vm986_vm5, %v7806_v27, %v1000_v20  ;;  %v926_v42 = vadd.f32 %v879_v36, %v804_v35  ;;  %v1123_v10 = vsel %vm1108_vm6, %v7809_v51, %v1122_v21  ;;  %v2090_v12 = vadd.f32 %v2054_v60, %v1969_v49  ;;  %v7814_v27 = vld [vmem:[#allocation14_spill] sm:$0xff] }
 0x32d   : > { %v1397_v22 = vrot.slane %v1344_v16, 2  ;;  %v1518_v18 = vrot.slane %v1465_v7, 3  ;;  %v1740_v14 = vmul.f32 %v7810_v44, %v4154_v11  ;;  %v1187_v20 = vmul.f32 %v7811_v58, %v4095_v39  ;;  %v3709_v16 = vld [vmem:[#allocation2 + $0x70] sm:$0xf]  ;;  %3364 = vrot.lane.b32.xlu1 %v7814_v27, %s3769_s10  ;;  %v7815_v7 = vld [vmem:[#allocation74_spill] sm:$0xff] }
 0x32e   : > { %v1048_v61 = vadd.f32 %v1001_v38, %v926_v42  ;;  %v1639_v3 = vrot.slane %v1586_v26, 4  ;;  %v1861_v35 = vmul.f32 %v7810_v44, %v4156_v0  ;;  %v2211_v36 = vadd.f32 %v2175_v46, %v2090_v12  ;;  %v3710_v42 = vld [vmem:[#allocation2 + $0x68] sm:$0xff] }
 0x32f   : > { %v7812_v21 = vrot.slane %v6103_v54, 3  ;;  %v7813_v60 = vrot.slane %v6126_v15, 4  ;;  %v1982_v49 = vmul.f32 %v3709_v16, %v7575_v31  ;;  %v7816_v46 = vrot.slane %v7815_v7, 1  ;;  %v7819_v12 = vld [vmem:[#allocation76_spill] sm:$0xff] }
 0x330   : > { %v1170_v38 = vadd.f32 %v1123_v10, %v1048_v61  ;;  %v2103_v15 = vmul.f32 %v3709_v16, %v4169_v25  ;;  %v7818_v51 = vrot.slane %v7817_v2, 2  ;;  %v7820_v44 = vrot.slane %v7819_v12, 3 }
 0x331   : > { %v6298_v62 = vsel %vm986_vm5, %v3086_v19, %v7812_v21  ;;  %v6303_v40 = vsel %vm1108_vm6, %v3207_v9, %v7813_v60  ;;  %v1277_v54 = vsel %vm742_vm3, %v7816_v46, %v1276_v48  ;;  %v1704_v19 = vmul.f32 %v3710_v42, %v7576_v8  ;;  %v7821_v21 = vld [vmem:[#allocation77_spill] sm:$0xff] }
 0x332   : > { %v2244_v9 = vadd.f32 %v6206_v63, %v2211_v36  ;;  %v1398_v26 = vsel %vm864_vm4, %v7818_v51, %v1397_v22  ;;  %v1519_v58 = vsel %vm986_vm5, %v7820_v44, %v1518_v18  ;;  %v1793_v10 = vrot.slane %v1740_v14, 1  ;;  %v7823_v46 = vld [vmem:[#allocation25_spill] sm:$0xff]  ;;  %v7824_v51 = vld [vmem:[#allocation91_spill] sm:$0xff] }
 0x333   : > { %v1203_v61 = vadd.f32 %v1187_v20, %v1170_v38  ;;  %v7822_v60 = vrot.slane %v7821_v21, 4  ;;  %v1914_v7 = vrot.slane %v1861_v35, 2  ;;  %v2257_v16 = vmul.f32 %v7823_v46, %v4212_v6 }
 0x334   : > { %v2365_v63 = vadd.f32 %v6229_v24, %v2244_v9  ;;  %v2035_v36 = vrot.slane %v1982_v49, 3  ;;  %v2378_v22 = vmul.f32 %v7823_v46, %v4221_v33  ;;  %v2499_v42 = vmul.f32 %v7823_v46, %v4223_v37  ;;  %v7825_v9 = vld [vmem:[#allocation78_spill] sm:$0xff] }
 0x335   : > { %v1640_v48 = vsel %vm1108_vm6, %v7822_v60, %v1639_v3  ;;  %v1324_v18 = vadd.f32 %v1277_v54, %v1203_v61  ;;  %v2156_v14 = vrot.slane %v2103_v15, 4  ;;  %v2310_v20 = vrot.slane %v2257_v16, 1  ;;  %v7827_v61 = vld [vmem:[#allocation79_spill] sm:$0xff] }
 0x336   : > { %v2620_v38 = vmul.f32 %v7823_v46, %v4233_v52  ;;  %v2486_v3 = vadd.f32 %v6238_v56, %v2365_v63  ;;  %v2431_v35 = vrot.slane %v2378_v22, 2  ;;  %v2552_v2 = vrot.slane %v2499_v42, 3  ;;  %v7829_v46 = vld [vmem:[#allocation80_spill] sm:$0xff]  ;;  %v7831_v22 = vld [vmem:[#allocation15_spill] sm:$0xff] }
 0x337   : > { %v6335_v24 = vmul.f32 %v7824_v51, %v4273_v45  ;;  %v1445_v49 = vadd.f32 %v1398_v26, %v1324_v18  ;;  %v7826_v12 = vrot.slane %v7825_v9, 1  ;;  %v6342_v54 = vmul.f32 %v7824_v51, %v7784_v13  ;;  %v6351_v26 = vld [vmem:[#allocation2 + $0x80] sm:$0xff]  ;;  %3370 = vrot.lane.b32.xlu1 %v7831_v22, %s3769_s10  ;;  %v7832_v18 = vld [vmem:[#allocation81_spill] sm:$0xff] }
 0x338   : > { %v2673_v21 = vrot.slane %v2620_v38, 4  ;;  %v2607_v15 = vadd.f32 %v6243_v30, %v2486_v3  ;;  %v7828_v56 = vrot.slane %v7827_v61, 2  ;;  %v7830_v16 = vrot.slane %v7829_v46, 3  ;;  %v7834_v3 = vld [vmem:[#allocation82_spill] sm:$0xff] }
 0x339   : > { %v1794_v44 = vsel %vm742_vm3, %v7826_v12, %v1793_v10  ;;  %v2221_v10 = vmul.f32 %v6351_v26, %v4225_v41  ;;  %v1566_v42 = vadd.f32 %v1519_v58, %v1445_v49  ;;  %v7833_v38 = vrot.slane %v7832_v18, 4  ;;  %v7839_v58 = vld [vmem:[#allocation84_spill] sm:$0xff] }
 0x33a   : > { %v1915_v60 = vsel %vm864_vm4, %v7828_v56, %v1914_v7  ;;  %v2036_v63 = vsel %vm986_vm5, %v7830_v16, %v2035_v36  ;;  %v7835_v9 = vrot.slane %v7834_v3, 1  ;;  %v7836_v36 = vld [vmem:[#allocation86_spill] sm:$0xff]  ;;  %v2728_v61 = vadd.f32 %v6252_v4, %v2607_v15  ;;  %v7837_v56 = vld [vmem:[#allocation83_spill] sm:$0xff]  ;;  %v7843_v15 = vld [vmem:[#allocation92_spill] sm:$0xff] }
 0x33b   : > { %v2157_v30 = vsel %vm1108_vm6, %v7833_v38, %v2156_v14  ;;  %v6367_v12 = vmul.f32 %v7836_v36, %v4271_v28  ;;  %v7838_v46 = vrot.slane %v7837_v56, 2  ;;  %v7840_v49 = vrot.slane %v7839_v58, 3  ;;  %v7841_v38 = vld [vmem:[#allocation85_spill] sm:$0xff] }
 0x33c   : > { %v6363_v7 = vsel %vm742_vm3, %v7835_v9, %v2310_v20  ;;  %v1687_v20 = vadd.f32 %v1640_v48, %v1566_v42  ;;  %v7842_v3 = vrot.slane %v7841_v38, 4  ;;  %v6389_v36 = vmul.f32 %v7843_v15, %v7622_v5  ;;  %v7845_v56 = vld [vmem:[#allocation93_spill] sm:$0xff] }
 0x33d   : > { %v6373_v16 = vsel %vm864_vm4, %v7838_v46, %v2431_v35  ;;  %v6378_v14 = vsel %vm986_vm5, %v7840_v49, %v2552_v2  ;;  %v2761_v35 = vadd.f32 %v6232_v23, %v2728_v61  ;;  %v6394_v2 = vmul.f32 %v7824_v51, %v4280_v53 }
 0x33e   : > { %v6384_v9 = vsel %vm1108_vm6, %v7842_v3, %v2673_v21  ;;  %7844 = vst [vmem:[#allocation54_spill] sm:$0xff] %v6389_v36  ;;  %v717_v48 = vmul.f32 %v7845_v56, %v7622_v5  ;;  %v6400_v42 = vmul.f32 %v7843_v15, %v7795_v32  ;;  %v1720_v21 = vadd.f32 %v1704_v19, %v1687_v20 }
 0x33f   : > { %v676_v46 = vmul.f32 %v7843_v15, %v7793_v17  ;;  %v839_v23 = vmul.f32 %v7845_v56, %v7795_v32  ;;  %v2882_v61 = vadd.f32 %v6266_v34, %v2761_v35  ;;  %v6410_v49 = vmul.f32 %v7824_v51, %v7792_v50 }
 0x340   : > { %v781_v38 = vrot.slane %v717_v48, 1  ;;  %v7374_v3 = vrot.slane %v6400_v42, 2  ;;  %v1841_v4 = vadd.f32 %v1794_v44, %v1720_v21  ;;  %v6415_v19 = vmul.f32 %v7843_v15, %v7796_v57  ;;  %v7848_v48 = vld [vmem:[#allocation30_spill] sm:$0xff] }
 0x341   : > { %v903_v18 = vrot.slane %v839_v23, 2  ;;  %v961_v20 = vmul.f32 %v7845_v56, %v7796_v57  ;;  %v3003_v58 = vadd.f32 %v6279_v59, %v2882_v61  ;;  %v7846_v34 = vrot.slane %v6389_v36, 1  ;;  %3376 = vrot.lane.b32.xlu1 %v7848_v48, %s3769_s10 }
 0x342   : > { %v6425_v51 = vmul.f32 %v7843_v15, %v4078_v29  ;;  %v1083_v44 = vmul.f32 %v7845_v56, %v4078_v29  ;;  %v1962_v21 = vadd.f32 %v1915_v60, %v1841_v4  ;;  %v7373_v61 = vrot.slane %v6415_v19, 3  ;;  %v6437_v56 = vld [vmem:[#allocation2 + $0xc8] sm:$0xff] }
 0x343   : > { %v782_v35 = vsel %vm742_vm3, %v7846_v34, %v781_v38  ;;  %v904_v59 = vsel %vm864_vm4, %v7374_v3, %v903_v18  ;;  %v3124_v38 = vadd.f32 %v6298_v62, %v3003_v58  ;;  %v1025_v34 = vrot.slane %v961_v20, 3 }
 0x344   : > { %7847 = vst [vmem:[#allocation94_spill] sm:$0xff] %v6425_v51  ;;  %v814_v23 = vadd.f32 %v782_v35, %v676_v46  ;;  %v7372_v15 = vrot.slane %v6425_v51, 4  ;;  %v1147_v22 = vrot.slane %v1083_v44, 4  ;;  %v2083_v27 = vadd.f32 %v2036_v63, %v1962_v21  ;;  %v7850_v46 = vld [vmem:[#allocation64_spill] sm:$0xff] }
 0x345   : > { %v1197_v60 = vmul.f32 %v6437_v56, %v4095_v39  ;;  %v6443_v4 = vmul.f32 %v6437_v56, %v4103_v43  ;;  %v3245_v18 = vadd.f32 %v6303_v40, %v3124_v38  ;;  %v1026_v62 = vsel %vm986_vm5, %v7373_v61, %v1025_v34  ;;  %v6462_v40 = vld [vmem:[%s7084_s4] ss:$0 sm:$0xff]  ;;  %v6474_v34 = vld [vmem:[#allocation2 + $0xd0] sm:$0xf] }
 0x346   : > { %v936_v36 = vadd.f32 %v904_v59, %v814_v23  ;;  %v1148_v63 = vsel %vm1108_vm6, %v7372_v15, %v1147_v22  ;;  %v1238_v58 = vmul.f32 %v4103_v43, %v7850_v46  ;;  %v2204_v20 = vadd.f32 %v2157_v30, %v2083_v27 }
 0x347   : > { %7849 = vst [vmem:[#allocation96_spill] sm:$0xff] %v6443_v4  ;;  %v7375_v44 = vrot.slane %v6443_v4, 1  ;;  %v6457_v21 = vmul.f32 %v6437_v56, %v4108_v47  ;;  %v6465_v23 = vadd.f32 %v6462_v40, %v3245_v18  ;;  %v1359_v59 = vmul.f32 %v4108_v47, %v7850_v46  ;;  %v3717_v4 = vld [vmem:[#allocation2 + $0x78] sm:$0xff] }
 0x348   : > { %v1058_v35 = vadd.f32 %v1026_v62, %v936_v36  ;;  %v1301_v22 = vrot.slane %v1238_v58, 1  ;;  %v6471_v27 = vmul.f32 %v6437_v56, %v7807_v1  ;;  %v2237_v30 = vadd.f32 %v2221_v10, %v2204_v20 }
 0x349   : > { %7851 = vst [vmem:[#allocation97_spill] sm:$0xff] %v6457_v21  ;;  %v7376_v38 = vrot.slane %v6457_v21, 2  ;;  %v1480_v62 = vmul.f32 %v6474_v34, %v7807_v1  ;;  %3308 = vrot.lane.b32.xlu0 %v6465_v23, %s3768_s7  ;;  %v1422_v46 = vrot.slane %v1359_v59, 2  ;;  %v6486_v10 = vmul.f32 %v6437_v56, %v4127_v55 }
 0x34a   : > { %7852 = vst [vmem:[#allocation57_spill] sm:$0xff] %v6465_v23  ;;  %v1180_v36 = vadd.f32 %v1148_v63, %v1058_v35  ;;  %v1302_v18 = vsel %vm742_vm3, %v7375_v44, %v1301_v22  ;;  %v7855_v63 = vld [vmem:[#allocation36_spill] sm:$0xff]  ;;  %v2358_v20 = vadd.f32 %v6363_v7, %v2237_v30  ;;  %v1601_v61 = vmul.f32 %v6474_v34, %v4127_v55  ;;  %v6498_v44 = vld [vmem:[#allocation2 + $0xe0] sm:$0xff] }
 0x34b   : > { %7853 = vst [vmem:[#allocation4_spill] sm:$0xff] %v6471_v27  ;;  %3382 = vrot.lane.b32.xlu1 %v7855_v63, %s3769_s10  ;;  %v1543_v15 = vrot.slane %v1480_v62, 3  ;;  %v3069_v3 = vrot.slane %v6394_v2, 3  ;;  %v1423_v22 = vsel %vm864_vm4, %v7376_v38, %v1422_v46  ;;  %v6502_v58 = vmul.f32 %v6498_v44, %v4154_v11  ;;  %v7859_v63 = vld [vmem:[#allocation95_spill] sm:$0xff] }
 0x34c   : > { %7854 = vst [vmem:[#allocation69_spill] sm:$0xff] %v6486_v10  ;;  %v1213_v35 = vadd.f32 %v1197_v60, %v1180_v36  ;;  %v2479_v7 = vadd.f32 %v6373_v16, %v2358_v20  ;;  %v3190_v60 = vrot.slane %v6410_v49, 4  ;;  %v1664_v36 = vrot.slane %v1601_v61, 4 }
 0x34d   : > { %7856 = vst [vmem:[#allocation6_spill] sm:$0xff] %v6498_v44  ;;  %v7858_v2 = vrot.slane %v6471_v27, 3  ;;  %v1755_v46 = vmul.f32 %v4154_v11, %v7859_v63  ;;  %v6513_v38 = vmul.f32 %v6498_v44, %v4156_v0  ;;  %v1876_v59 = vmul.f32 %v4156_v0, %v7859_v63  ;;  %v7864_v27 = vld [vmem:[#allocation87_spill] sm:$0xff] }
 0x34e   : > { %7857 = vst [vmem:[#allocation7_spill] sm:$0xff] %v6502_v58  ;;  %v1334_v30 = vadd.f32 %v1302_v18, %v1213_v35  ;;  %v2600_v16 = vadd.f32 %v6378_v14, %v2479_v7  ;;  %v1714_v49 = vmul.f32 %v6498_v44, %v7576_v8  ;;  %v1997_v48 = vmul.f32 %v7575_v31, %v7859_v63 }
 0x34f   : > { %v1544_v62 = vsel %vm986_vm5, %v7858_v2, %v1543_v15  ;;  %7860 = vst [vmem:[#allocation100_spill] sm:$0xff] %v6513_v38  ;;  %v7861_v15 = vrot.slane %v6486_v10, 4  ;;  %v1818_v35 = vrot.slane %v1755_v46, 1  ;;  %v6526_v2 = vmul.f32 %v6498_v44, %v7575_v31 }
 0x350   : > { %v1455_v20 = vadd.f32 %v1423_v22, %v1334_v30  ;;  %v2721_v14 = vadd.f32 %v6384_v9, %v2600_v16  ;;  %v1939_v30 = vrot.slane %v1876_v59, 2  ;;  %v7863_v61 = vrot.slane %v6335_v24, 1 }
 0x351   : > { %v1665_v18 = vsel %vm1108_vm6, %v7861_v15, %v1664_v36  ;;  %7862 = vst [vmem:[#allocation70_spill] sm:$0xff] %v6526_v2  ;;  %v7865_v10 = vrot.slane %v7864_v27, 1  ;;  %v6539_v46 = vmul.f32 %v6498_v44, %v4169_v25  ;;  %v2118_v15 = vmul.f32 %v4169_v25, %v7859_v63 }
 0x352   : > { %v1576_v22 = vadd.f32 %v1544_v62, %v1455_v20  ;;  %v2754_v9 = vadd.f32 %v6367_v12, %v2721_v14  ;;  %v7867_v59 = vrot.slane %v6342_v54, 2  ;;  %v7868_v62 = vld [vmem:[#allocation88_spill] sm:$0xff]  ;;  %v7872_v7 = vrot.slane %v6502_v58, 1  ;;  %v7873_v12 = vld [vmem:[#allocation90_spill] sm:$0xff] }
 0x353   : > { %v2828_v36 = vsel %vm742_vm3, %v7865_v10, %v7863_v61  ;;  %7866 = vst [vmem:[#allocation71_spill] sm:$0xff] %v6539_v46  ;;  %3388 = vrot.lane.b32.xlu1 %v6465_v23, %s3769_s10  ;;  %v7869_v24 = vrot.slane %v7868_v62, 2  ;;  %v7870_v10 = vld [vmem:[#allocation89_spill] sm:$0xff]  ;;  %v7382_v44 = vrot.slane %v6526_v2, 3  ;;  %v2060_v23 = vrot.slane %v1997_v48, 3 }
 0x354   : > { %v1697_v16 = vadd.f32 %v1665_v18, %v1576_v22  ;;  %v7871_v20 = vrot.slane %v7870_v10, 3  ;;  %v1819_v63 = vsel %vm742_vm3, %v7872_v7, %v1818_v35  ;;  %v2875_v21 = vadd.f32 %v2828_v36, %v2754_v9  ;;  %v7878_v35 = vld [vmem:[#allocation99_spill] sm:$0xff] }
 0x355   : > { %v2949_v27 = vsel %vm864_vm4, %v7869_v24, %v7867_v59  ;;  %v7874_v14 = vrot.slane %v7873_v12, 4  ;;  %v7875_v59 = vrot.slane %v6513_v38, 2  ;;  %v7385_v22 = vrot.slane %v6539_v46, 4  ;;  %v7876_v24 = vld [vmem:[#allocation98_spill] sm:$0xff] }
 0x356   : > { %v3070_v61 = vsel %vm986_vm5, %v7871_v20, %v3069_v3  ;;  %v1730_v62 = vadd.f32 %v1714_v49, %v1697_v16  ;;  %v2181_v3 = vrot.slane %v2118_v15, 4  ;;  %v6567_v10 = vmul.f32 %v4212_v6, %v7876_v24  ;;  %v658_v16 = vld [vmem:[#allocation2 + $0x110] sm:$0xff]  ;;  %v659_v12 = vld [vmem:[#allocation2 + $0x118] sm:$0xf] }
 0x357   : > { %v3191_v54 = vsel %vm1108_vm6, %v7874_v14, %v3190_v60  ;;  %v1940_v18 = vsel %vm864_vm4, %v7875_v59, %v1939_v30  ;;  %v2272_v48 = vmul.f32 %v4212_v6, %v7878_v35  ;;  %v2996_v7 = vadd.f32 %v2949_v27, %v2875_v21 }
 0x358   : > { %7877 = vst [vmem:[#allocation101_spill] sm:$0xff] %v6567_v10  ;;  %v1851_v36 = vadd.f32 %v1819_v63, %v1730_v62  ;;  %v6573_v60 = vmul.f32 %v4221_v33, %v7876_v24  ;;  %v2393_v49 = vmul.f32 %v4221_v33, %v7878_v35  ;;  %v2061_v30 = vsel %vm986_vm5, %v7382_v44, %v2060_v23 }
 0x359   : > { %v6582_v15 = vmul.f32 %v4223_v37, %v7876_v24  ;;  %v2514_v9 = vmul.f32 %v4223_v37, %v7878_v35  ;;  %v6588_v21 = vmul.f32 %v4233_v52, %v7876_v24  ;;  %v3117_v27 = vadd.f32 %v3070_v61, %v2996_v7 }
 0x35a   : > { %7879 = vst [vmem:[#allocation72_spill] sm:$0xff] %v6573_v60  ;;  %v1972_v20 = vadd.f32 %v1940_v18, %v1851_v36  ;;  %v2635_v63 = vmul.f32 %v4233_v52, %v7878_v35  ;;  %v2182_v23 = vsel %vm1108_vm6, %v7385_v22, %v2181_v3  ;;  %v2231_v14 = vmul.f32 %v4225_v41, %v7876_v24 }
 0x35b   : > { %7880 = vst [vmem:[#allocation12_spill] sm:$0xff] %v6582_v15  ;;  %v7386_v62 = vrot.slane %v6567_v10, 1  ;;  %v2335_v59 = vrot.slane %v2272_v48, 1  ;;  %v3238_v44 = vadd.f32 %v3191_v54, %v3117_v27  ;;  %v7387_v61 = vrot.slane %v6573_v60, 2  ;;  %v7885_v60 = vld [vmem:[#allocation19_spill] sm:$0xff] }
 0x35c   : > { %7881 = vst [vmem:[#allocation73_spill] sm:$0xff] %v6588_v21  ;;  %v2093_v2 = vadd.f32 %v2061_v30, %v1972_v20  ;;  %v2456_v7 = vrot.slane %v2393_v49, 2  ;;  %v7388_v18 = vrot.slane %v6582_v15, 3  ;;  %v2577_v36 = vrot.slane %v2514_v9, 3 }
 0x35d   : > { %v7390_v35 = vrot.slane %v6588_v21, 4  ;;  %v6602_v46 = vmul.f32 %v4273_v45, %v658_v16  ;;  %v6605_v3 = vadd.f32 %v6462_v40, %v3238_v44  ;;  %v2698_v22 = vrot.slane %v2635_v63, 4 }
 0x35e   : > { %v2214_v24 = vadd.f32 %v2182_v23, %v2093_v2  ;;  %v2789_v48 = vmul.f32 %v4273_v45, %v659_v12  ;;  %v2336_v54 = vsel %vm742_vm3, %v7386_v62, %v2335_v59  ;;  %v6614_v30 = vmul.f32 %v7784_v13, %v658_v16  ;;  %v3716_v59 = vld [vmem:[#allocation2 + $0x60] sm:$0xff] }
 0x35f   : > { %7882 = vst [vmem:[#allocation58_spill] sm:$0xff] %v6602_v46  ;;  %3294 = vrot.lane.b32.xlu2 %v6605_v3, %s3768_s7  ;;  %v2910_v9 = vmul.f32 %v7784_v13, %v659_v12  ;;  %v2457_v44 = vsel %vm864_vm4, %v7387_v61, %v2456_v7  ;;  %v2578_v2 = vsel %vm986_vm5, %v7388_v18, %v2577_v36  ;;  %v7886_v10 = vrot.slane %v7885_v60, 1 }
 0x360   : > { %v2247_v49 = vadd.f32 %v2231_v14, %v2214_v24  ;;  %7883 = vst [vmem:[#allocation37_spill] sm:$0xff] %v6614_v30  ;;  %v2748_v27 = vmul.f32 %v4271_v28, %v658_v16  ;;  %v2699_v23 = vsel %vm1108_vm6, %v7390_v35, %v2698_v22  ;;  %v2852_v14 = vrot.slane %v2789_v48, 1 }
 0x361   : > { %v706_v24 = vmul.f32 %v3716_v59, %v7622_v5  ;;  %v669_v62 = vmul.f32 %v3716_v59, %v7793_v17  ;;  %v828_v7 = vmul.f32 %v3716_v59, %v7795_v32  ;;  %v950_v61 = vmul.f32 %v3716_v59, %v7796_v57 }
 0x362   : > { %v2368_v63 = vadd.f32 %v2336_v54, %v2247_v49  ;;  %v1072_v36 = vmul.f32 %v3716_v59, %v4078_v29  ;;  %v2973_v54 = vrot.slane %v2910_v9, 2  ;;  %v6635_v21 = vmul.f32 %v4280_v53, %v658_v16 }
 0x363   : > { %v763_v49 = vrot.slane %v706_v24, 1  ;;  %v3031_v22 = vmul.f32 %v4280_v53, %v659_v12  ;;  %v885_v48 = vrot.slane %v828_v7, 2  ;;  %v1007_v35 = vrot.slane %v950_v61, 3  ;;  %v7888_v24 = vld [vmem:[#allocation18_spill] sm:$0xff] }
 0x364   : > { %v2489_v18 = vadd.f32 %v2457_v44, %v2368_v63  ;;  %7884 = vst [vmem:[#allocation74_spill] sm:$0xff] %v6635_v21  ;;  %v1129_v58 = vrot.slane %v1072_v36, 4  ;;  %v1227_v44 = vmul.f32 %v3717_v4, %v4103_v43  ;;  %v6643_v63 = vmul.f32 %v7792_v50, %v658_v16 }
 0x365   : > { %v765_v38 = vsel %vm742_vm3, %v763_v49, %v7886_v10  ;;  %v3152_v9 = vmul.f32 %v7792_v50, %v659_v12  ;;  %v7889_v20 = vrot.slane %v7888_v24, 2  ;;  %v7891_v10 = vld [vmem:[#allocation20_spill] sm:$0xff]  ;;  %v1348_v49 = vmul.f32 %v3717_v4, %v4108_v47 }
 0x366   : > { %v2610_v15 = vadd.f32 %v2578_v2, %v2489_v18  ;;  %7887 = vst [vmem:[#allocation75_spill] sm:$0xff] %v6643_v63  ;;  %v807_v59 = vadd.f32 %v765_v38, %v669_v62  ;;  %v7890_v18 = vrot.slane %v6602_v46, 1  ;;  %v7892_v2 = vrot.slane %v7891_v10, 3 }
 0x367   : > { %v887_v7 = vsel %vm864_vm4, %v885_v48, %v7889_v20  ;;  %v7398_v16 = vrot.slane %v6635_v21, 3  ;;  %v3094_v51 = vrot.slane %v3031_v22, 3  ;;  %v1469_v38 = vmul.f32 %v3717_v4, %v7807_v1 }
 0x368   : > { %v2731_v61 = vadd.f32 %v2699_v23, %v2610_v15  ;;  %v2853_v60 = vsel %vm742_vm3, %v7890_v18, %v2852_v14  ;;  %v1009_v36 = vsel %vm986_vm5, %v1007_v35, %v7892_v2  ;;  %v929_v12 = vadd.f32 %v887_v7, %v807_v59  ;;  %v7894_v23 = vld [vmem:[#allocation23_spill] sm:$0xff] }
 0x369   : > { %v7893_v20 = vrot.slane %v6614_v30, 2  ;;  %v7895_v48 = vrot.slane %v7894_v23, 4  ;;  %v1283_v24 = vrot.slane %v1227_v44, 1  ;;  %v7399_v35 = vrot.slane %v6643_v63, 4  ;;  %v7897_v23 = vld [vmem:[#allocation24_spill] sm:$0xff] }
 0x36a   : > { %v2764_v62 = vadd.f32 %v2748_v27, %v2731_v61  ;;  %v3215_v18 = vrot.slane %v3152_v9, 4  ;;  %v1051_v10 = vadd.f32 %v1009_v36, %v929_v12  ;;  %v1190_v2 = vmul.f32 %v3717_v4, %v4095_v39  ;;  %v3719_v63 = vld [vmem:[#allocation2 + $0xa0] sm:$0xf] }
 0x36b   : > { %v2974_v15 = vsel %vm864_vm4, %v7893_v20, %v2973_v54  ;;  %v1131_v14 = vsel %vm1108_vm6, %v1129_v58, %v7895_v48  ;;  %v1404_v59 = vrot.slane %v1348_v49, 2  ;;  %v1590_v7 = vmul.f32 %v3717_v4, %v4127_v55  ;;  %v7896_v20 = vld [vmem:[#allocation102_spill] sm:$0xff] }
 0x36c   : > { %v2885_v22 = vadd.f32 %v2853_v60, %v2764_v62  ;;  %v3095_v27 = vsel %vm986_vm5, %v7398_v16, %v3094_v51  ;;  %v1173_v54 = vadd.f32 %v1131_v14, %v1051_v10  ;;  %v1525_v61 = vrot.slane %v1469_v38, 3  ;;  %v7899_v51 = vld [vmem:[#allocation5_spill] sm:$0xff] }
 0x36d   : > { %v1744_v58 = vmul.f32 %v7896_v20, %v4154_v11  ;;  %v7898_v48 = vrot.slane %v7897_v23, 1  ;;  %v1865_v60 = vmul.f32 %v7896_v20, %v4156_v0  ;;  %v3216_v4 = vsel %vm1108_vm6, %v7399_v35, %v3215_v18 }
 0x36e   : > { %v3006_v44 = vadd.f32 %v2974_v15, %v2885_v22  ;;  %v1206_v36 = vadd.f32 %v1190_v2, %v1173_v54  ;;  %v7900_v12 = vrot.slane %v7899_v51, 2  ;;  %v1646_v62 = vrot.slane %v1590_v7, 4  ;;  %v7901_v15 = vld [vmem:[#allocation33_spill] sm:$0xff]  ;;  %v7909_v51 = vld [vmem:[#allocation26_spill] sm:$0xff] }
 0x36f   : > { %v1285_v9 = vsel %vm742_vm3, %v1283_v24, %v7898_v48  ;;  %v7902_v10 = vrot.slane %v7901_v15, 3  ;;  %v1800_v24 = vrot.slane %v1744_v58, 1  ;;  %v1921_v48 = vrot.slane %v1865_v60, 2 }
 0x370   : > { %v3127_v49 = vadd.f32 %v3095_v27, %v3006_v44  ;;  %v1406_v38 = vsel %vm864_vm4, %v1404_v59, %v7900_v12  ;;  %v1327_v14 = vadd.f32 %v1285_v9, %v1206_v36  ;;  %v1986_v16 = vmul.f32 %v7896_v20, %v7575_v31  ;;  %v7904_v59 = vld [vmem:[#allocation21_spill] sm:$0xff]  ;;  %v7906_v44 = vld [vmem:[#allocation34_spill] sm:$0xff] }
 0x371   : > { %v1527_v22 = vsel %vm986_vm5, %v1525_v61, %v7902_v10  ;;  %v2107_v18 = vmul.f32 %v7896_v20, %v4169_v25  ;;  %v7905_v7 = vrot.slane %v7904_v59, 4  ;;  %v1707_v61 = vmul.f32 %v7896_v20, %v7576_v8 }
 0x372   : > { %v3248_v23 = vadd.f32 %v3216_v4, %v3127_v49  ;;  %v1448_v2 = vadd.f32 %v1406_v38, %v1327_v14  ;;  %v7907_v9 = vrot.slane %v7906_v44, 1  ;;  %v7908_v4 = vld [vmem:[#allocation103_spill] sm:$0xff]  ;;  %v7910_v12 = vrot.slane %v7909_v51, 2  ;;  %v3718_v14 = vld [vmem:[#allocation2 + $0x88] sm:$0xf] }
 0x373   : > { %v1648_v54 = vsel %vm1108_vm6, %v1646_v62, %v7905_v7  ;;  %v2224_v36 = vmul.f32 %v7908_v4, %v4225_v41  ;;  %v2261_v49 = vmul.f32 %v7908_v4, %v4212_v6  ;;  %v2042_v62 = vrot.slane %v1986_v16, 3  ;;  %v7913_v51 = vld [vmem:[#allocation39_spill] sm:$0xff] }
 0x374   : > { %v6691_v27 = vadd.f32 %v6462_v40, %v3248_v23  ;;  %v1569_v58 = vadd.f32 %v1527_v22, %v1448_v2  ;;  %v1802_v60 = vsel %vm742_vm3, %v1800_v24, %v7907_v9  ;;  %v1923_v38 = vsel %vm864_vm4, %v1921_v48, %v7910_v12 }
 0x375   : > { %v2163_v20 = vrot.slane %v2107_v18, 4  ;;  %v711_v15 = vmul.f32 %v3718_v14, %v7622_v5  ;;  %v672_v22 = vmul.f32 %v6351_v26, %v7793_v17  ;;  %v833_v24 = vmul.f32 %v3718_v14, %v7795_v32 }
 0x376   : > { %7903 = vst [vmem:[#allocation76_spill] sm:$0xff] %v6691_v27  ;;  %3314 = vrot.lane.b32.xlu0 %v6691_v27, %s3768_s7  ;;  %3394 = vrot.lane.b32.xlu1 %v6691_v27, %s3769_s10  ;;  %v1690_v10 = vadd.f32 %v1648_v54, %v1569_v58  ;;  %v955_v23 = vmul.f32 %v3718_v14, %v7796_v57  ;;  %v2317_v7 = vrot.slane %v2261_v49, 1  ;;  %v7911_v58 = vld [vmem:[#allocation10_spill] sm:$0xff]  ;;  %v7914_v12 = vrot.slane %v7913_v51, 1 }
 0x377   : > { %v2382_v2 = vmul.f32 %v7908_v4, %v4221_v33  ;;  %v2503_v16 = vmul.f32 %v7908_v4, %v4223_v37  ;;  %v771_v48 = vrot.slane %v711_v15, 1  ;;  %v1077_v18 = vmul.f32 %v3718_v14, %v4078_v29  ;;  %v7915_v15 = vld [vmem:[#allocation22_spill] sm:$0xff]  ;;  %v7917_v14 = vld [vmem:[#allocation3_spill] sm:$0xff] }
 0x378   : > { %v1723_v59 = vadd.f32 %v1707_v61, %v1690_v10  ;;  %v893_v44 = vrot.slane %v833_v24, 2  ;;  %v1015_v54 = vrot.slane %v955_v23, 3  ;;  %v7912_v9 = vrot.slane %v7911_v58, 3  ;;  %v7919_v58 = vld [vmem:[#allocation40_spill] sm:$0xff] }
 0x379   : > { %v772_v35 = vsel %vm742_vm3, %v7914_v12, %v771_v48  ;;  %v1137_v27 = vrot.slane %v1077_v18, 4  ;;  %v1232_v21 = vmul.f32 %v3719_v63, %v4103_v43  ;;  %v7916_v46 = vrot.slane %v7915_v15, 4  ;;  %v7921_v12 = vld [vmem:[#allocation61_spill] sm:$0xff] }
 0x37a   : > { %v2044_v26 = vsel %vm986_vm5, %v2042_v62, %v7912_v9  ;;  %v1844_v30 = vadd.f32 %v1802_v60, %v1723_v59  ;;  %v810_v49 = vadd.f32 %v772_v35, %v672_v22  ;;  %v7918_v10 = vrot.slane %v7917_v14, 2  ;;  %v3721_v14 = vld [vmem:[#allocation2 + $0x98] sm:$0xff] }
 0x37b   : > { %v2165_v61 = vsel %vm1108_vm6, %v2163_v20, %v7916_v46  ;;  %v2438_v23 = vrot.slane %v2382_v2, 2  ;;  %v2559_v62 = vrot.slane %v2503_v16, 3  ;;  %v7920_v9 = vrot.slane %v7919_v58, 3  ;;  %v6744_v20 = vld [vmem:[#allocation2 + $0xc0] sm:$0xff]  ;;  %v7923_v2 = vld [vmem:[#allocation49_spill] sm:$0xff] }
 0x37c   : > { %v894_v24 = vsel %vm864_vm4, %v7918_v10, %v893_v44  ;;  %v1353_v18 = vmul.f32 %v3719_v63, %v4108_v47  ;;  %v1965_v51 = vadd.f32 %v1923_v38, %v1844_v30  ;;  %v7922_v60 = vrot.slane %v7921_v12, 1  ;;  %v7924_v16 = vld [vmem:[#allocation41_spill] sm:$0xff] }
 0x37d   : > { %v1016_v48 = vsel %vm986_vm5, %v7920_v9, %v1015_v54  ;;  %v2624_v46 = vmul.f32 %v7908_v4, %v4233_v52  ;;  %v932_v35 = vadd.f32 %v894_v24, %v810_v49  ;;  %v6748_v22 = vmul.f32 %v6744_v20, %v4271_v28  ;;  %v7926_v24 = vld [vmem:[#allocation27_spill] sm:$0xff] }
 0x37e   : > { %v2319_v59 = vsel %vm742_vm3, %v2317_v7, %v7922_v60  ;;  %3368 = vrot.lane.b32.xlu0 %v7923_v2, %s3769_s10  ;;  %v7925_v44 = vrot.slane %v7924_v16, 4  ;;  %v1291_v38 = vrot.slane %v1232_v21, 1  ;;  %v1474_v7 = vmul.f32 %v3719_v63, %v7807_v1 }
 0x37f   : > { %v2086_v54 = vadd.f32 %v2044_v26, %v1965_v51  ;;  %v2778_v15 = vmul.f32 %v6744_v20, %v4273_v45  ;;  %v1054_v49 = vadd.f32 %v1016_v48, %v932_v35  ;;  %v1193_v10 = vmul.f32 %v3721_v14, %v4095_v39  ;;  %v7928_v35 = vld [vmem:[#allocation59_spill] sm:$0xff] }
 0x380   : > { %v1138_v30 = vsel %vm1108_vm6, %v7925_v44, %v1137_v27  ;;  %v7927_v58 = vrot.slane %v7926_v24, 2  ;;  %v2899_v12 = vmul.f32 %v6744_v20, %v7784_v13  ;;  %v1412_v60 = vrot.slane %v1353_v18, 2 }
 0x381   : > { %v1595_v21 = vmul.f32 %v3719_v63, %v4127_v55  ;;  %v2207_v27 = vadd.f32 %v2165_v61, %v2086_v54  ;;  %v3020_v26 = vmul.f32 %v6744_v20, %v4280_v53  ;;  %v3141_v48 = vmul.f32 %v6744_v20, %v7792_v50  ;;  %v7930_v53 = vld [vmem:[#allocation9_spill] sm:$0xff] }
 0x382   : > { %v2440_v9 = vsel %vm864_vm4, %v2438_v23, %v7927_v58  ;;  %v1176_v51 = vadd.f32 %v1138_v30, %v1054_v49  ;;  %v7929_v16 = vrot.slane %v7928_v35, 1  ;;  %v1533_v14 = vrot.slane %v1474_v7, 3  ;;  %v3722_v23 = vld [vmem:[#allocation2 + $0xb8] sm:$0xf] }
 0x383   : > { %v1749_v24 = vmul.f32 %v3722_v23, %v4154_v11  ;;  %v1870_v18 = vmul.f32 %v3722_v23, %v4156_v0  ;;  %v2240_v58 = vadd.f32 %v2224_v36, %v2207_v27  ;;  %v2680_v63 = vrot.slane %v2624_v46, 4  ;;  %v7934_v36 = vld [vmem:[#allocation42_spill] sm:$0xff] }
 0x384   : > { %v1292_v44 = vsel %vm742_vm3, %v7929_v16, %v1291_v38  ;;  %v2834_v61 = vrot.slane %v2778_v15, 1  ;;  %v1209_v54 = vadd.f32 %v1193_v10, %v1176_v51  ;;  %v2955_v2 = vrot.slane %v2899_v12, 2  ;;  %v7932_v38 = vld [vmem:[#allocation62_spill] sm:$0xff] }
 0x385   : > { %v7931_v28 = vrot.slane %v7930_v53, 2  ;;  %v1654_v30 = vrot.slane %v1595_v21, 4  ;;  %v1991_v49 = vmul.f32 %v3722_v23, %v7575_v31  ;;  %v2361_v35 = vadd.f32 %v2319_v59, %v2240_v58  ;;  %v7936_v53 = vld [vmem:[#allocation63_spill] sm:$0xff]  ;;  %v7938_v21 = vld [vmem:[#allocation65_spill] sm:$0xff] }
 0x386   : > { %v7933_v7 = vrot.slane %v7932_v38, 3  ;;  %v3076_v13 = vrot.slane %v3020_v26, 3  ;;  %v1330_v11 = vadd.f32 %v1292_v44, %v1209_v54  ;;  %v3197_v0 = vrot.slane %v3141_v48, 4  ;;  %3374 = vrot.lane.b32.xlu0 %v6605_v3, %s3769_s10  ;;  %v7940_v48 = vld [vmem:[#allocation66_spill] sm:$0xff] }
 0x387   : > { %v1413_v50 = vsel %vm864_vm4, %v7931_v28, %v1412_v60  ;;  %v7935_v46 = vrot.slane %v7934_v36, 3  ;;  %v1808_v10 = vrot.slane %v1749_v24, 1  ;;  %v1929_v12 = vrot.slane %v1870_v18, 2  ;;  %v3723_v36 = vld [vmem:[#allocation2 + $0xb0] sm:$0xff] }
 0x388   : > { %v2561_v16 = vsel %vm986_vm5, %v2559_v62, %v7933_v7  ;;  %v2482_v28 = vadd.f32 %v2440_v9, %v2361_v35  ;;  %v7937_v60 = vrot.slane %v7936_v53, 4  ;;  %v7939_v27 = vrot.slane %v7938_v21, 1  ;;  %v7944_v35 = vld [vmem:[#allocation67_spill] sm:$0xff] }
 0x389   : > { %v1534_v15 = vsel %vm986_vm5, %v7935_v46, %v1533_v14  ;;  %v1451_v26 = vadd.f32 %v1413_v50, %v1330_v11  ;;  %v7941_v51 = vrot.slane %v7940_v48, 2  ;;  %v7942_v14 = vld [vmem:[#allocation43_spill] sm:$0xff]  ;;  %v2050_v58 = vrot.slane %v1991_v49, 3  ;;  %v7946_v50 = vld [vmem:[#allocation68_spill] sm:$0xff]  ;;  %v7950_v49 = vld [vmem:[#allocation46_spill] sm:$0xff] }
 0x38a   : > { %v2682_v59 = vsel %vm1108_vm6, %v2680_v63, %v7937_v60  ;;  %v2836_v62 = vsel %vm742_vm3, %v2834_v61, %v7939_v27  ;;  %v7943_v24 = vrot.slane %v7942_v14, 4  ;;  %v2112_v9 = vmul.f32 %v3722_v23, %v4169_v25  ;;  %v7948_v46 = vld [vmem:[#allocation44_spill] sm:$0xff] }
 0x38b   : > { %v2957_v44 = vsel %vm864_vm4, %v2955_v2, %v7941_v51  ;;  %v2603_v54 = vadd.f32 %v2561_v16, %v2482_v28  ;;  %v7945_v38 = vrot.slane %v7944_v35, 3  ;;  %v1572_v7 = vadd.f32 %v1534_v15, %v1451_v26 }
 0x38c   : > { %v1655_v18 = vsel %vm1108_vm6, %v7943_v24, %v1654_v30  ;;  %v1710_v11 = vmul.f32 %v3723_v36, %v7576_v8  ;;  %v7947_v61 = vrot.slane %v7946_v50, 4  ;;  %v7949_v53 = vrot.slane %v7948_v46, 1 }
 0x38d   : > { %v3078_v63 = vsel %vm986_vm5, %v3076_v13, %v7945_v38  ;;  %v7951_v60 = vrot.slane %v7950_v49, 2  ;;  %v2227_v16 = vmul.f32 %v6437_v56, %v4225_v41  ;;  %v2724_v13 = vadd.f32 %v2682_v59, %v2603_v54  ;;  %v7954_v54 = vld [vmem:[#allocation54_spill] sm:$0xff] }
 0x38e   : > { %v3199_v2 = vsel %vm1108_vm6, %v3197_v0, %v7947_v61  ;;  %v1809_v30 = vsel %vm742_vm3, %v7949_v53, %v1808_v10  ;;  %v1693_v15 = vadd.f32 %v1655_v18, %v1572_v7  ;;  %v2266_v28 = vmul.f32 %v6474_v34, %v4212_v6  ;;  %v7952_v0 = vld [vmem:[#allocation8_spill] sm:$0xff] }
 0x38f   : > { %v1930_v23 = vsel %vm864_vm4, %v7951_v60, %v1929_v12  ;;  %v715_v21 = vmul.f32 %v7908_v4, %v7622_v5  ;;  %v7953_v27 = vrot.slane %v7952_v0, 3  ;;  %v2171_v10 = vrot.slane %v2112_v9, 4  ;;  %v7960_v60 = vld [vmem:[#allocation94_spill] sm:$0xff] }
 0x390   : > { %v675_v48 = vmul.f32 %v7908_v4, %v7793_v17  ;;  %v837_v12 = vmul.f32 %v7908_v4, %v7795_v32  ;;  %v2757_v56 = vadd.f32 %v6748_v22, %v2724_v13  ;;  %v1726_v59 = vadd.f32 %v1710_v11, %v1693_v15 }
 0x391   : > { %v2051_v26 = vsel %vm986_vm5, %v7953_v27, %v2050_v58  ;;  %v2387_v51 = vmul.f32 %v6474_v34, %v4221_v33  ;;  %v778_v14 = vrot.slane %v715_v21, 1  ;;  %v2508_v5 = vmul.f32 %v6474_v34, %v4223_v37 }
 0x392   : > { %v900_v24 = vrot.slane %v837_v12, 2  ;;  %v959_v18 = vmul.f32 %v7908_v4, %v7796_v57  ;;  %v1081_v17 = vmul.f32 %v7908_v4, %v4078_v29  ;;  %v2878_v58 = vadd.f32 %v2836_v62, %v2757_v56  ;;  %v7957_v4 = vld [vmem:[#allocation47_spill] sm:$0xff] }
 0x393   : > { %v1847_v9 = vadd.f32 %v1809_v30, %v1726_v59  ;;  %v2325_v32 = vrot.slane %v2266_v28, 1  ;;  %v7955_v22 = vrot.slane %v7954_v54, 1  ;;  %v7956_v7 = vrot.slane %v6400_v42, 2  ;;  %v7968_v54 = vld [vmem:[#allocation97_spill] sm:$0xff] }
 0x394   : > { %v1022_v11 = vrot.slane %v959_v18, 3  ;;  %v1144_v50 = vrot.slane %v1081_v17, 4  ;;  %v2999_v61 = vadd.f32 %v2957_v44, %v2878_v58  ;;  %v1236_v57 = vmul.f32 %v6744_v20, %v4103_v43  ;;  %v7966_v18 = vld [vmem:[#allocation51_spill] sm:$0xff] }
 0x395   : > { %v780_v35 = vsel %vm742_vm3, %v778_v14, %v7955_v22  ;;  %v902_v36 = vsel %vm864_vm4, %v900_v24, %v7956_v7  ;;  %v1968_v46 = vadd.f32 %v1930_v23, %v1847_v9  ;;  %v1357_v29 = vmul.f32 %v6744_v20, %v4108_v47  ;;  %v7964_v14 = vld [vmem:[#allocation96_spill] sm:$0xff] }
 0x396   : > { %v813_v38 = vadd.f32 %v780_v35, %v675_v48  ;;  %v7958_v62 = vrot.slane %v7957_v4, 4  ;;  %v7959_v49 = vrot.slane %v6415_v19, 3  ;;  %v7961_v13 = vrot.slane %v7960_v60, 4  ;;  %v7970_v7 = vld [vmem:[#allocation16_spill] sm:$0xff] }
 0x397   : > { %v3120_v23 = vadd.f32 %v3078_v63, %v2999_v61  ;;  %v2089_v15 = vadd.f32 %v2051_v26, %v1968_v46  ;;  %v1298_v28 = vrot.slane %v1236_v57, 1  ;;  %v1478_v43 = vmul.f32 %v6744_v20, %v7807_v1  ;;  %v7962_v63 = vld [vmem:[#allocation50_spill] sm:$0xff]  ;;  %v7973_v46 = vld [vmem:[#allocation29_spill] sm:$0xff] }
 0x398   : > { %v2172_v53 = vsel %vm1108_vm6, %v7958_v62, %v2171_v10  ;;  %v935_v30 = vadd.f32 %v902_v36, %v813_v38  ;;  %v1024_v42 = vsel %vm986_vm5, %v1022_v11, %v7959_v49  ;;  %v1146_v44 = vsel %vm1108_vm6, %v1144_v50, %v7961_v13  ;;  %v3725_v38 = vld [vmem:[#allocation2 + $0xd8] sm:$0xff]  ;;  %v7971_v11 = vld [vmem:[#allocation52_spill] sm:$0xff]  ;;  %v7978_v13 = vld [vmem:[#allocation17_spill] sm:$0xff] }
 0x399   : > { %v2446_v47 = vrot.slane %v2387_v51, 2  ;;  %v2629_v21 = vmul.f32 %v6474_v34, %v4233_v52  ;;  %v1196_v19 = vmul.f32 %v6744_v20, %v4095_v39  ;;  %v3241_v27 = vadd.f32 %v3199_v2, %v3120_v23  ;;  %v7974_v62 = vld [vmem:[#allocation28_spill] sm:$0xff]  ;;  %v7979_v23 = vld [vmem:[#allocation53_spill] sm:$0xff] }
 0x39a   : > { %v1057_v0 = vadd.f32 %v1024_v42, %v935_v30  ;;  %v2210_v10 = vadd.f32 %v2172_v53, %v2089_v15  ;;  %v1419_v48 = vrot.slane %v1357_v29, 2  ;;  %v1599_v12 = vmul.f32 %v6744_v20, %v4127_v55  ;;  %v3724_v20 = vld [vmem:[#allocation2 + $0xe8] sm:$0xf]  ;;  %v7975_v53 = vld [vmem:[#allocation6_spill] sm:$0xff] }
 0x39b   : > { %v7963_v26 = vrot.slane %v7962_v63, 1  ;;  %v2567_v59 = vrot.slane %v2508_v5, 3  ;;  %v6865_v51 = vadd.f32 %v6462_v40, %v3241_v27  ;;  %v7965_v24 = vrot.slane %v7964_v14, 1  ;;  %v7976_v49 = vld [vmem:[#allocation4_spill] sm:$0xff]  ;;  %v7982_v27 = vld [vmem:[#allocation69_spill] sm:$0xff] }
 0x39c   : > { %v1179_v1 = vadd.f32 %v1146_v44, %v1057_v0  ;;  %v2243_v34 = vadd.f32 %v2227_v16, %v2210_v10  ;;  %v1540_v2 = vrot.slane %v1478_v43, 3  ;;  %v7967_v17 = vrot.slane %v7966_v18, 2 }
 0x39d   : > { %v2326_v56 = vsel %vm742_vm3, %v7963_v26, %v2325_v32  ;;  %v1300_v39 = vsel %vm742_vm3, %v1298_v28, %v7965_v24  ;;  %v2688_v55 = vrot.slane %v2629_v21, 4  ;;  %v2783_v9 = vmul.f32 %v3724_v20, %v4273_v45  ;;  %3300 = vrot.lane.b32.xlu2 %v6865_v51, %s3768_s7  ;;  %3380 = vrot.lane.b32.xlu0 %v6865_v51, %s3769_s10 }
 0x39e   : > { %v2447_v58 = vsel %vm864_vm4, %v7967_v17, %v2446_v47  ;;  %v1212_v32 = vadd.f32 %v1196_v19, %v1179_v1  ;;  %v2364_v5 = vadd.f32 %v2326_v56, %v2243_v34  ;;  %v7969_v16 = vrot.slane %v7968_v54, 2  ;;  %v7981_v47 = vld [vmem:[#allocation31_spill] sm:$0xff]  ;;  %v7984_v56 = vld [vmem:[#allocation32_spill] sm:$0xff] }
 0x39f   : > { %v1661_v35 = vrot.slane %v1599_v12, 4  ;;  %v1753_v36 = vmul.f32 %v3725_v38, %v7970_v7  ;;  %v7972_v50 = vrot.slane %v7971_v11, 3  ;;  %v2904_v57 = vmul.f32 %v3724_v20, %v7973_v46 }
 0x3a0   : > { %v1421_v22 = vsel %vm864_vm4, %v1419_v48, %v7969_v16  ;;  %v1333_v29 = vadd.f32 %v1300_v39, %v1212_v32  ;;  %v2485_v4 = vadd.f32 %v2447_v58, %v2364_v5  ;;  %v2744_v30 = vmul.f32 %v7975_v53, %v7974_v62  ;;  %v7987_v32 = vld [vmem:[#allocation7_spill] sm:$0xff] }
 0x3a1   : > { %v2568_v61 = vsel %vm986_vm5, %v7972_v50, %v2567_v59  ;;  %v7977_v42 = vrot.slane %v7976_v49, 3  ;;  %v1874_v44 = vmul.f32 %v3725_v38, %v7978_v13  ;;  %v7980_v15 = vrot.slane %v7979_v23, 4  ;;  %v3726_v50 = vld [vmem:[#allocation2 + $0xf0] sm:$0xff]  ;;  %v7995_v49 = vld [vmem:[#allocation70_spill] sm:$0xff] }
 0x3a2   : > { %v2842_v43 = vrot.slane %v2783_v9, 1  ;;  %v3025_v21 = vmul.f32 %v3724_v20, %v7981_v47  ;;  %v1454_v0 = vadd.f32 %v1421_v22, %v1333_v29  ;;  %v2606_v19 = vadd.f32 %v2568_v61, %v2485_v4 }
 0x3a3   : > { %v1542_v60 = vsel %vm986_vm5, %v1540_v2, %v7977_v42  ;;  %v2689_v28 = vsel %vm1108_vm6, %v7980_v15, %v2688_v55  ;;  %v7983_v10 = vrot.slane %v7982_v27, 4  ;;  %v1815_v12 = vrot.slane %v1753_v36, 1  ;;  %v7985_v2 = vld [vmem:[#allocation13_spill] sm:$0xff] }
 0x3a4   : > { %v1995_v63 = vmul.f32 %v3725_v38, %v7575_v31  ;;  %v2963_v26 = vrot.slane %v2904_v57, 2  ;;  %v3146_v59 = vmul.f32 %v3724_v20, %v7984_v56  ;;  %v1575_v1 = vadd.f32 %v1542_v60, %v1454_v0  ;;  %v7989_v20 = vld [vmem:[#allocation56_spill] sm:$0xff]  ;;  %v7993_v57 = vld [vmem:[#allocation45_spill] sm:$0xff] }
 0x3a5   : > { %v1663_v48 = vsel %vm1108_vm6, %v1661_v35, %v7983_v10  ;;  %v1713_v34 = vmul.f32 %v3725_v38, %v7576_v8  ;;  %v2727_v14 = vadd.f32 %v2689_v28, %v2606_v19  ;;  %v1936_v24 = vrot.slane %v1874_v44, 2  ;;  %v7997_v44 = vld [vmem:[#allocation11_spill] sm:$0xff] }
 0x3a6   : > { %v2116_v39 = vmul.f32 %v3725_v38, %v4169_v25  ;;  %v7986_v18 = vrot.slane %v7985_v2, 1  ;;  %v3084_v58 = vrot.slane %v3025_v21, 3  ;;  %v1696_v55 = vadd.f32 %v1663_v48, %v1575_v1  ;;  %v7991_v25 = vld [vmem:[#allocation100_spill] sm:$0xff]  ;;  %v7999_v21 = vld [vmem:[#allocation71_spill] sm:$0xff] }
 0x3a7   : > { %v2760_v9 = vadd.f32 %v2744_v30, %v2727_v14  ;;  %v7988_v5 = vrot.slane %v7987_v32, 1  ;;  %v2057_v54 = vrot.slane %v1995_v63, 3  ;;  %v7990_v16 = vrot.slane %v7989_v20, 2 }
 0x3a8   : > { %v2843_v17 = vsel %vm742_vm3, %v7986_v18, %v2842_v43  ;;  %v3205_v22 = vrot.slane %v3146_v59, 4  ;;  %v1729_v35 = vadd.f32 %v1713_v34, %v1696_v55  ;;  %v7992_v38 = vrot.slane %v7991_v25, 2  ;;  %v8001_v34 = vld [vmem:[#allocation101_spill] sm:$0xff]  ;;  %v8005_v55 = vld [vmem:[#allocation12_spill] sm:$0xff] }
 0x3a9   : > { %v1817_v31 = vsel %vm742_vm3, %v1815_v12, %v7988_v5  ;;  %v2964_v8 = vsel %vm864_vm4, %v7990_v16, %v2963_v26  ;;  %v2881_v7 = vadd.f32 %v2843_v17, %v2760_v9  ;;  %v2178_v11 = vrot.slane %v2116_v39, 4  ;;  %v657_v26 = vld [vmem:[#allocation2 + $0x108] sm:$0xff] }
 0x3aa   : > { %v1938_v36 = vsel %vm864_vm4, %v1936_v24, %v7992_v38  ;;  %v2270_v61 = vmul.f32 %v3726_v50, %v4212_v6  ;;  %v7994_v29 = vrot.slane %v7993_v57, 3  ;;  %v1850_v53 = vadd.f32 %v1817_v31, %v1729_v35  ;;  %v8011_v57 = vld [vmem:[#allocation37_spill] sm:$0xff] }
 0x3ab   : > { %v3002_v30 = vadd.f32 %v2964_v8, %v2881_v7  ;;  %v7996_v42 = vrot.slane %v7995_v49, 3  ;;  %v2391_v13 = vmul.f32 %v3726_v50, %v4221_v33  ;;  %v7998_v23 = vrot.slane %v7997_v44, 4 }
 0x3ac   : > { %v3085_v4 = vsel %vm986_vm5, %v7994_v29, %v3084_v58  ;;  %v1971_v28 = vadd.f32 %v1938_v36, %v1850_v53  ;;  %v8000_v6 = vrot.slane %v7999_v21, 4  ;;  %v2332_v19 = vrot.slane %v2270_v61, 1  ;;  %v8009_v36 = vld [vmem:[#allocation58_spill] sm:$0xff]  ;;  %v3285_v21 = vpop.permute.xlu0 %3284 }
 0x3ad   : > { %v2059_v60 = vsel %vm986_vm5, %v2057_v54, %v7996_v42  ;;  %v3206_v15 = vsel %vm1108_vm6, %v7998_v23, %v3205_v22  ;;  %v3123_v43 = vadd.f32 %v3085_v4, %v3002_v30  ;;  %v2512_v27 = vmul.f32 %v3726_v50, %v4223_v37  ;;  %v8003_v37 = vld [vmem:[#allocation72_spill] sm:$0xff]  ;;  %v8007_v54 = vld [vmem:[#allocation73_spill] sm:$0xff]  ;;  %v8015_v42 = vld [vmem:[#allocation75_spill] sm:$0xff] }
 0x3ae   : > { %v2180_v0 = vsel %vm1108_vm6, %v2178_v11, %v8000_v6  ;;  %v2092_v10 = vadd.f32 %v2059_v60, %v1971_v28  ;;  %v2230_v48 = vmul.f32 %v3726_v50, %v4225_v41  ;;  %v2453_v63 = vrot.slane %v2391_v13, 2  ;;  %v8017_v28 = vld [vmem:[#allocation35_spill] sm:$0xff]  ;;  %v8018_v6 = vld [vmem:[#allocation49_spill] sm:$0xff] }
 0x3af   : > { %v3244_v12 = vadd.f32 %v3206_v15, %v3123_v43  ;;  %v2633_v33 = vmul.f32 %v3726_v50, %v4233_v52  ;;  %v8002_v14 = vrot.slane %v8001_v34, 1  ;;  %v2574_v39 = vrot.slane %v2512_v27, 3  ;;  %v3289_v43 = vpop.permute.xlu1 %3288 }
 0x3b0   : > { %v2213_v59 = vadd.f32 %v2180_v0, %v2092_v10  ;;  %v8004_v41 = vrot.slane %v8003_v37, 2  ;;  %v2787_v52 = vmul.f32 %v4273_v45, %v657_v26  ;;  %v8006_v9 = vrot.slane %v8005_v55, 3  ;;  %v8020_v10 = vld [vmem:[#allocation55_spill] sm:$0xff]  ;;  %v8025_v55 = vld [vmem:[#allocation36_spill] sm:$0xff] }
 0x3b1   : > { %v6933_v1 = vadd.f32 %v6462_v40, %v3244_v12  ;;  %v2334_v24 = vsel %vm742_vm3, %v2332_v19, %v8002_v14  ;;  %v2695_v17 = vrot.slane %v2633_v33, 4  ;;  %v2908_v5 = vmul.f32 %v7973_v46, %v657_v26  ;;  %v8019_v19 = vld [vmem:[#allocation14_spill] sm:$0xff]  ;;  %v8021_v33 = vld [vmem:[#allocation15_spill] sm:$0xff] }
 0x3b2   : > { %v2246_v2 = vadd.f32 %v2230_v48, %v2213_v59  ;;  %v2455_v18 = vsel %vm864_vm4, %v2453_v63, %v8004_v41  ;;  %v2576_v32 = vsel %vm986_vm5, %v2574_v39, %v8006_v9  ;;  %v8008_v20 = vrot.slane %v8007_v54, 4  ;;  %v8023_v41 = vld [vmem:[#allocation30_spill] sm:$0xff] }
 0x3b3   : > { %3306 = vrot.lane.b32.xlu2 %v6933_v1, %s3768_s7  ;;  %3386 = vrot.lane.b32.xlu0 %v6933_v1, %s3769_s10  ;;  %v2849_v8 = vrot.slane %v2787_v52, 1  ;;  %v3029_v22 = vmul.f32 %v7981_v47, %v657_v26  ;;  %v2747_v45 = vmul.f32 %v7974_v62, %v657_v26  ;;  %v2970_v7 = vrot.slane %v2908_v5, 2  ;;  %v8013_v47 = vld [vmem:[#allocation74_spill] sm:$0xff] }
 0x3b4   : > { %v2367_v58 = vadd.f32 %v2334_v24, %v2246_v2  ;;  %v2697_v16 = vsel %vm1108_vm6, %v2695_v17, %v8008_v20  ;;  %v3150_v25 = vmul.f32 %v7984_v56, %v657_v26  ;;  %v8010_v11 = vrot.slane %v8009_v36, 1  ;;  %v3287_v63 = vpop.permute.xlu0 %3286  ;;  %v8022_v24 = vld [vmem:[#allocation38_spill] sm:$0xff]  ;;  %v8027_v20 = vld [vmem:[#allocation57_spill] sm:$0xff] }
 0x3b5   : > { %v3091_v46 = vrot.slane %v3029_v22, 3  ;;  %v8012_v29 = vrot.slane %v8011_v57, 2  ;;  %v8014_v49 = vrot.slane %v8013_v47, 3  ;;  %v8016_v60 = vrot.slane %v8015_v42, 4 }
 0x3b6   : > { %v2488_v31 = vadd.f32 %v2455_v18, %v2367_v58  ;;  %v2851_v50 = vsel %vm742_vm3, %v2849_v8, %v8010_v11  ;;  %v3212_v53 = vrot.slane %v3150_v25, 4  ;;  %v3334_v0 = vmul.f32 %v3289_v43, %v8018_v6 }
 0x3b7   : > { %v2972_v4 = vsel %vm864_vm4, %v2970_v7, %v8012_v29  ;;  %v3093_v62 = vsel %vm986_vm5, %v3091_v46, %v8014_v49  ;;  %v3332_v27 = vmul.f32 %v3285_v21, %v8019_v19  ;;  %v3291_v12 = vpop.permute.xlu1 %3290  ;;  %v3333_v59 = vmul.f32 %v3287_v63, %v8017_v28  ;;  %v8028_v7 = vld [vmem:[#allocation76_spill] sm:$0xff] }
 0x3b8   : > { %v2609_v35 = vadd.f32 %v2576_v32, %v2488_v31  ;;  %v3214_v13 = vsel %vm1108_vm6, %v3212_v53, %v8016_v60  ;;  %3350 = vst.msk [vmem:[%s3878_s20 + $0x10] sm:$0xff] %vm365_vm1, %v3334_v0  ;;  %v3335_v26 = vmul.f32 %v3291_v12, %v8021_v33  ;;  %v8026_v32 = vld [vmem:[#allocation48_spill] sm:$0xff] }
 0x3b9   : > { %3348 = vst.msk [vmem:[%s3878_s20] sm:$0xff] %vm365_vm1, %v3332_v27 }
 0x3ba   : > { %v2730_v38 = vadd.f32 %v2697_v16, %v2609_v35  ;;  %3351 = vst.msk [vmem:[%s3878_s20 + $0x18] sm:$0xff] %vm365_vm1, %v3335_v26 }
 0x3bb   : > { %3349 = vst.msk [vmem:[%s3878_s20 + $0x8] sm:$0xff] %vm365_vm1, %v3333_v59 }
 0x3bc   : > { %v2763_v61 = vadd.f32 %v2747_v45, %v2730_v38  ;;  %v3297_v2 = vpop.permute.xlu0 %3296 }
 0x3bd   : > { %v3338_v18 = vmul.f32 %v3297_v2, %v8023_v41 }
 0x3be   : > { %v2884_v30 = vadd.f32 %v2851_v50, %v2763_v61 }
 0x3bf   : > { %v3299_v39 = vpop.permute.xlu1 %3298  ;;  %3354 = vst.msk [vmem:[%s3878_s20 + $0x30] sm:$0xff] %vm365_vm1, %v3338_v18 }
 0x3c0   : > { %v3005_v56 = vadd.f32 %v2972_v4, %v2884_v30  ;;  %v3339_v37 = vmul.f32 %v3299_v39, %v8022_v24 }
 0x3c2   : > { %v3126_v44 = vadd.f32 %v3093_v62, %v3005_v56  ;;  %3355 = vst.msk [vmem:[%s3878_s20 + $0x38] sm:$0xff] %vm365_vm1, %v3339_v37 }
 0x3c4   : > { %v3247_v23 = vadd.f32 %v3214_v13, %v3126_v44  ;;  %v3303_v52 = vpop.permute.xlu0 %3302 }
 0x3c5   : > { %v3341_v9 = vmul.f32 %v3303_v52, %v8025_v55 }
 0x3c6   : > { %v6969_v15 = vadd.f32 %v6462_v40, %v3247_v23  ;;  %v3293_v40 = vpop.permute.xlu2 %3292 }
 0x3c7   : > { %v3336_v48 = vmul.f32 %v3293_v40, %v8020_v10  ;;  %v3305_v17 = vpop.permute.xlu1 %3304  ;;  %3357 = vst.msk [vmem:[%s3878_s20 + $0x48] sm:$0xff] %vm365_vm1, %v3341_v9 }
 0x3c8   : > { %3312 = vrot.lane.b32.xlu2 %v6969_v15, %s3768_s7  ;;  %3392 = vrot.lane.b32.xlu0 %v6969_v15, %s3769_s10 }
 0x3c9   : > { %3352 = vst.msk [vmem:[%s3878_s20 + $0x20] sm:$0xff] %vm365_vm1, %v3336_v48 }
 0x3cc   : > { %v3309_v31 = vpop.permute.xlu0 %3308 }
 0x3cd   : > { %v3344_v16 = vmul.f32 %v3309_v31, %v8027_v20 }
 0x3ce   : > { %v3295_v34 = vpop.permute.xlu2 %3294 }
 0x3cf   : > { %v3337_v14 = vmul.f32 %v3295_v34, %v6605_v3  ;;  %v8024_v3 = vld [vmem:[#allocation60_spill] sm:$0xff]  ;;  %v3311_v5 = vpop.permute.xlu1 %3310  ;;  %3360 = vst.msk [vmem:[%s3878_s20 + $0x60] sm:$0xff] %vm365_vm1, %v3344_v16 }
 0x3d0   : > { %3366 = vrot.lane.b32.xlu2 %v8017_v28, %s3769_s10  ;;  %v3342_v58 = vmul.f32 %v3305_v17, %v8024_v3  ;;  %v3345_v54 = vmul.f32 %v3311_v5, %v8026_v32 }
 0x3d1   : > { %3353 = vst.msk [vmem:[%s3878_s20 + $0x28] sm:$0xff] %vm365_vm1, %v3337_v14 }
 0x3d2   : > { %3358 = vst.msk [vmem:[%s3878_s20 + $0x50] sm:$0xff] %vm365_vm1, %v3342_v58 }
 0x3d3   : > { %3361 = vst.msk [vmem:[%s3878_s20 + $0x68] sm:$0xff] %vm365_vm1, %v3345_v54 }
 0x3d7   : > { %v3365_v35 = vpop.permute.xlu1 %3364 }
 0x3d8   : > { %3372 = vrot.lane.b32.xlu2 %v8020_v10, %s3769_s10  ;;  %3412 = vst.msk [vmem:[%s3883_s29] sm:$0xff] %vm365_vm1, %v3365_v35 }
 0x3df   : > { %v3371_v38 = vpop.permute.xlu1 %3370 }
 0x3e0   : > { %3378 = vrot.lane.b32.xlu2 %v8022_v24, %s3769_s10  ;;  %3415 = vst.msk [vmem:[%s3883_s29 + $0x18] sm:$0xff] %vm365_vm1, %v3371_v38 }
 0x3e7   : > { %v3377_v50 = vpop.permute.xlu1 %3376 }
 0x3e8   : > { %3384 = vrot.lane.b32.xlu2 %v8024_v3, %s3769_s10  ;;  %v3315_v45 = vpop.permute.xlu0 %3314  ;;  %3418 = vst.msk [vmem:[%s3883_s29 + $0x30] sm:$0xff] %vm365_vm1, %v3377_v50 }
 0x3e9   : > { %v3347_v25 = vmul.f32 %v3315_v45, %v8028_v7 }
 0x3eb   : > { %3363 = vst.msk [vmem:[%s3878_s20 + $0x78] sm:$0xff] %vm365_vm1, %v3347_v25 }
 0x3ef   : > { %v3383_v61 = vpop.permute.xlu1 %3382 }
 0x3f0   : > { %3390 = vrot.lane.b32.xlu2 %v8026_v32, %s3769_s10  ;;  %v3369_v36 = vpop.permute.xlu0 %3368  ;;  %3421 = vst.msk [vmem:[%s3883_s29 + $0x48] sm:$0xff] %vm365_vm1, %v3383_v61 }
 0x3f1   : > { %3414 = vst.msk [vmem:[%s3883_s29 + $0x10] sm:$0xff] %vm365_vm1, %v3369_v36 }
 0x3f7   : > { %v3301_v8 = vpop.permute.xlu2 %3300  ;;  %v3389_v29 = vpop.permute.xlu1 %3388 }
 0x3f8   : > { %v3340_v22 = vmul.f32 %v3301_v8, %v6865_v51  ;;  %v3375_v46 = vpop.permute.xlu0 %3374  ;;  %3424 = vst.msk [vmem:[%s3883_s29 + $0x60] sm:$0xff] %vm365_vm1, %v3389_v29 }
 0x3f9   : > { %3417 = vst.msk [vmem:[%s3883_s29 + $0x28] sm:$0xff] %vm365_vm1, %v3375_v46 }
 0x3fa   : > { %3356 = vst.msk [vmem:[%s3878_s20 + $0x40] sm:$0xff] %vm365_vm1, %v3340_v22 }
 0x3ff   : > { %v3395_v47 = vpop.permute.xlu1 %3394 }
 0x400   : > { %3427 = vst.msk [vmem:[%s3883_s29 + $0x78] sm:$0xff] %vm365_vm1, %v3395_v47 }
 0x40d   : > { %v3307_v51 = vpop.permute.xlu2 %3306 }
 0x40e   : > { %v3343_v11 = vmul.f32 %v3307_v51, %v6933_v1 }
 0x40f   : > { %v3381_v57 = vpop.permute.xlu0 %3380 }
 0x410   : > { %3359 = vst.msk [vmem:[%s3878_s20 + $0x58] sm:$0xff] %vm365_vm1, %v3343_v11 }
 0x411   : > { %3420 = vst.msk [vmem:[%s3883_s29 + $0x40] sm:$0xff] %vm365_vm1, %v3381_v57 }
 0x422   : > { %v3313_v1 = vpop.permute.xlu2 %3312 }
 0x423   : > { %v3346_v4 = vmul.f32 %v3313_v1, %v6969_v15 }
 0x425   : > { %3362 = vst.msk [vmem:[%s3878_s20 + $0x70] sm:$0xff] %vm365_vm1, %v3346_v4  ;;  %v3387_v53 = vpop.permute.xlu0 %3386 }
 0x426   : > { %3423 = vst.msk [vmem:[%s3883_s29 + $0x58] sm:$0xff] %vm365_vm1, %v3387_v53 }
 0x42a   : > { %v3367_v30 = vpop.permute.xlu2 %3366 }
 0x42b   : > { %3413 = vst.msk [vmem:[%s3883_s29 + $0x8] sm:$0xff] %vm365_vm1, %v3367_v30 }
 0x432   : > { %v3373_v49 = vpop.permute.xlu2 %3372 }
 0x433   : > { %3416 = vst.msk [vmem:[%s3883_s29 + $0x20] sm:$0xff] %vm365_vm1, %v3373_v49 }
 0x43a   : > { %v3379_v62 = vpop.permute.xlu2 %3378  ;;  %v3393_v56 = vpop.permute.xlu0 %3392 }
 0x43b   : > { %3419 = vst.msk [vmem:[%s3883_s29 + $0x38] sm:$0xff] %vm365_vm1, %v3379_v62 }
 0x43c   : > { %3426 = vst.msk [vmem:[%s3883_s29 + $0x70] sm:$0xff] %vm365_vm1, %v3393_v56 }
 0x442   : > { %v3385_v42 = vpop.permute.xlu2 %3384 }
 0x443   : > { %3422 = vst.msk [vmem:[%s3883_s29 + $0x50] sm:$0xff] %vm365_vm1, %v3385_v42 }
 0x44a   : > { %v3391_v60 = vpop.permute.xlu2 %3390 }
 0x44b   : > { %3425 = vst.msk [vmem:[%s3883_s29 + $0x68] sm:$0xff] %vm365_vm1, %v3391_v60 }
 0x44c PF: > { %s17_s25 = sadd.s32 1, %s3765_s25   ;;  %s8029_s21 = smov %s3757_s23 }
 0x44d   : > { %p14_p9 = scmp.ge.s32.totalorder %s17_s25, 6   ;;  %s8030_s22 = smov %s3761_s24 }
 0x44e   : > { %s8031_s23 = smov %s8034_s26  ;;  %s8032_s24 = smov %s8038_s27 }
 0x44f   :  { %16 = sbr.rel (!%p14_p9) target bundleno = 3 (0x3), region = 104 }

</bundles_post_ra>
